<compile_context>
chip_gen: v7x
topology: tpu7x:2x2x1
jax: 0.10.0
libtpu: 0.0.40
codegen_flags: <defaults>
</compile_context>

<pallas_src>
import math

import jax
import jax.numpy as jnp
from jax.experimental import pallas as pl
from jax.experimental.pallas import tpu as pltpu

START_TAG = "<START>"
STOP_TAG = "<STOP>"

# ---- model hyper-parameters (small, consistent with the module) ----
VOCAB_SIZE = 50
EMBEDDING_DIM = 32
HIDDEN_DIM = 32                 # per-direction LSTM hidden = HIDDEN_DIM // 2 = 16
NUM_LAYERS = 4
SEQ_LEN = 8
TAG_TO_IX = {"B": 0, "I": 1, "O": 2, START_TAG: 3, STOP_TAG: 4}
NUM_TAGS = len(TAG_TO_IX)
START_IDX = TAG_TO_IX[START_TAG]
STOP_IDX = TAG_TO_IX[STOP_TAG]

H = HIDDEN_DIM // 2             # 16  per-direction hidden size
HD = HIDDEN_DIM                 # 32  both directions concatenated
G = 4 * HD                      # 128 packed gate lanes: [i_f,i_b | f_f,f_b | g_f,g_b | o_f,o_b]


# ------------------------------------------------------------------ fused kernel
def bilstm_crf_kernel(sent_ref, embg_ref, wih_ref, whh_ref, b_ref,
                      h0_ref, c0_ref, w2t_ref, b2t_ref, transt_ref, stop_ref,
                      score_ref, tag_ref):
    """Entire BiLSTM_CRF.forward in one kernel (no scratch; working set stays in vregs).

    sent_ref   : (T,)            int32 token ids (SMEM)
    embg_ref   : (V, G)          embedding pre-folded through layer-0 input projection
    wih_ref    : (L-1, HD, G)    packed input->gate weights for layers 1..L-1
    whh_ref    : (L, HD, G)      packed block-diagonal recurrent weights (all layers)
    b_ref      : (L-1, 1, G)     packed gate bias for layers 1..L-1
    h0_ref/c0_ref : (L, 1, HD)   initial states [fwd | bwd]
    w2t_ref    : (HD, K)         hidden2tag weight (pre-transposed), b2t_ref: (1, K)
    transt_ref : (K, K)          transitions.T, i.e. trans_t[prev, next]
    stop_ref   : (1, K)          transitions[STOP, :]
    score_ref  : (1, 1)          Viterbi path score (output)
    tag_ref    : (1, T)          decoded tag sequence (output, int32)

    NOTE: the i/f/o gate lanes of embg/wih/whh/b were pre-scaled by 0.5 offline so that
    sigmoid(z) can be recovered from tanh of the packed pre-activation with a mul+add.
    """
    T = SEQ_LEN
    K = NUM_TAGS

    # lane masks / constants over the packed 128-wide gate layout (hoisted, constant)
    lane_g = jax.lax.broadcasted_iota(jnp.int32, (1, G), 1)
    fwd_mask = (lane_g % HD) < H                     # forward-direction lanes of each gate
    g_mask = (lane_g >= 2 * HD) & (lane_g < 3 * HD)  # cell-gate lanes (true tanh)
    act_scale = jnp.where(g_mask, jnp.float32(1.0), jnp.float32(0.5))
    act_shift = jnp.where(g_mask, jnp.float32(0.0), jnp.float32(0.5))

    # ---------------- layer-0 gate pre-activations: gather folded (V, G) rows ----------
    xrow = [embg_ref[pl.ds(sent_ref[t], 1), :] for t in range(T)]       # T x (1, G)

    # ---------------- 4 bidirectional LSTM layers (both dirs in lockstep) --------------
    x = None                                         # (T, HD) layer output, vreg-resident
    for layer in range(NUM_LAYERS):
        if layer > 0:
            # hoisted input projection for all timesteps & both dirs: (T,HD)@(HD,G)+(1,G)
            xpre = (jnp.dot(x, wih_ref[layer - 1],
                            preferred_element_type=jnp.float32) + b_ref[layer - 1])
            xrow = [xpre[t:t + 1, :] for t in range(T)]
        whh = whh_ref[layer]                         # (HD, G) loaded once per layer
        h = h0_ref[layer]                            # (1, HD) = [h_fwd | h_bwd]
        c = c0_ref[layer]
        fwd_rows = [None] * T
        bwd_rows = [None] * T
        for t in range(T):                           # fully unrolled serial recurrence
            # forward dir consumes time t, backward dir consumes time T-1-t
            pre = (jnp.where(fwd_mask, xrow[t], xrow[T - 1 - t])
                   + jnp.dot(h, whh, preferred_element_type=jnp.float32))   # (1, G)
            th = jnp.tanh(pre)                       # single dense EUP pass for all gates
            act = th * act_scale + act_shift         # i/f/o -> sigmoid, g -> tanh
            i_g = act[:, 0 * HD:1 * HD]
            f_g = act[:, 1 * HD:2 * HD]
            g_g = act[:, 2 * HD:3 * HD]
            o_g = act[:, 3 * HD:4 * HD]
            c = f_g * c + i_g * g_g                  # (1, HD) = [c_fwd | c_bwd]
            h = o_g * jnp.tanh(c)
            fwd_rows[t] = h[:, 0:H]                  # forward half -> output time t
            bwd_rows[T - 1 - t] = h[:, H:HD]         # backward half -> output time T-1-t
        # assemble (T, HD) layer output entirely in vregs (no masked VMEM stores)
        x = jnp.concatenate([jnp.concatenate(fwd_rows, axis=0),
                             jnp.concatenate(bwd_rows, axis=0)], axis=1)

    # ---------------- hidden2tag ----------------
    feats = (jnp.dot(x, w2t_ref[...], preferred_element_type=jnp.float32)
             + b2t_ref[...])                         # (T, K)

    # ---------------- Viterbi forward recursion (VPU/XLU only, no MXU) -------
    lane_k = jax.lax.broadcasted_iota(jnp.int32, (1, K), 1)
    lane_k_f = lane_k.astype(jnp.float32)
    row_ids = jax.lax.broadcasted_iota(jnp.int32, (K, K), 0).astype(jnp.float32)
    eye_b = (jax.lax.broadcasted_iota(jnp.int32, (K, K), 0)
             == jax.lax.broadcasted_iota(jnp.int32, (K, K), 1))
    trans_t = transt_ref[...]                        # trans_t[prev, next] = transitions[next, prev]

    fvar = jnp.where(lane_k == START_IDX, jnp.float32(0.0), jnp.float32(-10000.0))  # (1, K)
    bp_rows = []                                     # backpointer rows stay in vregs
    for t in range(T):
        # row -> column without MXU: diag-mask + lane reduce
        fcol = jnp.max(jnp.where(eye_b, fvar, -jnp.inf), axis=1, keepdims=True)     # (K, 1)
        scores = fcol + trans_t                      # scores[prev, next]
        vmax = jnp.max(scores, axis=0, keepdims=True)                               # (1, K)
        tied = jnp.where(scores == vmax, row_ids, jnp.float32(K))
        bp_rows.append(jnp.min(tied, axis=0, keepdims=True))   # first argmax (torch-like)
        fvar = vmax + feats[t:t + 1, :]

    # ---------------- terminal transition + argmax + backtracking ------------
    term = fvar + stop_ref[...]                                 # (1, K)
    best_score = jnp.max(term, axis=1, keepdims=True)           # (1, 1)
    score_ref[...] = best_score
    best = jnp.min(jnp.where(term == best_score, lane_k_f, jnp.float32(K)),
                   axis=1, keepdims=True)                       # (1, 1) best terminal tag

    # decoded tags accumulate in a (1, T) vreg; single store at the end
    lane_t = jax.lax.broadcasted_iota(jnp.int32, (1, T), 1)
    tags_acc = jnp.where(lane_t == (T - 1), best, jnp.float32(0.0))
    onehot = lane_k_f == best
    for t in range(T - 1, 0, -1):
        prev = jnp.max(jnp.where(onehot, bp_rows[t], jnp.float32(-1.0)),
                       axis=1, keepdims=True)                   # (1, 1)
        tags_acc = jnp.where(lane_t == (t - 1), prev, tags_acc)
        onehot = lane_k_f == prev
    # (the START tag that bp_rows[0] points back to is dropped, as in the reference)
    tag_ref[...] = tags_acc.astype(jnp.int32)


# ------------------------------------------------------------------ wrapper
_VMEM = pl.BlockSpec(memory_space=pltpu.MemorySpace.VMEM)
_SMEM = pl.BlockSpec(memory_space=pltpu.MemorySpace.SMEM)


def bilstm_crf_call(sentence, p):
    return pl.pallas_call(
        bilstm_crf_kernel,
        out_shape=(jax.ShapeDtypeStruct((1, 1), jnp.float32),
                   jax.ShapeDtypeStruct((1, SEQ_LEN), jnp.int32)),
        in_specs=[_SMEM] + [_VMEM] * 10,
        out_specs=(_VMEM, _VMEM),
    )(sentence, p["emb_gates"], p["wih"], p["whh"], p["b"],
      p["h0"], p["c0"], p["w2t"], p["b2t"], p["trans_t"], p["stop_row"])


def forward(params, sentence):
    """Equivalent of BiLSTM_CRF.forward(sentence) -> (viterbi score, tag_seq)."""
    score, tags = bilstm_crf_call(sentence.astype(jnp.int32), params)
    return score[0, 0], tags[0]


# ------------------------------------------------------------------ parameters
def init_params(key):
    keys = iter(jax.random.split(key, 64))
    K = NUM_TAGS

    emb = jax.random.normal(next(keys), (VOCAB_SIZE, EMBEDDING_DIM), jnp.float32)

    bound = 1.0 / math.sqrt(H)
    wih_l, whh_l, b_l = [], [], []
    for layer in range(NUM_LAYERS):
        in_dim = EMBEDDING_DIM if layer == 0 else HIDDEN_DIM       # both are 32
        raw = []
        for _d in range(2):                                        # 0 = forward, 1 = backward
            w_ih = jax.random.uniform(next(keys), (4 * H, in_dim), jnp.float32, -bound, bound)
            w_hh = jax.random.uniform(next(keys), (4 * H, H), jnp.float32, -bound, bound)
            b_ih = jax.random.uniform(next(keys), (4 * H,), jnp.float32, -bound, bound)
            b_hh = jax.random.uniform(next(keys), (4 * H,), jnp.float32, -bound, bound)
            raw.append((w_ih, w_hh, b_ih, b_hh))
        # pack both directions: lane layout [gate][direction], each block of width H;
        # recurrent weights are block-diagonal over the [h_fwd | h_bwd] input rows.
        wih_p = jnp.zeros((in_dim, G), jnp.float32)
        whh_p = jnp.zeros((HD, G), jnp.float32)
        b_p = jnp.zeros((1, G), jnp.float32)
        for g in range(4):                                         # torch gate order i, f, g, o
            for d in range(2):
                w_ih, w_hh, b_ih, b_hh = raw[d]
                col = slice(g * HD + d * H, g * HD + (d + 1) * H)
                rows = slice(g * H, (g + 1) * H)
                wih_p = wih_p.at[:, col].set(w_ih[rows, :].T)
                whh_p = whh_p.at[d * H:(d + 1) * H, col].set(w_hh[rows, :].T)
                b_p = b_p.at[0, col].set(b_ih[rows] + b_hh[rows])
        wih_l.append(wih_p)
        whh_l.append(whh_p)
        b_l.append(b_p)

    wih_s = jnp.stack(wih_l)                                       # (L, HD, G)
    whh_s = jnp.stack(whh_l)                                       # (L, HD, G)
    b_s = jnp.stack(b_l)                                           # (L, 1, G)

    # Pre-scale the i/f/o gate lanes by 0.5 so the kernel recovers sigmoid from one tanh:
    # sigmoid(z) = 0.5*tanh(z/2) + 0.5 (cell-gate lanes keep scale 1.0).
    lane = jnp.arange(G)
    gscale = jnp.where((lane >= 2 * HD) & (lane < 3 * HD), 1.0, 0.5).astype(jnp.float32)
    wih_s = wih_s * gscale
    whh_s = whh_s * gscale
    b_s = b_s * gscale

    # Fold the embedding table through the (scaled) layer-0 input projection:
    # (V, E) @ (E, G) + (1, G) -> dense lane-width-128 gather table, ~28 KiB in VMEM.
    emb_gates = emb @ wih_s[0] + b_s[0]                            # (V, G)

    # TODO(synk): the PyTorch module resamples init_hidden() (torch.randn) on every forward;
    # here h0/c0 are sampled once at init and reused as a deterministic stand-in.
    h0 = jax.random.normal(next(keys), (2 * NUM_LAYERS, 1, H), jnp.float32)
    c0 = jax.random.normal(next(keys), (2 * NUM_LAYERS, 1, H), jnp.float32)
    h0_p = jnp.stack([jnp.concatenate([h0[2 * l], h0[2 * l + 1]], axis=1)
                      for l in range(NUM_LAYERS)])                 # (L, 1, HD)
    c0_p = jnp.stack([jnp.concatenate([c0[2 * l], c0[2 * l + 1]], axis=1)
                      for l in range(NUM_LAYERS)])

    lb = 1.0 / math.sqrt(HIDDEN_DIM)
    h2t_w = jax.random.uniform(next(keys), (K, HIDDEN_DIM), jnp.float32, -lb, lb)
    h2t_b = jax.random.uniform(next(keys), (K,), jnp.float32, -lb, lb)

    trans = jax.random.normal(next(keys), (K, K), jnp.float32)
    trans = trans.at[START_IDX, :].set(-10000.0)
    trans = trans.at[:, STOP_IDX].set(-10000.0)

    return {
        "emb_gates": emb_gates,                            # (V, G)   folded layer-0 gates
        "wih": wih_s[1:],                                  # (L-1, HD, G)
        "whh": whh_s,                                      # (L, HD, G)
        "b": b_s[1:],                                      # (L-1, 1, G)
        "h0": h0_p, "c0": c0_p,                            # (L, 1, HD)
        "w2t": h2t_w.T,                                    # (HD, K)
        "b2t": h2t_b.reshape(1, K),                        # (1, K)
        "trans_t": trans.T,                                # (K, K): [prev, next]
        "stop_row": trans[STOP_IDX].reshape(1, K),         # (1, K)
    }


# ------------------------------------------------------------------ main
if __name__ == "__main__":
    key = jax.random.PRNGKey(0)
    k_params, k_sent = jax.random.split(key)
    params = init_params(k_params)
    sentence = jax.random.randint(k_sent, (SEQ_LEN,), 0, VOCAB_SIZE, dtype=jnp.int32)

    score, tag_seq = jax.jit(forward)(params, sentence)
    jax.block_until_ready((score, tag_seq))
    print("KERNEL_OK")
</pallas_src>

<mosaic_0001>
module attributes {stable_mosaic.version = 11 : i64} {
  func.func @bilstm_crf_kernel(%arg0: memref<8xi32, #tpu.memory_space<smem>>, %arg1: memref<50x128xf32, #tpu.memory_space<vmem>>, %arg2: memref<3x32x128xf32, #tpu.memory_space<vmem>>, %arg3: memref<4x32x128xf32, #tpu.memory_space<vmem>>, %arg4: memref<3x1x128xf32, #tpu.memory_space<vmem>>, %arg5: memref<4x1x32xf32, #tpu.memory_space<vmem>>, %arg6: memref<4x1x32xf32, #tpu.memory_space<vmem>>, %arg7: memref<32x5xf32, #tpu.memory_space<vmem>>, %arg8: memref<1x5xf32, #tpu.memory_space<vmem>>, %arg9: memref<5x5xf32, #tpu.memory_space<vmem>>, %arg10: memref<1x5xf32, #tpu.memory_space<vmem>>, %arg11: memref<1x1xf32, #tpu.memory_space<vmem>>, %arg12: memref<1x8xi32, #tpu.memory_space<vmem>>) attributes {dimension_semantics = [], scalar_prefetch = 0 : i64, scratch_operands = 0 : i64, tpu.core_type = #tpu.core_type<tc>} {
    %0 = tpu.iota {dimensions = array<i32: 1>} : vector<1x128xi32>
    %c32_i32 = arith.constant 32 : i32
    %c0_i32 = arith.constant 0 : i32
    %1 = arith.cmpi eq, %c32_i32, %c0_i32 : i32
    %c1_i32 = arith.constant 1 : i32
    %2 = arith.select %1, %c1_i32, %c32_i32 : i32
    %3 = vector.broadcast %2 : i32 to vector<1x128xi32>
    %4 = arith.remsi %0, %3 : vector<1x128xi32>
    %c0_i32_0 = arith.constant 0 : i32
    %5 = vector.broadcast %c0_i32_0 : i32 to vector<1x128xi32>
    %6 = arith.cmpi ne, %4, %5 : vector<1x128xi32>
    %c0_i32_1 = arith.constant 0 : i32
    %7 = vector.broadcast %c0_i32_1 : i32 to vector<1x128xi32>
    %8 = arith.cmpi slt, %4, %7 : vector<1x128xi32>
    %c0_i32_2 = arith.constant 0 : i32
    %9 = arith.cmpi slt, %2, %c0_i32_2 : i32
    %10 = vector.broadcast %9 : i1 to vector<1x128xi1>
    %11 = vector.broadcast %10 : vector<1x128xi1> to vector<1x128xi1>
    %12 = arith.xori %8, %11 : vector<1x128xi1>
    %13 = arith.andi %12, %6 : vector<1x128xi1>
    %14 = vector.broadcast %2 : i32 to vector<1x128xi32>
    %15 = arith.addi %4, %14 : vector<1x128xi32>
    %16 = arith.select %13, %15, %4 : vector<1x128xi1>, vector<1x128xi32>
    %c16_i32 = arith.constant 16 : i32
    %17 = vector.broadcast %c16_i32 : i32 to vector<1x128xi32>
    %18 = arith.cmpi slt, %16, %17 : vector<1x128xi32>
    %c64_i32 = arith.constant 64 : i32
    %19 = vector.broadcast %c64_i32 : i32 to vector<1x128xi32>
    %20 = arith.cmpi sge, %0, %19 : vector<1x128xi32>
    %c96_i32 = arith.constant 96 : i32
    %21 = vector.broadcast %c96_i32 : i32 to vector<1x128xi32>
    %22 = arith.cmpi slt, %0, %21 : vector<1x128xi32>
    %23 = arith.andi %20, %22 : vector<1x128xi1>
    %cst = arith.constant 1.000000e+00 : f32
    %cst_3 = arith.constant 5.000000e-01 : f32
    %24 = vector.broadcast %cst : f32 to vector<1x128xf32>
    %25 = vector.broadcast %cst_3 : f32 to vector<1x128xf32>
    %26 = arith.select %23, %24, %25 : vector<1x128xi1>, vector<1x128xf32>
    %cst_4 = arith.constant 0.000000e+00 : f32
    %cst_5 = arith.constant 5.000000e-01 : f32
    %27 = vector.broadcast %cst_4 : f32 to vector<1x128xf32>
    %28 = vector.broadcast %cst_5 : f32 to vector<1x128xf32>
    %29 = arith.select %23, %27, %28 : vector<1x128xi1>, vector<1x128xf32>
    %c0 = arith.constant 0 : index
    %30 = memref.load %arg0[%c0] : memref<8xi32, #tpu.memory_space<smem>>
    %31 = arith.index_cast %30 : i32 to index
    %c0_6 = arith.constant 0 : index
    %32 = vector.load %arg1[%31, %c0_6] : memref<50x128xf32, #tpu.memory_space<vmem>>, vector<1x128xf32>
    %c1 = arith.constant 1 : index
    %33 = memref.load %arg0[%c1] : memref<8xi32, #tpu.memory_space<smem>>
    %34 = arith.index_cast %33 : i32 to index
    %c0_7 = arith.constant 0 : index
    %35 = vector.load %arg1[%34, %c0_7] : memref<50x128xf32, #tpu.memory_space<vmem>>, vector<1x128xf32>
    %c2 = arith.constant 2 : index
    %36 = memref.load %arg0[%c2] : memref<8xi32, #tpu.memory_space<smem>>
    %37 = arith.index_cast %36 : i32 to index
    %c0_8 = arith.constant 0 : index
    %38 = vector.load %arg1[%37, %c0_8] : memref<50x128xf32, #tpu.memory_space<vmem>>, vector<1x128xf32>
    %c3 = arith.constant 3 : index
    %39 = memref.load %arg0[%c3] : memref<8xi32, #tpu.memory_space<smem>>
    %40 = arith.index_cast %39 : i32 to index
    %c0_9 = arith.constant 0 : index
    %41 = vector.load %arg1[%40, %c0_9] : memref<50x128xf32, #tpu.memory_space<vmem>>, vector<1x128xf32>
    %c4 = arith.constant 4 : index
    %42 = memref.load %arg0[%c4] : memref<8xi32, #tpu.memory_space<smem>>
    %43 = arith.index_cast %42 : i32 to index
    %c0_10 = arith.constant 0 : index
    %44 = vector.load %arg1[%43, %c0_10] : memref<50x128xf32, #tpu.memory_space<vmem>>, vector<1x128xf32>
    %c5 = arith.constant 5 : index
    %45 = memref.load %arg0[%c5] : memref<8xi32, #tpu.memory_space<smem>>
    %46 = arith.index_cast %45 : i32 to index
    %c0_11 = arith.constant 0 : index
    %47 = vector.load %arg1[%46, %c0_11] : memref<50x128xf32, #tpu.memory_space<vmem>>, vector<1x128xf32>
    %c6 = arith.constant 6 : index
    %48 = memref.load %arg0[%c6] : memref<8xi32, #tpu.memory_space<smem>>
    %49 = arith.index_cast %48 : i32 to index
    %c0_12 = arith.constant 0 : index
    %50 = vector.load %arg1[%49, %c0_12] : memref<50x128xf32, #tpu.memory_space<vmem>>, vector<1x128xf32>
    %c7 = arith.constant 7 : index
    %51 = memref.load %arg0[%c7] : memref<8xi32, #tpu.memory_space<smem>>
    %52 = arith.index_cast %51 : i32 to index
    %c0_13 = arith.constant 0 : index
    %53 = vector.load %arg1[%52, %c0_13] : memref<50x128xf32, #tpu.memory_space<vmem>>, vector<1x128xf32>
    %c0_14 = arith.constant 0 : index
    %c0_15 = arith.constant 0 : index
    %c0_16 = arith.constant 0 : index
    %54 = vector.load %arg3[%c0_14, %c0_15, %c0_16] : memref<4x32x128xf32, #tpu.memory_space<vmem>>, vector<1x32x128xf32>
    %55 = vector.shape_cast %54 : vector<1x32x128xf32> to vector<32x128xf32>
    %c0_17 = arith.constant 0 : index
    %c0_18 = arith.constant 0 : index
    %c0_19 = arith.constant 0 : index
    %56 = vector.load %arg5[%c0_17, %c0_18, %c0_19] : memref<4x1x32xf32, #tpu.memory_space<vmem>>, vector<1x1x32xf32>
    %57 = vector.shape_cast %56 : vector<1x1x32xf32> to vector<1x32xf32>
    %c0_20 = arith.constant 0 : index
    %c0_21 = arith.constant 0 : index
    %c0_22 = arith.constant 0 : index
    %58 = vector.load %arg6[%c0_20, %c0_21, %c0_22] : memref<4x1x32xf32, #tpu.memory_space<vmem>>, vector<1x1x32xf32>
    %59 = vector.shape_cast %58 : vector<1x1x32xf32> to vector<1x32xf32>
    %60 = arith.select %18, %32, %53 : vector<1x128xi1>, vector<1x128xf32>
    %cst_23 = arith.constant dense<0.000000e+00> : vector<1x128xf32>
    %61 = tpu.matmul %57, %55, %cst_23 {dimension_numbers = #tpu.dot_dimension_numbers<[1], [0], [0], [1], [0, 0, 1, 1], [], []>} : vector<1x32xf32>, vector<32x128xf32>, vector<1x128xf32> -> vector<1x128xf32>
    %62 = arith.addf %60, %61 : vector<1x128xf32>
    %63 = math.tanh %62 : vector<1x128xf32>
    %64 = arith.mulf %63, %26 : vector<1x128xf32>
    %65 = arith.addf %64, %29 : vector<1x128xf32>
    %66 = vector.extract_strided_slice %65 {offsets = [0, 0], sizes = [1, 32], strides = [1, 1]} : vector<1x128xf32> to vector<1x32xf32>
    %67 = vector.extract_strided_slice %65 {offsets = [0, 32], sizes = [1, 32], strides = [1, 1]} : vector<1x128xf32> to vector<1x32xf32>
    %68 = vector.extract_strided_slice %65 {offsets = [0, 64], sizes = [1, 32], strides = [1, 1]} : vector<1x128xf32> to vector<1x32xf32>
    %69 = vector.extract_strided_slice %65 {offsets = [0, 96], sizes = [1, 32], strides = [1, 1]} : vector<1x128xf32> to vector<1x32xf32>
    %70 = arith.mulf %67, %59 : vector<1x32xf32>
    %71 = arith.mulf %66, %68 : vector<1x32xf32>
    %72 = arith.addf %70, %71 : vector<1x32xf32>
    %73 = math.tanh %72 : vector<1x32xf32>
    %74 = arith.mulf %69, %73 : vector<1x32xf32>
    %75 = vector.extract_strided_slice %74 {offsets = [0, 0], sizes = [1, 16], strides = [1, 1]} : vector<1x32xf32> to vector<1x16xf32>
    %76 = vector.extract_strided_slice %74 {offsets = [0, 16], sizes = [1, 16], strides = [1, 1]} : vector<1x32xf32> to vector<1x16xf32>
    %77 = arith.select %18, %35, %50 : vector<1x128xi1>, vector<1x128xf32>
    %cst_24 = arith.constant dense<0.000000e+00> : vector<1x128xf32>
    %78 = tpu.matmul %74, %55, %cst_24 {dimension_numbers = #tpu.dot_dimension_numbers<[1], [0], [0], [1], [0, 0, 1, 1], [], []>} : vector<1x32xf32>, vector<32x128xf32>, vector<1x128xf32> -> vector<1x128xf32>
    %79 = arith.addf %77, %78 : vector<1x128xf32>
    %80 = math.tanh %79 : vector<1x128xf32>
    %81 = arith.mulf %80, %26 : vector<1x128xf32>
    %82 = arith.addf %81, %29 : vector<1x128xf32>
    %83 = vector.extract_strided_slice %82 {offsets = [0, 0], sizes = [1, 32], strides = [1, 1]} : vector<1x128xf32> to vector<1x32xf32>
    %84 = vector.extract_strided_slice %82 {offsets = [0, 32], sizes = [1, 32], strides = [1, 1]} : vector<1x128xf32> to vector<1x32xf32>
    %85 = vector.extract_strided_slice %82 {offsets = [0, 64], sizes = [1, 32], strides = [1, 1]} : vector<1x128xf32> to vector<1x32xf32>
    %86 = vector.extract_strided_slice %82 {offsets = [0, 96], sizes = [1, 32], strides = [1, 1]} : vector<1x128xf32> to vector<1x32xf32>
    %87 = arith.mulf %84, %72 : vector<1x32xf32>
    %88 = arith.mulf %83, %85 : vector<1x32xf32>
    %89 = arith.addf %87, %88 : vector<1x32xf32>
    %90 = math.tanh %89 : vector<1x32xf32>
    %91 = arith.mulf %86, %90 : vector<1x32xf32>
    %92 = vector.extract_strided_slice %91 {offsets = [0, 0], sizes = [1, 16], strides = [1, 1]} : vector<1x32xf32> to vector<1x16xf32>
    %93 = vector.extract_strided_slice %91 {offsets = [0, 16], sizes = [1, 16], strides = [1, 1]} : vector<1x32xf32> to vector<1x16xf32>
    %94 = arith.select %18, %38, %47 : vector<1x128xi1>, vector<1x128xf32>
    %cst_25 = arith.constant dense<0.000000e+00> : vector<1x128xf32>
    %95 = tpu.matmul %91, %55, %cst_25 {dimension_numbers = #tpu.dot_dimension_numbers<[1], [0], [0], [1], [0, 0, 1, 1], [], []>} : vector<1x32xf32>, vector<32x128xf32>, vector<1x128xf32> -> vector<1x128xf32>
    %96 = arith.addf %94, %95 : vector<1x128xf32>
    %97 = math.tanh %96 : vector<1x128xf32>
    %98 = arith.mulf %97, %26 : vector<1x128xf32>
    %99 = arith.addf %98, %29 : vector<1x128xf32>
    %100 = vector.extract_strided_slice %99 {offsets = [0, 0], sizes = [1, 32], strides = [1, 1]} : vector<1x128xf32> to vector<1x32xf32>
    %101 = vector.extract_strided_slice %99 {offsets = [0, 32], sizes = [1, 32], strides = [1, 1]} : vector<1x128xf32> to vector<1x32xf32>
    %102 = vector.extract_strided_slice %99 {offsets = [0, 64], sizes = [1, 32], strides = [1, 1]} : vector<1x128xf32> to vector<1x32xf32>
    %103 = vector.extract_strided_slice %99 {offsets = [0, 96], sizes = [1, 32], strides = [1, 1]} : vector<1x128xf32> to vector<1x32xf32>
    %104 = arith.mulf %101, %89 : vector<1x32xf32>
    %105 = arith.mulf %100, %102 : vector<1x32xf32>
    %106 = arith.addf %104, %105 : vector<1x32xf32>
    %107 = math.tanh %106 : vector<1x32xf32>
    %108 = arith.mulf %103, %107 : vector<1x32xf32>
    %109 = vector.extract_strided_slice %108 {offsets = [0, 0], sizes = [1, 16], strides = [1, 1]} : vector<1x32xf32> to vector<1x16xf32>
    %110 = vector.extract_strided_slice %108 {offsets = [0, 16], sizes = [1, 16], strides = [1, 1]} : vector<1x32xf32> to vector<1x16xf32>
    %111 = arith.select %18, %41, %44 : vector<1x128xi1>, vector<1x128xf32>
    %cst_26 = arith.constant dense<0.000000e+00> : vector<1x128xf32>
    %112 = tpu.matmul %108, %55, %cst_26 {dimension_numbers = #tpu.dot_dimension_numbers<[1], [0], [0], [1], [0, 0, 1, 1], [], []>} : vector<1x32xf32>, vector<32x128xf32>, vector<1x128xf32> -> vector<1x128xf32>
    %113 = arith.addf %111, %112 : vector<1x128xf32>
    %114 = math.tanh %113 : vector<1x128xf32>
    %115 = arith.mulf %114, %26 : vector<1x128xf32>
    %116 = arith.addf %115, %29 : vector<1x128xf32>
    %117 = vector.extract_strided_slice %116 {offsets = [0, 0], sizes = [1, 32], strides = [1, 1]} : vector<1x128xf32> to vector<1x32xf32>
    %118 = vector.extract_strided_slice %116 {offsets = [0, 32], sizes = [1, 32], strides = [1, 1]} : vector<1x128xf32> to vector<1x32xf32>
    %119 = vector.extract_strided_slice %116 {offsets = [0, 64], sizes = [1, 32], strides = [1, 1]} : vector<1x128xf32> to vector<1x32xf32>
    %120 = vector.extract_strided_slice %116 {offsets = [0, 96], sizes = [1, 32], strides = [1, 1]} : vector<1x128xf32> to vector<1x32xf32>
    %121 = arith.mulf %118, %106 : vector<1x32xf32>
    %122 = arith.mulf %117, %119 : vector<1x32xf32>
    %123 = arith.addf %121, %122 : vector<1x32xf32>
    %124 = math.tanh %123 : vector<1x32xf32>
    %125 = arith.mulf %120, %124 : vector<1x32xf32>
    %126 = vector.extract_strided_slice %125 {offsets = [0, 0], sizes = [1, 16], strides = [1, 1]} : vector<1x32xf32> to vector<1x16xf32>
    %127 = vector.extract_strided_slice %125 {offsets = [0, 16], sizes = [1, 16], strides = [1, 1]} : vector<1x32xf32> to vector<1x16xf32>
    %128 = arith.select %18, %44, %41 : vector<1x128xi1>, vector<1x128xf32>
    %cst_27 = arith.constant dense<0.000000e+00> : vector<1x128xf32>
    %129 = tpu.matmul %125, %55, %cst_27 {dimension_numbers = #tpu.dot_dimension_numbers<[1], [0], [0], [1], [0, 0, 1, 1], [], []>} : vector<1x32xf32>, vector<32x128xf32>, vector<1x128xf32> -> vector<1x128xf32>
    %130 = arith.addf %128, %129 : vector<1x128xf32>
    %131 = math.tanh %130 : vector<1x128xf32>
    %132 = arith.mulf %131, %26 : vector<1x128xf32>
    %133 = arith.addf %132, %29 : vector<1x128xf32>
    %134 = vector.extract_strided_slice %133 {offsets = [0, 0], sizes = [1, 32], strides = [1, 1]} : vector<1x128xf32> to vector<1x32xf32>
    %135 = vector.extract_strided_slice %133 {offsets = [0, 32], sizes = [1, 32], strides = [1, 1]} : vector<1x128xf32> to vector<1x32xf32>
    %136 = vector.extract_strided_slice %133 {offsets = [0, 64], sizes = [1, 32], strides = [1, 1]} : vector<1x128xf32> to vector<1x32xf32>
    %137 = vector.extract_strided_slice %133 {offsets = [0, 96], sizes = [1, 32], strides = [1, 1]} : vector<1x128xf32> to vector<1x32xf32>
    %138 = arith.mulf %135, %123 : vector<1x32xf32>
    %139 = arith.mulf %134, %136 : vector<1x32xf32>
    %140 = arith.addf %138, %139 : vector<1x32xf32>
    %141 = math.tanh %140 : vector<1x32xf32>
    %142 = arith.mulf %137, %141 : vector<1x32xf32>
    %143 = vector.extract_strided_slice %142 {offsets = [0, 0], sizes = [1, 16], strides = [1, 1]} : vector<1x32xf32> to vector<1x16xf32>
    %144 = vector.extract_strided_slice %142 {offsets = [0, 16], sizes = [1, 16], strides = [1, 1]} : vector<1x32xf32> to vector<1x16xf32>
    %145 = arith.select %18, %47, %38 : vector<1x128xi1>, vector<1x128xf32>
    %cst_28 = arith.constant dense<0.000000e+00> : vector<1x128xf32>
    %146 = tpu.matmul %142, %55, %cst_28 {dimension_numbers = #tpu.dot_dimension_numbers<[1], [0], [0], [1], [0, 0, 1, 1], [], []>} : vector<1x32xf32>, vector<32x128xf32>, vector<1x128xf32> -> vector<1x128xf32>
    %147 = arith.addf %145, %146 : vector<1x128xf32>
    %148 = math.tanh %147 : vector<1x128xf32>
    %149 = arith.mulf %148, %26 : vector<1x128xf32>
    %150 = arith.addf %149, %29 : vector<1x128xf32>
    %151 = vector.extract_strided_slice %150 {offsets = [0, 0], sizes = [1, 32], strides = [1, 1]} : vector<1x128xf32> to vector<1x32xf32>
    %152 = vector.extract_strided_slice %150 {offsets = [0, 32], sizes = [1, 32], strides = [1, 1]} : vector<1x128xf32> to vector<1x32xf32>
    %153 = vector.extract_strided_slice %150 {offsets = [0, 64], sizes = [1, 32], strides = [1, 1]} : vector<1x128xf32> to vector<1x32xf32>
    %154 = vector.extract_strided_slice %150 {offsets = [0, 96], sizes = [1, 32], strides = [1, 1]} : vector<1x128xf32> to vector<1x32xf32>
    %155 = arith.mulf %152, %140 : vector<1x32xf32>
    %156 = arith.mulf %151, %153 : vector<1x32xf32>
    %157 = arith.addf %155, %156 : vector<1x32xf32>
    %158 = math.tanh %157 : vector<1x32xf32>
    %159 = arith.mulf %154, %158 : vector<1x32xf32>
    %160 = vector.extract_strided_slice %159 {offsets = [0, 0], sizes = [1, 16], strides = [1, 1]} : vector<1x32xf32> to vector<1x16xf32>
    %161 = vector.extract_strided_slice %159 {offsets = [0, 16], sizes = [1, 16], strides = [1, 1]} : vector<1x32xf32> to vector<1x16xf32>
    %162 = arith.select %18, %50, %35 : vector<1x128xi1>, vector<1x128xf32>
    %cst_29 = arith.constant dense<0.000000e+00> : vector<1x128xf32>
    %163 = tpu.matmul %159, %55, %cst_29 {dimension_numbers = #tpu.dot_dimension_numbers<[1], [0], [0], [1], [0, 0, 1, 1], [], []>} : vector<1x32xf32>, vector<32x128xf32>, vector<1x128xf32> -> vector<1x128xf32>
    %164 = arith.addf %162, %163 : vector<1x128xf32>
    %165 = math.tanh %164 : vector<1x128xf32>
    %166 = arith.mulf %165, %26 : vector<1x128xf32>
    %167 = arith.addf %166, %29 : vector<1x128xf32>
    %168 = vector.extract_strided_slice %167 {offsets = [0, 0], sizes = [1, 32], strides = [1, 1]} : vector<1x128xf32> to vector<1x32xf32>
    %169 = vector.extract_strided_slice %167 {offsets = [0, 32], sizes = [1, 32], strides = [1, 1]} : vector<1x128xf32> to vector<1x32xf32>
    %170 = vector.extract_strided_slice %167 {offsets = [0, 64], sizes = [1, 32], strides = [1, 1]} : vector<1x128xf32> to vector<1x32xf32>
    %171 = vector.extract_strided_slice %167 {offsets = [0, 96], sizes = [1, 32], strides = [1, 1]} : vector<1x128xf32> to vector<1x32xf32>
    %172 = arith.mulf %169, %157 : vector<1x32xf32>
    %173 = arith.mulf %168, %170 : vector<1x32xf32>
    %174 = arith.addf %172, %173 : vector<1x32xf32>
    %175 = math.tanh %174 : vector<1x32xf32>
    %176 = arith.mulf %171, %175 : vector<1x32xf32>
    %177 = vector.extract_strided_slice %176 {offsets = [0, 0], sizes = [1, 16], strides = [1, 1]} : vector<1x32xf32> to vector<1x16xf32>
    %178 = vector.extract_strided_slice %176 {offsets = [0, 16], sizes = [1, 16], strides = [1, 1]} : vector<1x32xf32> to vector<1x16xf32>
    %179 = arith.select %18, %53, %32 : vector<1x128xi1>, vector<1x128xf32>
    %cst_30 = arith.constant dense<0.000000e+00> : vector<1x128xf32>
    %180 = tpu.matmul %176, %55, %cst_30 {dimension_numbers = #tpu.dot_dimension_numbers<[1], [0], [0], [1], [0, 0, 1, 1], [], []>} : vector<1x32xf32>, vector<32x128xf32>, vector<1x128xf32> -> vector<1x128xf32>
    %181 = arith.addf %179, %180 : vector<1x128xf32>
    %182 = math.tanh %181 : vector<1x128xf32>
    %183 = arith.mulf %182, %26 : vector<1x128xf32>
    %184 = arith.addf %183, %29 : vector<1x128xf32>
    %185 = vector.extract_strided_slice %184 {offsets = [0, 0], sizes = [1, 32], strides = [1, 1]} : vector<1x128xf32> to vector<1x32xf32>
    %186 = vector.extract_strided_slice %184 {offsets = [0, 32], sizes = [1, 32], strides = [1, 1]} : vector<1x128xf32> to vector<1x32xf32>
    %187 = vector.extract_strided_slice %184 {offsets = [0, 64], sizes = [1, 32], strides = [1, 1]} : vector<1x128xf32> to vector<1x32xf32>
    %188 = vector.extract_strided_slice %184 {offsets = [0, 96], sizes = [1, 32], strides = [1, 1]} : vector<1x128xf32> to vector<1x32xf32>
    %189 = arith.mulf %186, %174 : vector<1x32xf32>
    %190 = arith.mulf %185, %187 : vector<1x32xf32>
    %191 = arith.addf %189, %190 : vector<1x32xf32>
    %192 = math.tanh %191 : vector<1x32xf32>
    %193 = arith.mulf %188, %192 : vector<1x32xf32>
    %194 = vector.extract_strided_slice %193 {offsets = [0, 0], sizes = [1, 16], strides = [1, 1]} : vector<1x32xf32> to vector<1x16xf32>
    %195 = vector.extract_strided_slice %193 {offsets = [0, 16], sizes = [1, 16], strides = [1, 1]} : vector<1x32xf32> to vector<1x16xf32>
    %196 = tpu.concatenate %75, %92, %109, %126, %143, %160, %177, %194 in 0 : vector<1x16xf32>, vector<1x16xf32>, vector<1x16xf32>, vector<1x16xf32>, vector<1x16xf32>, vector<1x16xf32>, vector<1x16xf32>, vector<1x16xf32> -> vector<8x16xf32>
    %197 = tpu.concatenate %195, %178, %161, %144, %127, %110, %93, %76 in 0 : vector<1x16xf32>, vector<1x16xf32>, vector<1x16xf32>, vector<1x16xf32>, vector<1x16xf32>, vector<1x16xf32>, vector<1x16xf32>, vector<1x16xf32> -> vector<8x16xf32>
    %198 = tpu.concatenate %196, %197 in 1 : vector<8x16xf32>, vector<8x16xf32> -> vector<8x32xf32>
    %c0_31 = arith.constant 0 : index
    %c0_32 = arith.constant 0 : index
    %c0_33 = arith.constant 0 : index
    %199 = vector.load %arg2[%c0_31, %c0_32, %c0_33] : memref<3x32x128xf32, #tpu.memory_space<vmem>>, vector<1x32x128xf32>
    %200 = vector.shape_cast %199 : vector<1x32x128xf32> to vector<32x128xf32>
    %cst_34 = arith.constant dense<0.000000e+00> : vector<8x128xf32>
    %201 = tpu.matmul %198, %200, %cst_34 {dimension_numbers = #tpu.dot_dimension_numbers<[1], [0], [0], [1], [0, 0, 1, 1], [], []>} : vector<8x32xf32>, vector<32x128xf32>, vector<8x128xf32> -> vector<8x128xf32>
    %c0_35 = arith.constant 0 : index
    %c0_36 = arith.constant 0 : index
    %c0_37 = arith.constant 0 : index
    %202 = vector.load %arg4[%c0_35, %c0_36, %c0_37] : memref<3x1x128xf32, #tpu.memory_space<vmem>>, vector<1x1x128xf32>
    %203 = vector.shape_cast %202 : vector<1x1x128xf32> to vector<1x128xf32>
    %204 = vector.broadcast %203 : vector<1x128xf32> to vector<8x128xf32>
    %205 = arith.addf %201, %204 : vector<8x128xf32>
    %206 = vector.extract_strided_slice %205 {offsets = [0, 0], sizes = [1, 128], strides = [1, 1]} : vector<8x128xf32> to vector<1x128xf32>
    %207 = vector.extract_strided_slice %205 {offsets = [1, 0], sizes = [1, 128], strides = [1, 1]} : vector<8x128xf32> to vector<1x128xf32>
    %208 = vector.extract_strided_slice %205 {offsets = [2, 0], sizes = [1, 128], strides = [1, 1]} : vector<8x128xf32> to vector<1x128xf32>
    %209 = vector.extract_strided_slice %205 {offsets = [3, 0], sizes = [1, 128], strides = [1, 1]} : vector<8x128xf32> to vector<1x128xf32>
    %210 = vector.extract_strided_slice %205 {offsets = [4, 0], sizes = [1, 128], strides = [1, 1]} : vector<8x128xf32> to vector<1x128xf32>
    %211 = vector.extract_strided_slice %205 {offsets = [5, 0], sizes = [1, 128], strides = [1, 1]} : vector<8x128xf32> to vector<1x128xf32>
    %212 = vector.extract_strided_slice %205 {offsets = [6, 0], sizes = [1, 128], strides = [1, 1]} : vector<8x128xf32> to vector<1x128xf32>
    %213 = vector.extract_strided_slice %205 {offsets = [7, 0], sizes = [1, 128], strides = [1, 1]} : vector<8x128xf32> to vector<1x128xf32>
    %c1_38 = arith.constant 1 : index
    %c0_39 = arith.constant 0 : index
    %c0_40 = arith.constant 0 : index
    %214 = vector.load %arg3[%c1_38, %c0_39, %c0_40] : memref<4x32x128xf32, #tpu.memory_space<vmem>>, vector<1x32x128xf32>
    %215 = vector.shape_cast %214 : vector<1x32x128xf32> to vector<32x128xf32>
    %c1_41 = arith.constant 1 : index
    %c0_42 = arith.constant 0 : index
    %c0_43 = arith.constant 0 : index
    %216 = vector.load %arg5[%c1_41, %c0_42, %c0_43] : memref<4x1x32xf32, #tpu.memory_space<vmem>>, vector<1x1x32xf32>
    %217 = vector.shape_cast %216 : vector<1x1x32xf32> to vector<1x32xf32>
    %c1_44 = arith.constant 1 : index
    %c0_45 = arith.constant 0 : index
    %c0_46 = arith.constant 0 : index
    %218 = vector.load %arg6[%c1_44, %c0_45, %c0_46] : memref<4x1x32xf32, #tpu.memory_space<vmem>>, vector<1x1x32xf32>
    %219 = vector.shape_cast %218 : vector<1x1x32xf32> to vector<1x32xf32>
    %220 = arith.select %18, %206, %213 : vector<1x128xi1>, vector<1x128xf32>
    %cst_47 = arith.constant dense<0.000000e+00> : vector<1x128xf32>
    %221 = tpu.matmul %217, %215, %cst_47 {dimension_numbers = #tpu.dot_dimension_numbers<[1], [0], [0], [1], [0, 0, 1, 1], [], []>} : vector<1x32xf32>, vector<32x128xf32>, vector<1x128xf32> -> vector<1x128xf32>
    %222 = arith.addf %220, %221 : vector<1x128xf32>
    %223 = math.tanh %222 : vector<1x128xf32>
    %224 = arith.mulf %223, %26 : vector<1x128xf32>
    %225 = arith.addf %224, %29 : vector<1x128xf32>
    %226 = vector.extract_strided_slice %225 {offsets = [0, 0], sizes = [1, 32], strides = [1, 1]} : vector<1x128xf32> to vector<1x32xf32>
    %227 = vector.extract_strided_slice %225 {offsets = [0, 32], sizes = [1, 32], strides = [1, 1]} : vector<1x128xf32> to vector<1x32xf32>
    %228 = vector.extract_strided_slice %225 {offsets = [0, 64], sizes = [1, 32], strides = [1, 1]} : vector<1x128xf32> to vector<1x32xf32>
    %229 = vector.extract_strided_slice %225 {offsets = [0, 96], sizes = [1, 32], strides = [1, 1]} : vector<1x128xf32> to vector<1x32xf32>
    %230 = arith.mulf %227, %219 : vector<1x32xf32>
    %231 = arith.mulf %226, %228 : vector<1x32xf32>
    %232 = arith.addf %230, %231 : vector<1x32xf32>
    %233 = math.tanh %232 : vector<1x32xf32>
    %234 = arith.mulf %229, %233 : vector<1x32xf32>
    %235 = vector.extract_strided_slice %234 {offsets = [0, 0], sizes = [1, 16], strides = [1, 1]} : vector<1x32xf32> to vector<1x16xf32>
    %236 = vector.extract_strided_slice %234 {offsets = [0, 16], sizes = [1, 16], strides = [1, 1]} : vector<1x32xf32> to vector<1x16xf32>
    %237 = arith.select %18, %207, %212 : vector<1x128xi1>, vector<1x128xf32>
    %cst_48 = arith.constant dense<0.000000e+00> : vector<1x128xf32>
    %238 = tpu.matmul %234, %215, %cst_48 {dimension_numbers = #tpu.dot_dimension_numbers<[1], [0], [0], [1], [0, 0, 1, 1], [], []>} : vector<1x32xf32>, vector<32x128xf32>, vector<1x128xf32> -> vector<1x128xf32>
    %239 = arith.addf %237, %238 : vector<1x128xf32>
    %240 = math.tanh %239 : vector<1x128xf32>
    %241 = arith.mulf %240, %26 : vector<1x128xf32>
    %242 = arith.addf %241, %29 : vector<1x128xf32>
    %243 = vector.extract_strided_slice %242 {offsets = [0, 0], sizes = [1, 32], strides = [1, 1]} : vector<1x128xf32> to vector<1x32xf32>
    %244 = vector.extract_strided_slice %242 {offsets = [0, 32], sizes = [1, 32], strides = [1, 1]} : vector<1x128xf32> to vector<1x32xf32>
    %245 = vector.extract_strided_slice %242 {offsets = [0, 64], sizes = [1, 32], strides = [1, 1]} : vector<1x128xf32> to vector<1x32xf32>
    %246 = vector.extract_strided_slice %242 {offsets = [0, 96], sizes = [1, 32], strides = [1, 1]} : vector<1x128xf32> to vector<1x32xf32>
    %247 = arith.mulf %244, %232 : vector<1x32xf32>
    %248 = arith.mulf %243, %245 : vector<1x32xf32>
    %249 = arith.addf %247, %248 : vector<1x32xf32>
    %250 = math.tanh %249 : vector<1x32xf32>
    %251 = arith.mulf %246, %250 : vector<1x32xf32>
    %252 = vector.extract_strided_slice %251 {offsets = [0, 0], sizes = [1, 16], strides = [1, 1]} : vector<1x32xf32> to vector<1x16xf32>
    %253 = vector.extract_strided_slice %251 {offsets = [0, 16], sizes = [1, 16], strides = [1, 1]} : vector<1x32xf32> to vector<1x16xf32>
    %254 = arith.select %18, %208, %211 : vector<1x128xi1>, vector<1x128xf32>
    %cst_49 = arith.constant dense<0.000000e+00> : vector<1x128xf32>
    %255 = tpu.matmul %251, %215, %cst_49 {dimension_numbers = #tpu.dot_dimension_numbers<[1], [0], [0], [1], [0, 0, 1, 1], [], []>} : vector<1x32xf32>, vector<32x128xf32>, vector<1x128xf32> -> vector<1x128xf32>
    %256 = arith.addf %254, %255 : vector<1x128xf32>
    %257 = math.tanh %256 : vector<1x128xf32>
    %258 = arith.mulf %257, %26 : vector<1x128xf32>
    %259 = arith.addf %258, %29 : vector<1x128xf32>
    %260 = vector.extract_strided_slice %259 {offsets = [0, 0], sizes = [1, 32], strides = [1, 1]} : vector<1x128xf32> to vector<1x32xf32>
    %261 = vector.extract_strided_slice %259 {offsets = [0, 32], sizes = [1, 32], strides = [1, 1]} : vector<1x128xf32> to vector<1x32xf32>
    %262 = vector.extract_strided_slice %259 {offsets = [0, 64], sizes = [1, 32], strides = [1, 1]} : vector<1x128xf32> to vector<1x32xf32>
    %263 = vector.extract_strided_slice %259 {offsets = [0, 96], sizes = [1, 32], strides = [1, 1]} : vector<1x128xf32> to vector<1x32xf32>
    %264 = arith.mulf %261, %249 : vector<1x32xf32>
    %265 = arith.mulf %260, %262 : vector<1x32xf32>
    %266 = arith.addf %264, %265 : vector<1x32xf32>
    %267 = math.tanh %266 : vector<1x32xf32>
    %268 = arith.mulf %263, %267 : vector<1x32xf32>
    %269 = vector.extract_strided_slice %268 {offsets = [0, 0], sizes = [1, 16], strides = [1, 1]} : vector<1x32xf32> to vector<1x16xf32>
    %270 = vector.extract_strided_slice %268 {offsets = [0, 16], sizes = [1, 16], strides = [1, 1]} : vector<1x32xf32> to vector<1x16xf32>
    %271 = arith.select %18, %209, %210 : vector<1x128xi1>, vector<1x128xf32>
    %cst_50 = arith.constant dense<0.000000e+00> : vector<1x128xf32>
    %272 = tpu.matmul %268, %215, %cst_50 {dimension_numbers = #tpu.dot_dimension_numbers<[1], [0], [0], [1], [0, 0, 1, 1], [], []>} : vector<1x32xf32>, vector<32x128xf32>, vector<1x128xf32> -> vector<1x128xf32>
    %273 = arith.addf %271, %272 : vector<1x128xf32>
    %274 = math.tanh %273 : vector<1x128xf32>
    %275 = arith.mulf %274, %26 : vector<1x128xf32>
    %276 = arith.addf %275, %29 : vector<1x128xf32>
    %277 = vector.extract_strided_slice %276 {offsets = [0, 0], sizes = [1, 32], strides = [1, 1]} : vector<1x128xf32> to vector<1x32xf32>
    %278 = vector.extract_strided_slice %276 {offsets = [0, 32], sizes = [1, 32], strides = [1, 1]} : vector<1x128xf32> to vector<1x32xf32>
    %279 = vector.extract_strided_slice %276 {offsets = [0, 64], sizes = [1, 32], strides = [1, 1]} : vector<1x128xf32> to vector<1x32xf32>
    %280 = vector.extract_strided_slice %276 {offsets = [0, 96], sizes = [1, 32], strides = [1, 1]} : vector<1x128xf32> to vector<1x32xf32>
    %281 = arith.mulf %278, %266 : vector<1x32xf32>
    %282 = arith.mulf %277, %279 : vector<1x32xf32>
    %283 = arith.addf %281, %282 : vector<1x32xf32>
    %284 = math.tanh %283 : vector<1x32xf32>
    %285 = arith.mulf %280, %284 : vector<1x32xf32>
    %286 = vector.extract_strided_slice %285 {offsets = [0, 0], sizes = [1, 16], strides = [1, 1]} : vector<1x32xf32> to vector<1x16xf32>
    %287 = vector.extract_strided_slice %285 {offsets = [0, 16], sizes = [1, 16], strides = [1, 1]} : vector<1x32xf32> to vector<1x16xf32>
    %288 = arith.select %18, %210, %209 : vector<1x128xi1>, vector<1x128xf32>
    %cst_51 = arith.constant dense<0.000000e+00> : vector<1x128xf32>
    %289 = tpu.matmul %285, %215, %cst_51 {dimension_numbers = #tpu.dot_dimension_numbers<[1], [0], [0], [1], [0, 0, 1, 1], [], []>} : vector<1x32xf32>, vector<32x128xf32>, vector<1x128xf32> -> vector<1x128xf32>
    %290 = arith.addf %288, %289 : vector<1x128xf32>
    %291 = math.tanh %290 : vector<1x128xf32>
    %292 = arith.mulf %291, %26 : vector<1x128xf32>
    %293 = arith.addf %292, %29 : vector<1x128xf32>
    %294 = vector.extract_strided_slice %293 {offsets = [0, 0], sizes = [1, 32], strides = [1, 1]} : vector<1x128xf32> to vector<1x32xf32>
    %295 = vector.extract_strided_slice %293 {offsets = [0, 32], sizes = [1, 32], strides = [1, 1]} : vector<1x128xf32> to vector<1x32xf32>
    %296 = vector.extract_strided_slice %293 {offsets = [0, 64], sizes = [1, 32], strides = [1, 1]} : vector<1x128xf32> to vector<1x32xf32>
    %297 = vector.extract_strided_slice %293 {offsets = [0, 96], sizes = [1, 32], strides = [1, 1]} : vector<1x128xf32> to vector<1x32xf32>
    %298 = arith.mulf %295, %283 : vector<1x32xf32>
    %299 = arith.mulf %294, %296 : vector<1x32xf32>
    %300 = arith.addf %298, %299 : vector<1x32xf32>
    %301 = math.tanh %300 : vector<1x32xf32>
    %302 = arith.mulf %297, %301 : vector<1x32xf32>
    %303 = vector.extract_strided_slice %302 {offsets = [0, 0], sizes = [1, 16], strides = [1, 1]} : vector<1x32xf32> to vector<1x16xf32>
    %304 = vector.extract_strided_slice %302 {offsets = [0, 16], sizes = [1, 16], strides = [1, 1]} : vector<1x32xf32> to vector<1x16xf32>
    %305 = arith.select %18, %211, %208 : vector<1x128xi1>, vector<1x128xf32>
    %cst_52 = arith.constant dense<0.000000e+00> : vector<1x128xf32>
    %306 = tpu.matmul %302, %215, %cst_52 {dimension_numbers = #tpu.dot_dimension_numbers<[1], [0], [0], [1], [0, 0, 1, 1], [], []>} : vector<1x32xf32>, vector<32x128xf32>, vector<1x128xf32> -> vector<1x128xf32>
    %307 = arith.addf %305, %306 : vector<1x128xf32>
    %308 = math.tanh %307 : vector<1x128xf32>
    %309 = arith.mulf %308, %26 : vector<1x128xf32>
    %310 = arith.addf %309, %29 : vector<1x128xf32>
    %311 = vector.extract_strided_slice %310 {offsets = [0, 0], sizes = [1, 32], strides = [1, 1]} : vector<1x128xf32> to vector<1x32xf32>
    %312 = vector.extract_strided_slice %310 {offsets = [0, 32], sizes = [1, 32], strides = [1, 1]} : vector<1x128xf32> to vector<1x32xf32>
    %313 = vector.extract_strided_slice %310 {offsets = [0, 64], sizes = [1, 32], strides = [1, 1]} : vector<1x128xf32> to vector<1x32xf32>
    %314 = vector.extract_strided_slice %310 {offsets = [0, 96], sizes = [1, 32], strides = [1, 1]} : vector<1x128xf32> to vector<1x32xf32>
    %315 = arith.mulf %312, %300 : vector<1x32xf32>
    %316 = arith.mulf %311, %313 : vector<1x32xf32>
    %317 = arith.addf %315, %316 : vector<1x32xf32>
    %318 = math.tanh %317 : vector<1x32xf32>
    %319 = arith.mulf %314, %318 : vector<1x32xf32>
    %320 = vector.extract_strided_slice %319 {offsets = [0, 0], sizes = [1, 16], strides = [1, 1]} : vector<1x32xf32> to vector<1x16xf32>
    %321 = vector.extract_strided_slice %319 {offsets = [0, 16], sizes = [1, 16], strides = [1, 1]} : vector<1x32xf32> to vector<1x16xf32>
    %322 = arith.select %18, %212, %207 : vector<1x128xi1>, vector<1x128xf32>
    %cst_53 = arith.constant dense<0.000000e+00> : vector<1x128xf32>
    %323 = tpu.matmul %319, %215, %cst_53 {dimension_numbers = #tpu.dot_dimension_numbers<[1], [0], [0], [1], [0, 0, 1, 1], [], []>} : vector<1x32xf32>, vector<32x128xf32>, vector<1x128xf32> -> vector<1x128xf32>
    %324 = arith.addf %322, %323 : vector<1x128xf32>
    %325 = math.tanh %324 : vector<1x128xf32>
    %326 = arith.mulf %325, %26 : vector<1x128xf32>
    %327 = arith.addf %326, %29 : vector<1x128xf32>
    %328 = vector.extract_strided_slice %327 {offsets = [0, 0], sizes = [1, 32], strides = [1, 1]} : vector<1x128xf32> to vector<1x32xf32>
    %329 = vector.extract_strided_slice %327 {offsets = [0, 32], sizes = [1, 32], strides = [1, 1]} : vector<1x128xf32> to vector<1x32xf32>
    %330 = vector.extract_strided_slice %327 {offsets = [0, 64], sizes = [1, 32], strides = [1, 1]} : vector<1x128xf32> to vector<1x32xf32>
    %331 = vector.extract_strided_slice %327 {offsets = [0, 96], sizes = [1, 32], strides = [1, 1]} : vector<1x128xf32> to vector<1x32xf32>
    %332 = arith.mulf %329, %317 : vector<1x32xf32>
    %333 = arith.mulf %328, %330 : vector<1x32xf32>
    %334 = arith.addf %332, %333 : vector<1x32xf32>
    %335 = math.tanh %334 : vector<1x32xf32>
    %336 = arith.mulf %331, %335 : vector<1x32xf32>
    %337 = vector.extract_strided_slice %336 {offsets = [0, 0], sizes = [1, 16], strides = [1, 1]} : vector<1x32xf32> to vector<1x16xf32>
    %338 = vector.extract_strided_slice %336 {offsets = [0, 16], sizes = [1, 16], strides = [1, 1]} : vector<1x32xf32> to vector<1x16xf32>
    %339 = arith.select %18, %213, %206 : vector<1x128xi1>, vector<1x128xf32>
    %cst_54 = arith.constant dense<0.000000e+00> : vector<1x128xf32>
    %340 = tpu.matmul %336, %215, %cst_54 {dimension_numbers = #tpu.dot_dimension_numbers<[1], [0], [0], [1], [0, 0, 1, 1], [], []>} : vector<1x32xf32>, vector<32x128xf32>, vector<1x128xf32> -> vector<1x128xf32>
    %341 = arith.addf %339, %340 : vector<1x128xf32>
    %342 = math.tanh %341 : vector<1x128xf32>
    %343 = arith.mulf %342, %26 : vector<1x128xf32>
    %344 = arith.addf %343, %29 : vector<1x128xf32>
    %345 = vector.extract_strided_slice %344 {offsets = [0, 0], sizes = [1, 32], strides = [1, 1]} : vector<1x128xf32> to vector<1x32xf32>
    %346 = vector.extract_strided_slice %344 {offsets = [0, 32], sizes = [1, 32], strides = [1, 1]} : vector<1x128xf32> to vector<1x32xf32>
    %347 = vector.extract_strided_slice %344 {offsets = [0, 64], sizes = [1, 32], strides = [1, 1]} : vector<1x128xf32> to vector<1x32xf32>
    %348 = vector.extract_strided_slice %344 {offsets = [0, 96], sizes = [1, 32], strides = [1, 1]} : vector<1x128xf32> to vector<1x32xf32>
    %349 = arith.mulf %346, %334 : vector<1x32xf32>
    %350 = arith.mulf %345, %347 : vector<1x32xf32>
    %351 = arith.addf %349, %350 : vector<1x32xf32>
    %352 = math.tanh %351 : vector<1x32xf32>
    %353 = arith.mulf %348, %352 : vector<1x32xf32>
    %354 = vector.extract_strided_slice %353 {offsets = [0, 0], sizes = [1, 16], strides = [1, 1]} : vector<1x32xf32> to vector<1x16xf32>
    %355 = vector.extract_strided_slice %353 {offsets = [0, 16], sizes = [1, 16], strides = [1, 1]} : vector<1x32xf32> to vector<1x16xf32>
    %356 = tpu.concatenate %235, %252, %269, %286, %303, %320, %337, %354 in 0 : vector<1x16xf32>, vector<1x16xf32>, vector<1x16xf32>, vector<1x16xf32>, vector<1x16xf32>, vector<1x16xf32>, vector<1x16xf32>, vector<1x16xf32> -> vector<8x16xf32>
    %357 = tpu.concatenate %355, %338, %321, %304, %287, %270, %253, %236 in 0 : vector<1x16xf32>, vector<1x16xf32>, vector<1x16xf32>, vector<1x16xf32>, vector<1x16xf32>, vector<1x16xf32>, vector<1x16xf32>, vector<1x16xf32> -> vector<8x16xf32>
    %358 = tpu.concatenate %356, %357 in 1 : vector<8x16xf32>, vector<8x16xf32> -> vector<8x32xf32>
    %c1_55 = arith.constant 1 : index
    %c0_56 = arith.constant 0 : index
    %c0_57 = arith.constant 0 : index
    %359 = vector.load %arg2[%c1_55, %c0_56, %c0_57] : memref<3x32x128xf32, #tpu.memory_space<vmem>>, vector<1x32x128xf32>
    %360 = vector.shape_cast %359 : vector<1x32x128xf32> to vector<32x128xf32>
    %cst_58 = arith.constant dense<0.000000e+00> : vector<8x128xf32>
    %361 = tpu.matmul %358, %360, %cst_58 {dimension_numbers = #tpu.dot_dimension_numbers<[1], [0], [0], [1], [0, 0, 1, 1], [], []>} : vector<8x32xf32>, vector<32x128xf32>, vector<8x128xf32> -> vector<8x128xf32>
    %c1_59 = arith.constant 1 : index
    %c0_60 = arith.constant 0 : index
    %c0_61 = arith.constant 0 : index
    %362 = vector.load %arg4[%c1_59, %c0_60, %c0_61] : memref<3x1x128xf32, #tpu.memory_space<vmem>>, vector<1x1x128xf32>
    %363 = vector.shape_cast %362 : vector<1x1x128xf32> to vector<1x128xf32>
    %364 = vector.broadcast %363 : vector<1x128xf32> to vector<8x128xf32>
    %365 = arith.addf %361, %364 : vector<8x128xf32>
    %366 = vector.extract_strided_slice %365 {offsets = [0, 0], sizes = [1, 128], strides = [1, 1]} : vector<8x128xf32> to vector<1x128xf32>
    %367 = vector.extract_strided_slice %365 {offsets = [1, 0], sizes = [1, 128], strides = [1, 1]} : vector<8x128xf32> to vector<1x128xf32>
    %368 = vector.extract_strided_slice %365 {offsets = [2, 0], sizes = [1, 128], strides = [1, 1]} : vector<8x128xf32> to vector<1x128xf32>
    %369 = vector.extract_strided_slice %365 {offsets = [3, 0], sizes = [1, 128], strides = [1, 1]} : vector<8x128xf32> to vector<1x128xf32>
    %370 = vector.extract_strided_slice %365 {offsets = [4, 0], sizes = [1, 128], strides = [1, 1]} : vector<8x128xf32> to vector<1x128xf32>
    %371 = vector.extract_strided_slice %365 {offsets = [5, 0], sizes = [1, 128], strides = [1, 1]} : vector<8x128xf32> to vector<1x128xf32>
    %372 = vector.extract_strided_slice %365 {offsets = [6, 0], sizes = [1, 128], strides = [1, 1]} : vector<8x128xf32> to vector<1x128xf32>
    %373 = vector.extract_strided_slice %365 {offsets = [7, 0], sizes = [1, 128], strides = [1, 1]} : vector<8x128xf32> to vector<1x128xf32>
    %c2_62 = arith.constant 2 : index
    %c0_63 = arith.constant 0 : index
    %c0_64 = arith.constant 0 : index
    %374 = vector.load %arg3[%c2_62, %c0_63, %c0_64] : memref<4x32x128xf32, #tpu.memory_space<vmem>>, vector<1x32x128xf32>
    %375 = vector.shape_cast %374 : vector<1x32x128xf32> to vector<32x128xf32>
    %c2_65 = arith.constant 2 : index
    %c0_66 = arith.constant 0 : index
    %c0_67 = arith.constant 0 : index
    %376 = vector.load %arg5[%c2_65, %c0_66, %c0_67] : memref<4x1x32xf32, #tpu.memory_space<vmem>>, vector<1x1x32xf32>
    %377 = vector.shape_cast %376 : vector<1x1x32xf32> to vector<1x32xf32>
    %c2_68 = arith.constant 2 : index
    %c0_69 = arith.constant 0 : index
    %c0_70 = arith.constant 0 : index
    %378 = vector.load %arg6[%c2_68, %c0_69, %c0_70] : memref<4x1x32xf32, #tpu.memory_space<vmem>>, vector<1x1x32xf32>
    %379 = vector.shape_cast %378 : vector<1x1x32xf32> to vector<1x32xf32>
    %380 = arith.select %18, %366, %373 : vector<1x128xi1>, vector<1x128xf32>
    %cst_71 = arith.constant dense<0.000000e+00> : vector<1x128xf32>
    %381 = tpu.matmul %377, %375, %cst_71 {dimension_numbers = #tpu.dot_dimension_numbers<[1], [0], [0], [1], [0, 0, 1, 1], [], []>} : vector<1x32xf32>, vector<32x128xf32>, vector<1x128xf32> -> vector<1x128xf32>
    %382 = arith.addf %380, %381 : vector<1x128xf32>
    %383 = math.tanh %382 : vector<1x128xf32>
    %384 = arith.mulf %383, %26 : vector<1x128xf32>
    %385 = arith.addf %384, %29 : vector<1x128xf32>
    %386 = vector.extract_strided_slice %385 {offsets = [0, 0], sizes = [1, 32], strides = [1, 1]} : vector<1x128xf32> to vector<1x32xf32>
    %387 = vector.extract_strided_slice %385 {offsets = [0, 32], sizes = [1, 32], strides = [1, 1]} : vector<1x128xf32> to vector<1x32xf32>
    %388 = vector.extract_strided_slice %385 {offsets = [0, 64], sizes = [1, 32], strides = [1, 1]} : vector<1x128xf32> to vector<1x32xf32>
    %389 = vector.extract_strided_slice %385 {offsets = [0, 96], sizes = [1, 32], strides = [1, 1]} : vector<1x128xf32> to vector<1x32xf32>
    %390 = arith.mulf %387, %379 : vector<1x32xf32>
    %391 = arith.mulf %386, %388 : vector<1x32xf32>
    %392 = arith.addf %390, %391 : vector<1x32xf32>
    %393 = math.tanh %392 : vector<1x32xf32>
    %394 = arith.mulf %389, %393 : vector<1x32xf32>
    %395 = vector.extract_strided_slice %394 {offsets = [0, 0], sizes = [1, 16], strides = [1, 1]} : vector<1x32xf32> to vector<1x16xf32>
    %396 = vector.extract_strided_slice %394 {offsets = [0, 16], sizes = [1, 16], strides = [1, 1]} : vector<1x32xf32> to vector<1x16xf32>
    %397 = arith.select %18, %367, %372 : vector<1x128xi1>, vector<1x128xf32>
    %cst_72 = arith.constant dense<0.000000e+00> : vector<1x128xf32>
    %398 = tpu.matmul %394, %375, %cst_72 {dimension_numbers = #tpu.dot_dimension_numbers<[1], [0], [0], [1], [0, 0, 1, 1], [], []>} : vector<1x32xf32>, vector<32x128xf32>, vector<1x128xf32> -> vector<1x128xf32>
    %399 = arith.addf %397, %398 : vector<1x128xf32>
    %400 = math.tanh %399 : vector<1x128xf32>
    %401 = arith.mulf %400, %26 : vector<1x128xf32>
    %402 = arith.addf %401, %29 : vector<1x128xf32>
    %403 = vector.extract_strided_slice %402 {offsets = [0, 0], sizes = [1, 32], strides = [1, 1]} : vector<1x128xf32> to vector<1x32xf32>
    %404 = vector.extract_strided_slice %402 {offsets = [0, 32], sizes = [1, 32], strides = [1, 1]} : vector<1x128xf32> to vector<1x32xf32>
    %405 = vector.extract_strided_slice %402 {offsets = [0, 64], sizes = [1, 32], strides = [1, 1]} : vector<1x128xf32> to vector<1x32xf32>
    %406 = vector.extract_strided_slice %402 {offsets = [0, 96], sizes = [1, 32], strides = [1, 1]} : vector<1x128xf32> to vector<1x32xf32>
    %407 = arith.mulf %404, %392 : vector<1x32xf32>
    %408 = arith.mulf %403, %405 : vector<1x32xf32>
    %409 = arith.addf %407, %408 : vector<1x32xf32>
    %410 = math.tanh %409 : vector<1x32xf32>
    %411 = arith.mulf %406, %410 : vector<1x32xf32>
    %412 = vector.extract_strided_slice %411 {offsets = [0, 0], sizes = [1, 16], strides = [1, 1]} : vector<1x32xf32> to vector<1x16xf32>
    %413 = vector.extract_strided_slice %411 {offsets = [0, 16], sizes = [1, 16], strides = [1, 1]} : vector<1x32xf32> to vector<1x16xf32>
    %414 = arith.select %18, %368, %371 : vector<1x128xi1>, vector<1x128xf32>
    %cst_73 = arith.constant dense<0.000000e+00> : vector<1x128xf32>
    %415 = tpu.matmul %411, %375, %cst_73 {dimension_numbers = #tpu.dot_dimension_numbers<[1], [0], [0], [1], [0, 0, 1, 1], [], []>} : vector<1x32xf32>, vector<32x128xf32>, vector<1x128xf32> -> vector<1x128xf32>
    %416 = arith.addf %414, %415 : vector<1x128xf32>
    %417 = math.tanh %416 : vector<1x128xf32>
    %418 = arith.mulf %417, %26 : vector<1x128xf32>
    %419 = arith.addf %418, %29 : vector<1x128xf32>
    %420 = vector.extract_strided_slice %419 {offsets = [0, 0], sizes = [1, 32], strides = [1, 1]} : vector<1x128xf32> to vector<1x32xf32>
    %421 = vector.extract_strided_slice %419 {offsets = [0, 32], sizes = [1, 32], strides = [1, 1]} : vector<1x128xf32> to vector<1x32xf32>
    %422 = vector.extract_strided_slice %419 {offsets = [0, 64], sizes = [1, 32], strides = [1, 1]} : vector<1x128xf32> to vector<1x32xf32>
    %423 = vector.extract_strided_slice %419 {offsets = [0, 96], sizes = [1, 32], strides = [1, 1]} : vector<1x128xf32> to vector<1x32xf32>
    %424 = arith.mulf %421, %409 : vector<1x32xf32>
    %425 = arith.mulf %420, %422 : vector<1x32xf32>
    %426 = arith.addf %424, %425 : vector<1x32xf32>
    %427 = math.tanh %426 : vector<1x32xf32>
    %428 = arith.mulf %423, %427 : vector<1x32xf32>
    %429 = vector.extract_strided_slice %428 {offsets = [0, 0], sizes = [1, 16], strides = [1, 1]} : vector<1x32xf32> to vector<1x16xf32>
    %430 = vector.extract_strided_slice %428 {offsets = [0, 16], sizes = [1, 16], strides = [1, 1]} : vector<1x32xf32> to vector<1x16xf32>
    %431 = arith.select %18, %369, %370 : vector<1x128xi1>, vector<1x128xf32>
    %cst_74 = arith.constant dense<0.000000e+00> : vector<1x128xf32>
    %432 = tpu.matmul %428, %375, %cst_74 {dimension_numbers = #tpu.dot_dimension_numbers<[1], [0], [0], [1], [0, 0, 1, 1], [], []>} : vector<1x32xf32>, vector<32x128xf32>, vector<1x128xf32> -> vector<1x128xf32>
    %433 = arith.addf %431, %432 : vector<1x128xf32>
    %434 = math.tanh %433 : vector<1x128xf32>
    %435 = arith.mulf %434, %26 : vector<1x128xf32>
    %436 = arith.addf %435, %29 : vector<1x128xf32>
    %437 = vector.extract_strided_slice %436 {offsets = [0, 0], sizes = [1, 32], strides = [1, 1]} : vector<1x128xf32> to vector<1x32xf32>
    %438 = vector.extract_strided_slice %436 {offsets = [0, 32], sizes = [1, 32], strides = [1, 1]} : vector<1x128xf32> to vector<1x32xf32>
    %439 = vector.extract_strided_slice %436 {offsets = [0, 64], sizes = [1, 32], strides = [1, 1]} : vector<1x128xf32> to vector<1x32xf32>
    %440 = vector.extract_strided_slice %436 {offsets = [0, 96], sizes = [1, 32], strides = [1, 1]} : vector<1x128xf32> to vector<1x32xf32>
    %441 = arith.mulf %438, %426 : vector<1x32xf32>
    %442 = arith.mulf %437, %439 : vector<1x32xf32>
    %443 = arith.addf %441, %442 : vector<1x32xf32>
    %444 = math.tanh %443 : vector<1x32xf32>
    %445 = arith.mulf %440, %444 : vector<1x32xf32>
    %446 = vector.extract_strided_slice %445 {offsets = [0, 0], sizes = [1, 16], strides = [1, 1]} : vector<1x32xf32> to vector<1x16xf32>
    %447 = vector.extract_strided_slice %445 {offsets = [0, 16], sizes = [1, 16], strides = [1, 1]} : vector<1x32xf32> to vector<1x16xf32>
    %448 = arith.select %18, %370, %369 : vector<1x128xi1>, vector<1x128xf32>
    %cst_75 = arith.constant dense<0.000000e+00> : vector<1x128xf32>
    %449 = tpu.matmul %445, %375, %cst_75 {dimension_numbers = #tpu.dot_dimension_numbers<[1], [0], [0], [1], [0, 0, 1, 1], [], []>} : vector<1x32xf32>, vector<32x128xf32>, vector<1x128xf32> -> vector<1x128xf32>
    %450 = arith.addf %448, %449 : vector<1x128xf32>
    %451 = math.tanh %450 : vector<1x128xf32>
    %452 = arith.mulf %451, %26 : vector<1x128xf32>
    %453 = arith.addf %452, %29 : vector<1x128xf32>
    %454 = vector.extract_strided_slice %453 {offsets = [0, 0], sizes = [1, 32], strides = [1, 1]} : vector<1x128xf32> to vector<1x32xf32>
    %455 = vector.extract_strided_slice %453 {offsets = [0, 32], sizes = [1, 32], strides = [1, 1]} : vector<1x128xf32> to vector<1x32xf32>
    %456 = vector.extract_strided_slice %453 {offsets = [0, 64], sizes = [1, 32], strides = [1, 1]} : vector<1x128xf32> to vector<1x32xf32>
    %457 = vector.extract_strided_slice %453 {offsets = [0, 96], sizes = [1, 32], strides = [1, 1]} : vector<1x128xf32> to vector<1x32xf32>
    %458 = arith.mulf %455, %443 : vector<1x32xf32>
    %459 = arith.mulf %454, %456 : vector<1x32xf32>
    %460 = arith.addf %458, %459 : vector<1x32xf32>
    %461 = math.tanh %460 : vector<1x32xf32>
    %462 = arith.mulf %457, %461 : vector<1x32xf32>
    %463 = vector.extract_strided_slice %462 {offsets = [0, 0], sizes = [1, 16], strides = [1, 1]} : vector<1x32xf32> to vector<1x16xf32>
    %464 = vector.extract_strided_slice %462 {offsets = [0, 16], sizes = [1, 16], strides = [1, 1]} : vector<1x32xf32> to vector<1x16xf32>
    %465 = arith.select %18, %371, %368 : vector<1x128xi1>, vector<1x128xf32>
    %cst_76 = arith.constant dense<0.000000e+00> : vector<1x128xf32>
    %466 = tpu.matmul %462, %375, %cst_76 {dimension_numbers = #tpu.dot_dimension_numbers<[1], [0], [0], [1], [0, 0, 1, 1], [], []>} : vector<1x32xf32>, vector<32x128xf32>, vector<1x128xf32> -> vector<1x128xf32>
    %467 = arith.addf %465, %466 : vector<1x128xf32>
    %468 = math.tanh %467 : vector<1x128xf32>
    %469 = arith.mulf %468, %26 : vector<1x128xf32>
    %470 = arith.addf %469, %29 : vector<1x128xf32>
    %471 = vector.extract_strided_slice %470 {offsets = [0, 0], sizes = [1, 32], strides = [1, 1]} : vector<1x128xf32> to vector<1x32xf32>
    %472 = vector.extract_strided_slice %470 {offsets = [0, 32], sizes = [1, 32], strides = [1, 1]} : vector<1x128xf32> to vector<1x32xf32>
    %473 = vector.extract_strided_slice %470 {offsets = [0, 64], sizes = [1, 32], strides = [1, 1]} : vector<1x128xf32> to vector<1x32xf32>
    %474 = vector.extract_strided_slice %470 {offsets = [0, 96], sizes = [1, 32], strides = [1, 1]} : vector<1x128xf32> to vector<1x32xf32>
    %475 = arith.mulf %472, %460 : vector<1x32xf32>
    %476 = arith.mulf %471, %473 : vector<1x32xf32>
    %477 = arith.addf %475, %476 : vector<1x32xf32>
    %478 = math.tanh %477 : vector<1x32xf32>
    %479 = arith.mulf %474, %478 : vector<1x32xf32>
    %480 = vector.extract_strided_slice %479 {offsets = [0, 0], sizes = [1, 16], strides = [1, 1]} : vector<1x32xf32> to vector<1x16xf32>
    %481 = vector.extract_strided_slice %479 {offsets = [0, 16], sizes = [1, 16], strides = [1, 1]} : vector<1x32xf32> to vector<1x16xf32>
    %482 = arith.select %18, %372, %367 : vector<1x128xi1>, vector<1x128xf32>
    %cst_77 = arith.constant dense<0.000000e+00> : vector<1x128xf32>
    %483 = tpu.matmul %479, %375, %cst_77 {dimension_numbers = #tpu.dot_dimension_numbers<[1], [0], [0], [1], [0, 0, 1, 1], [], []>} : vector<1x32xf32>, vector<32x128xf32>, vector<1x128xf32> -> vector<1x128xf32>
    %484 = arith.addf %482, %483 : vector<1x128xf32>
    %485 = math.tanh %484 : vector<1x128xf32>
    %486 = arith.mulf %485, %26 : vector<1x128xf32>
    %487 = arith.addf %486, %29 : vector<1x128xf32>
    %488 = vector.extract_strided_slice %487 {offsets = [0, 0], sizes = [1, 32], strides = [1, 1]} : vector<1x128xf32> to vector<1x32xf32>
    %489 = vector.extract_strided_slice %487 {offsets = [0, 32], sizes = [1, 32], strides = [1, 1]} : vector<1x128xf32> to vector<1x32xf32>
    %490 = vector.extract_strided_slice %487 {offsets = [0, 64], sizes = [1, 32], strides = [1, 1]} : vector<1x128xf32> to vector<1x32xf32>
    %491 = vector.extract_strided_slice %487 {offsets = [0, 96], sizes = [1, 32], strides = [1, 1]} : vector<1x128xf32> to vector<1x32xf32>
    %492 = arith.mulf %489, %477 : vector<1x32xf32>
    %493 = arith.mulf %488, %490 : vector<1x32xf32>
    %494 = arith.addf %492, %493 : vector<1x32xf32>
    %495 = math.tanh %494 : vector<1x32xf32>
    %496 = arith.mulf %491, %495 : vector<1x32xf32>
    %497 = vector.extract_strided_slice %496 {offsets = [0, 0], sizes = [1, 16], strides = [1, 1]} : vector<1x32xf32> to vector<1x16xf32>
    %498 = vector.extract_strided_slice %496 {offsets = [0, 16], sizes = [1, 16], strides = [1, 1]} : vector<1x32xf32> to vector<1x16xf32>
    %499 = arith.select %18, %373, %366 : vector<1x128xi1>, vector<1x128xf32>
    %cst_78 = arith.constant dense<0.000000e+00> : vector<1x128xf32>
    %500 = tpu.matmul %496, %375, %cst_78 {dimension_numbers = #tpu.dot_dimension_numbers<[1], [0], [0], [1], [0, 0, 1, 1], [], []>} : vector<1x32xf32>, vector<32x128xf32>, vector<1x128xf32> -> vector<1x128xf32>
    %501 = arith.addf %499, %500 : vector<1x128xf32>
    %502 = math.tanh %501 : vector<1x128xf32>
    %503 = arith.mulf %502, %26 : vector<1x128xf32>
    %504 = arith.addf %503, %29 : vector<1x128xf32>
    %505 = vector.extract_strided_slice %504 {offsets = [0, 0], sizes = [1, 32], strides = [1, 1]} : vector<1x128xf32> to vector<1x32xf32>
    %506 = vector.extract_strided_slice %504 {offsets = [0, 32], sizes = [1, 32], strides = [1, 1]} : vector<1x128xf32> to vector<1x32xf32>
    %507 = vector.extract_strided_slice %504 {offsets = [0, 64], sizes = [1, 32], strides = [1, 1]} : vector<1x128xf32> to vector<1x32xf32>
    %508 = vector.extract_strided_slice %504 {offsets = [0, 96], sizes = [1, 32], strides = [1, 1]} : vector<1x128xf32> to vector<1x32xf32>
    %509 = arith.mulf %506, %494 : vector<1x32xf32>
    %510 = arith.mulf %505, %507 : vector<1x32xf32>
    %511 = arith.addf %509, %510 : vector<1x32xf32>
    %512 = math.tanh %511 : vector<1x32xf32>
    %513 = arith.mulf %508, %512 : vector<1x32xf32>
    %514 = vector.extract_strided_slice %513 {offsets = [0, 0], sizes = [1, 16], strides = [1, 1]} : vector<1x32xf32> to vector<1x16xf32>
    %515 = vector.extract_strided_slice %513 {offsets = [0, 16], sizes = [1, 16], strides = [1, 1]} : vector<1x32xf32> to vector<1x16xf32>
    %516 = tpu.concatenate %395, %412, %429, %446, %463, %480, %497, %514 in 0 : vector<1x16xf32>, vector<1x16xf32>, vector<1x16xf32>, vector<1x16xf32>, vector<1x16xf32>, vector<1x16xf32>, vector<1x16xf32>, vector<1x16xf32> -> vector<8x16xf32>
    %517 = tpu.concatenate %515, %498, %481, %464, %447, %430, %413, %396 in 0 : vector<1x16xf32>, vector<1x16xf32>, vector<1x16xf32>, vector<1x16xf32>, vector<1x16xf32>, vector<1x16xf32>, vector<1x16xf32>, vector<1x16xf32> -> vector<8x16xf32>
    %518 = tpu.concatenate %516, %517 in 1 : vector<8x16xf32>, vector<8x16xf32> -> vector<8x32xf32>
    %c2_79 = arith.constant 2 : index
    %c0_80 = arith.constant 0 : index
    %c0_81 = arith.constant 0 : index
    %519 = vector.load %arg2[%c2_79, %c0_80, %c0_81] : memref<3x32x128xf32, #tpu.memory_space<vmem>>, vector<1x32x128xf32>
    %520 = vector.shape_cast %519 : vector<1x32x128xf32> to vector<32x128xf32>
    %cst_82 = arith.constant dense<0.000000e+00> : vector<8x128xf32>
    %521 = tpu.matmul %518, %520, %cst_82 {dimension_numbers = #tpu.dot_dimension_numbers<[1], [0], [0], [1], [0, 0, 1, 1], [], []>} : vector<8x32xf32>, vector<32x128xf32>, vector<8x128xf32> -> vector<8x128xf32>
    %c2_83 = arith.constant 2 : index
    %c0_84 = arith.constant 0 : index
    %c0_85 = arith.constant 0 : index
    %522 = vector.load %arg4[%c2_83, %c0_84, %c0_85] : memref<3x1x128xf32, #tpu.memory_space<vmem>>, vector<1x1x128xf32>
    %523 = vector.shape_cast %522 : vector<1x1x128xf32> to vector<1x128xf32>
    %524 = vector.broadcast %523 : vector<1x128xf32> to vector<8x128xf32>
    %525 = arith.addf %521, %524 : vector<8x128xf32>
    %526 = vector.extract_strided_slice %525 {offsets = [0, 0], sizes = [1, 128], strides = [1, 1]} : vector<8x128xf32> to vector<1x128xf32>
    %527 = vector.extract_strided_slice %525 {offsets = [1, 0], sizes = [1, 128], strides = [1, 1]} : vector<8x128xf32> to vector<1x128xf32>
    %528 = vector.extract_strided_slice %525 {offsets = [2, 0], sizes = [1, 128], strides = [1, 1]} : vector<8x128xf32> to vector<1x128xf32>
    %529 = vector.extract_strided_slice %525 {offsets = [3, 0], sizes = [1, 128], strides = [1, 1]} : vector<8x128xf32> to vector<1x128xf32>
    %530 = vector.extract_strided_slice %525 {offsets = [4, 0], sizes = [1, 128], strides = [1, 1]} : vector<8x128xf32> to vector<1x128xf32>
    %531 = vector.extract_strided_slice %525 {offsets = [5, 0], sizes = [1, 128], strides = [1, 1]} : vector<8x128xf32> to vector<1x128xf32>
    %532 = vector.extract_strided_slice %525 {offsets = [6, 0], sizes = [1, 128], strides = [1, 1]} : vector<8x128xf32> to vector<1x128xf32>
    %533 = vector.extract_strided_slice %525 {offsets = [7, 0], sizes = [1, 128], strides = [1, 1]} : vector<8x128xf32> to vector<1x128xf32>
    %c3_86 = arith.constant 3 : index
    %c0_87 = arith.constant 0 : index
    %c0_88 = arith.constant 0 : index
    %534 = vector.load %arg3[%c3_86, %c0_87, %c0_88] : memref<4x32x128xf32, #tpu.memory_space<vmem>>, vector<1x32x128xf32>
    %535 = vector.shape_cast %534 : vector<1x32x128xf32> to vector<32x128xf32>
    %c3_89 = arith.constant 3 : index
    %c0_90 = arith.constant 0 : index
    %c0_91 = arith.constant 0 : index
    %536 = vector.load %arg5[%c3_89, %c0_90, %c0_91] : memref<4x1x32xf32, #tpu.memory_space<vmem>>, vector<1x1x32xf32>
    %537 = vector.shape_cast %536 : vector<1x1x32xf32> to vector<1x32xf32>
    %c3_92 = arith.constant 3 : index
    %c0_93 = arith.constant 0 : index
    %c0_94 = arith.constant 0 : index
    %538 = vector.load %arg6[%c3_92, %c0_93, %c0_94] : memref<4x1x32xf32, #tpu.memory_space<vmem>>, vector<1x1x32xf32>
    %539 = vector.shape_cast %538 : vector<1x1x32xf32> to vector<1x32xf32>
    %540 = arith.select %18, %526, %533 : vector<1x128xi1>, vector<1x128xf32>
    %cst_95 = arith.constant dense<0.000000e+00> : vector<1x128xf32>
    %541 = tpu.matmul %537, %535, %cst_95 {dimension_numbers = #tpu.dot_dimension_numbers<[1], [0], [0], [1], [0, 0, 1, 1], [], []>} : vector<1x32xf32>, vector<32x128xf32>, vector<1x128xf32> -> vector<1x128xf32>
    %542 = arith.addf %540, %541 : vector<1x128xf32>
    %543 = math.tanh %542 : vector<1x128xf32>
    %544 = arith.mulf %543, %26 : vector<1x128xf32>
    %545 = arith.addf %544, %29 : vector<1x128xf32>
    %546 = vector.extract_strided_slice %545 {offsets = [0, 0], sizes = [1, 32], strides = [1, 1]} : vector<1x128xf32> to vector<1x32xf32>
    %547 = vector.extract_strided_slice %545 {offsets = [0, 32], sizes = [1, 32], strides = [1, 1]} : vector<1x128xf32> to vector<1x32xf32>
    %548 = vector.extract_strided_slice %545 {offsets = [0, 64], sizes = [1, 32], strides = [1, 1]} : vector<1x128xf32> to vector<1x32xf32>
    %549 = vector.extract_strided_slice %545 {offsets = [0, 96], sizes = [1, 32], strides = [1, 1]} : vector<1x128xf32> to vector<1x32xf32>
    %550 = arith.mulf %547, %539 : vector<1x32xf32>
    %551 = arith.mulf %546, %548 : vector<1x32xf32>
    %552 = arith.addf %550, %551 : vector<1x32xf32>
    %553 = math.tanh %552 : vector<1x32xf32>
    %554 = arith.mulf %549, %553 : vector<1x32xf32>
    %555 = vector.extract_strided_slice %554 {offsets = [0, 0], sizes = [1, 16], strides = [1, 1]} : vector<1x32xf32> to vector<1x16xf32>
    %556 = vector.extract_strided_slice %554 {offsets = [0, 16], sizes = [1, 16], strides = [1, 1]} : vector<1x32xf32> to vector<1x16xf32>
    %557 = arith.select %18, %527, %532 : vector<1x128xi1>, vector<1x128xf32>
    %cst_96 = arith.constant dense<0.000000e+00> : vector<1x128xf32>
    %558 = tpu.matmul %554, %535, %cst_96 {dimension_numbers = #tpu.dot_dimension_numbers<[1], [0], [0], [1], [0, 0, 1, 1], [], []>} : vector<1x32xf32>, vector<32x128xf32>, vector<1x128xf32> -> vector<1x128xf32>
    %559 = arith.addf %557, %558 : vector<1x128xf32>
    %560 = math.tanh %559 : vector<1x128xf32>
    %561 = arith.mulf %560, %26 : vector<1x128xf32>
    %562 = arith.addf %561, %29 : vector<1x128xf32>
    %563 = vector.extract_strided_slice %562 {offsets = [0, 0], sizes = [1, 32], strides = [1, 1]} : vector<1x128xf32> to vector<1x32xf32>
    %564 = vector.extract_strided_slice %562 {offsets = [0, 32], sizes = [1, 32], strides = [1, 1]} : vector<1x128xf32> to vector<1x32xf32>
    %565 = vector.extract_strided_slice %562 {offsets = [0, 64], sizes = [1, 32], strides = [1, 1]} : vector<1x128xf32> to vector<1x32xf32>
    %566 = vector.extract_strided_slice %562 {offsets = [0, 96], sizes = [1, 32], strides = [1, 1]} : vector<1x128xf32> to vector<1x32xf32>
    %567 = arith.mulf %564, %552 : vector<1x32xf32>
    %568 = arith.mulf %563, %565 : vector<1x32xf32>
    %569 = arith.addf %567, %568 : vector<1x32xf32>
    %570 = math.tanh %569 : vector<1x32xf32>
    %571 = arith.mulf %566, %570 : vector<1x32xf32>
    %572 = vector.extract_strided_slice %571 {offsets = [0, 0], sizes = [1, 16], strides = [1, 1]} : vector<1x32xf32> to vector<1x16xf32>
    %573 = vector.extract_strided_slice %571 {offsets = [0, 16], sizes = [1, 16], strides = [1, 1]} : vector<1x32xf32> to vector<1x16xf32>
    %574 = arith.select %18, %528, %531 : vector<1x128xi1>, vector<1x128xf32>
    %cst_97 = arith.constant dense<0.000000e+00> : vector<1x128xf32>
    %575 = tpu.matmul %571, %535, %cst_97 {dimension_numbers = #tpu.dot_dimension_numbers<[1], [0], [0], [1], [0, 0, 1, 1], [], []>} : vector<1x32xf32>, vector<32x128xf32>, vector<1x128xf32> -> vector<1x128xf32>
    %576 = arith.addf %574, %575 : vector<1x128xf32>
    %577 = math.tanh %576 : vector<1x128xf32>
    %578 = arith.mulf %577, %26 : vector<1x128xf32>
    %579 = arith.addf %578, %29 : vector<1x128xf32>
    %580 = vector.extract_strided_slice %579 {offsets = [0, 0], sizes = [1, 32], strides = [1, 1]} : vector<1x128xf32> to vector<1x32xf32>
    %581 = vector.extract_strided_slice %579 {offsets = [0, 32], sizes = [1, 32], strides = [1, 1]} : vector<1x128xf32> to vector<1x32xf32>
    %582 = vector.extract_strided_slice %579 {offsets = [0, 64], sizes = [1, 32], strides = [1, 1]} : vector<1x128xf32> to vector<1x32xf32>
    %583 = vector.extract_strided_slice %579 {offsets = [0, 96], sizes = [1, 32], strides = [1, 1]} : vector<1x128xf32> to vector<1x32xf32>
    %584 = arith.mulf %581, %569 : vector<1x32xf32>
    %585 = arith.mulf %580, %582 : vector<1x32xf32>
    %586 = arith.addf %584, %585 : vector<1x32xf32>
    %587 = math.tanh %586 : vector<1x32xf32>
    %588 = arith.mulf %583, %587 : vector<1x32xf32>
    %589 = vector.extract_strided_slice %588 {offsets = [0, 0], sizes = [1, 16], strides = [1, 1]} : vector<1x32xf32> to vector<1x16xf32>
    %590 = vector.extract_strided_slice %588 {offsets = [0, 16], sizes = [1, 16], strides = [1, 1]} : vector<1x32xf32> to vector<1x16xf32>
    %591 = arith.select %18, %529, %530 : vector<1x128xi1>, vector<1x128xf32>
    %cst_98 = arith.constant dense<0.000000e+00> : vector<1x128xf32>
    %592 = tpu.matmul %588, %535, %cst_98 {dimension_numbers = #tpu.dot_dimension_numbers<[1], [0], [0], [1], [0, 0, 1, 1], [], []>} : vector<1x32xf32>, vector<32x128xf32>, vector<1x128xf32> -> vector<1x128xf32>
    %593 = arith.addf %591, %592 : vector<1x128xf32>
    %594 = math.tanh %593 : vector<1x128xf32>
    %595 = arith.mulf %594, %26 : vector<1x128xf32>
    %596 = arith.addf %595, %29 : vector<1x128xf32>
    %597 = vector.extract_strided_slice %596 {offsets = [0, 0], sizes = [1, 32], strides = [1, 1]} : vector<1x128xf32> to vector<1x32xf32>
    %598 = vector.extract_strided_slice %596 {offsets = [0, 32], sizes = [1, 32], strides = [1, 1]} : vector<1x128xf32> to vector<1x32xf32>
    %599 = vector.extract_strided_slice %596 {offsets = [0, 64], sizes = [1, 32], strides = [1, 1]} : vector<1x128xf32> to vector<1x32xf32>
    %600 = vector.extract_strided_slice %596 {offsets = [0, 96], sizes = [1, 32], strides = [1, 1]} : vector<1x128xf32> to vector<1x32xf32>
    %601 = arith.mulf %598, %586 : vector<1x32xf32>
    %602 = arith.mulf %597, %599 : vector<1x32xf32>
    %603 = arith.addf %601, %602 : vector<1x32xf32>
    %604 = math.tanh %603 : vector<1x32xf32>
    %605 = arith.mulf %600, %604 : vector<1x32xf32>
    %606 = vector.extract_strided_slice %605 {offsets = [0, 0], sizes = [1, 16], strides = [1, 1]} : vector<1x32xf32> to vector<1x16xf32>
    %607 = vector.extract_strided_slice %605 {offsets = [0, 16], sizes = [1, 16], strides = [1, 1]} : vector<1x32xf32> to vector<1x16xf32>
    %608 = arith.select %18, %530, %529 : vector<1x128xi1>, vector<1x128xf32>
    %cst_99 = arith.constant dense<0.000000e+00> : vector<1x128xf32>
    %609 = tpu.matmul %605, %535, %cst_99 {dimension_numbers = #tpu.dot_dimension_numbers<[1], [0], [0], [1], [0, 0, 1, 1], [], []>} : vector<1x32xf32>, vector<32x128xf32>, vector<1x128xf32> -> vector<1x128xf32>
    %610 = arith.addf %608, %609 : vector<1x128xf32>
    %611 = math.tanh %610 : vector<1x128xf32>
    %612 = arith.mulf %611, %26 : vector<1x128xf32>
    %613 = arith.addf %612, %29 : vector<1x128xf32>
    %614 = vector.extract_strided_slice %613 {offsets = [0, 0], sizes = [1, 32], strides = [1, 1]} : vector<1x128xf32> to vector<1x32xf32>
    %615 = vector.extract_strided_slice %613 {offsets = [0, 32], sizes = [1, 32], strides = [1, 1]} : vector<1x128xf32> to vector<1x32xf32>
    %616 = vector.extract_strided_slice %613 {offsets = [0, 64], sizes = [1, 32], strides = [1, 1]} : vector<1x128xf32> to vector<1x32xf32>
    %617 = vector.extract_strided_slice %613 {offsets = [0, 96], sizes = [1, 32], strides = [1, 1]} : vector<1x128xf32> to vector<1x32xf32>
    %618 = arith.mulf %615, %603 : vector<1x32xf32>
    %619 = arith.mulf %614, %616 : vector<1x32xf32>
    %620 = arith.addf %618, %619 : vector<1x32xf32>
    %621 = math.tanh %620 : vector<1x32xf32>
    %622 = arith.mulf %617, %621 : vector<1x32xf32>
    %623 = vector.extract_strided_slice %622 {offsets = [0, 0], sizes = [1, 16], strides = [1, 1]} : vector<1x32xf32> to vector<1x16xf32>
    %624 = vector.extract_strided_slice %622 {offsets = [0, 16], sizes = [1, 16], strides = [1, 1]} : vector<1x32xf32> to vector<1x16xf32>
    %625 = arith.select %18, %531, %528 : vector<1x128xi1>, vector<1x128xf32>
    %cst_100 = arith.constant dense<0.000000e+00> : vector<1x128xf32>
    %626 = tpu.matmul %622, %535, %cst_100 {dimension_numbers = #tpu.dot_dimension_numbers<[1], [0], [0], [1], [0, 0, 1, 1], [], []>} : vector<1x32xf32>, vector<32x128xf32>, vector<1x128xf32> -> vector<1x128xf32>
    %627 = arith.addf %625, %626 : vector<1x128xf32>
    %628 = math.tanh %627 : vector<1x128xf32>
    %629 = arith.mulf %628, %26 : vector<1x128xf32>
    %630 = arith.addf %629, %29 : vector<1x128xf32>
    %631 = vector.extract_strided_slice %630 {offsets = [0, 0], sizes = [1, 32], strides = [1, 1]} : vector<1x128xf32> to vector<1x32xf32>
    %632 = vector.extract_strided_slice %630 {offsets = [0, 32], sizes = [1, 32], strides = [1, 1]} : vector<1x128xf32> to vector<1x32xf32>
    %633 = vector.extract_strided_slice %630 {offsets = [0, 64], sizes = [1, 32], strides = [1, 1]} : vector<1x128xf32> to vector<1x32xf32>
    %634 = vector.extract_strided_slice %630 {offsets = [0, 96], sizes = [1, 32], strides = [1, 1]} : vector<1x128xf32> to vector<1x32xf32>
    %635 = arith.mulf %632, %620 : vector<1x32xf32>
    %636 = arith.mulf %631, %633 : vector<1x32xf32>
    %637 = arith.addf %635, %636 : vector<1x32xf32>
    %638 = math.tanh %637 : vector<1x32xf32>
    %639 = arith.mulf %634, %638 : vector<1x32xf32>
    %640 = vector.extract_strided_slice %639 {offsets = [0, 0], sizes = [1, 16], strides = [1, 1]} : vector<1x32xf32> to vector<1x16xf32>
    %641 = vector.extract_strided_slice %639 {offsets = [0, 16], sizes = [1, 16], strides = [1, 1]} : vector<1x32xf32> to vector<1x16xf32>
    %642 = arith.select %18, %532, %527 : vector<1x128xi1>, vector<1x128xf32>
    %cst_101 = arith.constant dense<0.000000e+00> : vector<1x128xf32>
    %643 = tpu.matmul %639, %535, %cst_101 {dimension_numbers = #tpu.dot_dimension_numbers<[1], [0], [0], [1], [0, 0, 1, 1], [], []>} : vector<1x32xf32>, vector<32x128xf32>, vector<1x128xf32> -> vector<1x128xf32>
    %644 = arith.addf %642, %643 : vector<1x128xf32>
    %645 = math.tanh %644 : vector<1x128xf32>
    %646 = arith.mulf %645, %26 : vector<1x128xf32>
    %647 = arith.addf %646, %29 : vector<1x128xf32>
    %648 = vector.extract_strided_slice %647 {offsets = [0, 0], sizes = [1, 32], strides = [1, 1]} : vector<1x128xf32> to vector<1x32xf32>
    %649 = vector.extract_strided_slice %647 {offsets = [0, 32], sizes = [1, 32], strides = [1, 1]} : vector<1x128xf32> to vector<1x32xf32>
    %650 = vector.extract_strided_slice %647 {offsets = [0, 64], sizes = [1, 32], strides = [1, 1]} : vector<1x128xf32> to vector<1x32xf32>
    %651 = vector.extract_strided_slice %647 {offsets = [0, 96], sizes = [1, 32], strides = [1, 1]} : vector<1x128xf32> to vector<1x32xf32>
    %652 = arith.mulf %649, %637 : vector<1x32xf32>
    %653 = arith.mulf %648, %650 : vector<1x32xf32>
    %654 = arith.addf %652, %653 : vector<1x32xf32>
    %655 = math.tanh %654 : vector<1x32xf32>
    %656 = arith.mulf %651, %655 : vector<1x32xf32>
    %657 = vector.extract_strided_slice %656 {offsets = [0, 0], sizes = [1, 16], strides = [1, 1]} : vector<1x32xf32> to vector<1x16xf32>
    %658 = vector.extract_strided_slice %656 {offsets = [0, 16], sizes = [1, 16], strides = [1, 1]} : vector<1x32xf32> to vector<1x16xf32>
    %659 = arith.select %18, %533, %526 : vector<1x128xi1>, vector<1x128xf32>
    %cst_102 = arith.constant dense<0.000000e+00> : vector<1x128xf32>
    %660 = tpu.matmul %656, %535, %cst_102 {dimension_numbers = #tpu.dot_dimension_numbers<[1], [0], [0], [1], [0, 0, 1, 1], [], []>} : vector<1x32xf32>, vector<32x128xf32>, vector<1x128xf32> -> vector<1x128xf32>
    %661 = arith.addf %659, %660 : vector<1x128xf32>
    %662 = math.tanh %661 : vector<1x128xf32>
    %663 = arith.mulf %662, %26 : vector<1x128xf32>
    %664 = arith.addf %663, %29 : vector<1x128xf32>
    %665 = vector.extract_strided_slice %664 {offsets = [0, 0], sizes = [1, 32], strides = [1, 1]} : vector<1x128xf32> to vector<1x32xf32>
    %666 = vector.extract_strided_slice %664 {offsets = [0, 32], sizes = [1, 32], strides = [1, 1]} : vector<1x128xf32> to vector<1x32xf32>
    %667 = vector.extract_strided_slice %664 {offsets = [0, 64], sizes = [1, 32], strides = [1, 1]} : vector<1x128xf32> to vector<1x32xf32>
    %668 = vector.extract_strided_slice %664 {offsets = [0, 96], sizes = [1, 32], strides = [1, 1]} : vector<1x128xf32> to vector<1x32xf32>
    %669 = arith.mulf %666, %654 : vector<1x32xf32>
    %670 = arith.mulf %665, %667 : vector<1x32xf32>
    %671 = arith.addf %669, %670 : vector<1x32xf32>
    %672 = math.tanh %671 : vector<1x32xf32>
    %673 = arith.mulf %668, %672 : vector<1x32xf32>
    %674 = vector.extract_strided_slice %673 {offsets = [0, 0], sizes = [1, 16], strides = [1, 1]} : vector<1x32xf32> to vector<1x16xf32>
    %675 = vector.extract_strided_slice %673 {offsets = [0, 16], sizes = [1, 16], strides = [1, 1]} : vector<1x32xf32> to vector<1x16xf32>
    %676 = tpu.concatenate %555, %572, %589, %606, %623, %640, %657, %674 in 0 : vector<1x16xf32>, vector<1x16xf32>, vector<1x16xf32>, vector<1x16xf32>, vector<1x16xf32>, vector<1x16xf32>, vector<1x16xf32>, vector<1x16xf32> -> vector<8x16xf32>
    %677 = tpu.concatenate %675, %658, %641, %624, %607, %590, %573, %556 in 0 : vector<1x16xf32>, vector<1x16xf32>, vector<1x16xf32>, vector<1x16xf32>, vector<1x16xf32>, vector<1x16xf32>, vector<1x16xf32>, vector<1x16xf32> -> vector<8x16xf32>
    %678 = tpu.concatenate %676, %677 in 1 : vector<8x16xf32>, vector<8x16xf32> -> vector<8x32xf32>
    %c0_103 = arith.constant 0 : index
    %c0_104 = arith.constant 0 : index
    %679 = vector.load %arg7[%c0_103, %c0_104] : memref<32x5xf32, #tpu.memory_space<vmem>>, vector<32x5xf32>
    %cst_105 = arith.constant dense<0.000000e+00> : vector<8x5xf32>
    %680 = tpu.matmul %678, %679, %cst_105 {dimension_numbers = #tpu.dot_dimension_numbers<[1], [0], [0], [1], [0, 0, 1, 1], [], []>} : vector<8x32xf32>, vector<32x5xf32>, vector<8x5xf32> -> vector<8x5xf32>
    %c0_106 = arith.constant 0 : index
    %c0_107 = arith.constant 0 : index
    %681 = vector.load %arg8[%c0_106, %c0_107] : memref<1x5xf32, #tpu.memory_space<vmem>>, vector<1x5xf32>
    %682 = vector.broadcast %681 : vector<1x5xf32> to vector<8x5xf32>
    %683 = arith.addf %680, %682 : vector<8x5xf32>
    %684 = tpu.iota {dimensions = array<i32: 1>} : vector<1x5xi32>
    %685 = arith.sitofp %684 : vector<1x5xi32> to vector<1x5xf32>
    %686 = tpu.iota {dimensions = array<i32: 0>} : vector<5x5xi32>
    %687 = arith.sitofp %686 : vector<5x5xi32> to vector<5x5xf32>
    %688 = tpu.iota {dimensions = array<i32: 0>} : vector<5x5xi32>
    %689 = tpu.iota {dimensions = array<i32: 1>} : vector<5x5xi32>
    %690 = arith.cmpi eq, %688, %689 : vector<5x5xi32>
    %c0_108 = arith.constant 0 : index
    %c0_109 = arith.constant 0 : index
    %691 = vector.load %arg9[%c0_108, %c0_109] : memref<5x5xf32, #tpu.memory_space<vmem>>, vector<5x5xf32>
    %c3_i32 = arith.constant 3 : i32
    %692 = vector.broadcast %c3_i32 : i32 to vector<1x5xi32>
    %693 = arith.cmpi eq, %684, %692 : vector<1x5xi32>
    %cst_110 = arith.constant 0.000000e+00 : f32
    %cst_111 = arith.constant -1.000000e+04 : f32
    %694 = vector.broadcast %cst_110 : f32 to vector<1x5xf32>
    %695 = vector.broadcast %cst_111 : f32 to vector<1x5xf32>
    %696 = arith.select %693, %694, %695 : vector<1x5xi1>, vector<1x5xf32>
    %cst_112 = arith.constant 0xFF800000 : f32
    %697 = vector.shape_cast %696 : vector<1x5xf32> to vector<1x5xf32>
    %698 = vector.broadcast %697 : vector<1x5xf32> to vector<5x5xf32>
    %699 = vector.broadcast %cst_112 : f32 to vector<5x5xf32>
    %700 = arith.select %690, %698, %699 : vector<5x5xi1>, vector<5x5xf32>
    %cst_113 = arith.constant dense<0xFF800000> : vector<5xf32>
    %701 = vector.multi_reduction <maximumf>, %700, %cst_113 [1] : vector<5x5xf32> to vector<5xf32>
    %702 = vector.shape_cast %701 : vector<5xf32> to vector<5x1xf32>
    %703 = vector.broadcast %702 : vector<5x1xf32> to vector<5x5xf32>
    %704 = arith.addf %703, %691 : vector<5x5xf32>
    %cst_114 = arith.constant dense<0xFF800000> : vector<5xf32>
    %705 = vector.multi_reduction <maximumf>, %704, %cst_114 [0] : vector<5x5xf32> to vector<5xf32>
    %706 = vector.shape_cast %705 : vector<5xf32> to vector<1x5xf32>
    %707 = vector.extract_strided_slice %683 {offsets = [0, 0], sizes = [1, 5], strides = [1, 1]} : vector<8x5xf32> to vector<1x5xf32>
    %708 = arith.addf %706, %707 : vector<1x5xf32>
    %cst_115 = arith.constant 0xFF800000 : f32
    %709 = vector.shape_cast %708 : vector<1x5xf32> to vector<1x5xf32>
    %710 = vector.broadcast %709 : vector<1x5xf32> to vector<5x5xf32>
    %711 = vector.broadcast %cst_115 : f32 to vector<5x5xf32>
    %712 = arith.select %690, %710, %711 : vector<5x5xi1>, vector<5x5xf32>
    %cst_116 = arith.constant dense<0xFF800000> : vector<5xf32>
    %713 = vector.multi_reduction <maximumf>, %712, %cst_116 [1] : vector<5x5xf32> to vector<5xf32>
    %714 = vector.shape_cast %713 : vector<5xf32> to vector<5x1xf32>
    %715 = vector.broadcast %714 : vector<5x1xf32> to vector<5x5xf32>
    %716 = arith.addf %715, %691 : vector<5x5xf32>
    %cst_117 = arith.constant dense<0xFF800000> : vector<5xf32>
    %717 = vector.multi_reduction <maximumf>, %716, %cst_117 [0] : vector<5x5xf32> to vector<5xf32>
    %718 = vector.shape_cast %717 : vector<5xf32> to vector<1x5xf32>
    %719 = vector.broadcast %718 : vector<1x5xf32> to vector<5x5xf32>
    %720 = arith.cmpf oeq, %716, %719 : vector<5x5xf32>
    %cst_118 = arith.constant 5.000000e+00 : f32
    %721 = vector.broadcast %cst_118 : f32 to vector<5x5xf32>
    %722 = arith.select %720, %687, %721 : vector<5x5xi1>, vector<5x5xf32>
    %cst_119 = arith.constant dense<0x7F800000> : vector<5xf32>
    %723 = vector.multi_reduction <minimumf>, %722, %cst_119 [0] : vector<5x5xf32> to vector<5xf32>
    %724 = vector.shape_cast %723 : vector<5xf32> to vector<1x5xf32>
    %725 = vector.extract_strided_slice %683 {offsets = [1, 0], sizes = [1, 5], strides = [1, 1]} : vector<8x5xf32> to vector<1x5xf32>
    %726 = arith.addf %718, %725 : vector<1x5xf32>
    %cst_120 = arith.constant 0xFF800000 : f32
    %727 = vector.shape_cast %726 : vector<1x5xf32> to vector<1x5xf32>
    %728 = vector.broadcast %727 : vector<1x5xf32> to vector<5x5xf32>
    %729 = vector.broadcast %cst_120 : f32 to vector<5x5xf32>
    %730 = arith.select %690, %728, %729 : vector<5x5xi1>, vector<5x5xf32>
    %cst_121 = arith.constant dense<0xFF800000> : vector<5xf32>
    %731 = vector.multi_reduction <maximumf>, %730, %cst_121 [1] : vector<5x5xf32> to vector<5xf32>
    %732 = vector.shape_cast %731 : vector<5xf32> to vector<5x1xf32>
    %733 = vector.broadcast %732 : vector<5x1xf32> to vector<5x5xf32>
    %734 = arith.addf %733, %691 : vector<5x5xf32>
    %cst_122 = arith.constant dense<0xFF800000> : vector<5xf32>
    %735 = vector.multi_reduction <maximumf>, %734, %cst_122 [0] : vector<5x5xf32> to vector<5xf32>
    %736 = vector.shape_cast %735 : vector<5xf32> to vector<1x5xf32>
    %737 = vector.broadcast %736 : vector<1x5xf32> to vector<5x5xf32>
    %738 = arith.cmpf oeq, %734, %737 : vector<5x5xf32>
    %cst_123 = arith.constant 5.000000e+00 : f32
    %739 = vector.broadcast %cst_123 : f32 to vector<5x5xf32>
    %740 = arith.select %738, %687, %739 : vector<5x5xi1>, vector<5x5xf32>
    %cst_124 = arith.constant dense<0x7F800000> : vector<5xf32>
    %741 = vector.multi_reduction <minimumf>, %740, %cst_124 [0] : vector<5x5xf32> to vector<5xf32>
    %742 = vector.shape_cast %741 : vector<5xf32> to vector<1x5xf32>
    %743 = vector.extract_strided_slice %683 {offsets = [2, 0], sizes = [1, 5], strides = [1, 1]} : vector<8x5xf32> to vector<1x5xf32>
    %744 = arith.addf %736, %743 : vector<1x5xf32>
    %cst_125 = arith.constant 0xFF800000 : f32
    %745 = vector.shape_cast %744 : vector<1x5xf32> to vector<1x5xf32>
    %746 = vector.broadcast %745 : vector<1x5xf32> to vector<5x5xf32>
    %747 = vector.broadcast %cst_125 : f32 to vector<5x5xf32>
    %748 = arith.select %690, %746, %747 : vector<5x5xi1>, vector<5x5xf32>
    %cst_126 = arith.constant dense<0xFF800000> : vector<5xf32>
    %749 = vector.multi_reduction <maximumf>, %748, %cst_126 [1] : vector<5x5xf32> to vector<5xf32>
    %750 = vector.shape_cast %749 : vector<5xf32> to vector<5x1xf32>
    %751 = vector.broadcast %750 : vector<5x1xf32> to vector<5x5xf32>
    %752 = arith.addf %751, %691 : vector<5x5xf32>
    %cst_127 = arith.constant dense<0xFF800000> : vector<5xf32>
    %753 = vector.multi_reduction <maximumf>, %752, %cst_127 [0] : vector<5x5xf32> to vector<5xf32>
    %754 = vector.shape_cast %753 : vector<5xf32> to vector<1x5xf32>
    %755 = vector.broadcast %754 : vector<1x5xf32> to vector<5x5xf32>
    %756 = arith.cmpf oeq, %752, %755 : vector<5x5xf32>
    %cst_128 = arith.constant 5.000000e+00 : f32
    %757 = vector.broadcast %cst_128 : f32 to vector<5x5xf32>
    %758 = arith.select %756, %687, %757 : vector<5x5xi1>, vector<5x5xf32>
    %cst_129 = arith.constant dense<0x7F800000> : vector<5xf32>
    %759 = vector.multi_reduction <minimumf>, %758, %cst_129 [0] : vector<5x5xf32> to vector<5xf32>
    %760 = vector.shape_cast %759 : vector<5xf32> to vector<1x5xf32>
    %761 = vector.extract_strided_slice %683 {offsets = [3, 0], sizes = [1, 5], strides = [1, 1]} : vector<8x5xf32> to vector<1x5xf32>
    %762 = arith.addf %754, %761 : vector<1x5xf32>
    %cst_130 = arith.constant 0xFF800000 : f32
    %763 = vector.shape_cast %762 : vector<1x5xf32> to vector<1x5xf32>
    %764 = vector.broadcast %763 : vector<1x5xf32> to vector<5x5xf32>
    %765 = vector.broadcast %cst_130 : f32 to vector<5x5xf32>
    %766 = arith.select %690, %764, %765 : vector<5x5xi1>, vector<5x5xf32>
    %cst_131 = arith.constant dense<0xFF800000> : vector<5xf32>
    %767 = vector.multi_reduction <maximumf>, %766, %cst_131 [1] : vector<5x5xf32> to vector<5xf32>
    %768 = vector.shape_cast %767 : vector<5xf32> to vector<5x1xf32>
    %769 = vector.broadcast %768 : vector<5x1xf32> to vector<5x5xf32>
    %770 = arith.addf %769, %691 : vector<5x5xf32>
    %cst_132 = arith.constant dense<0xFF800000> : vector<5xf32>
    %771 = vector.multi_reduction <maximumf>, %770, %cst_132 [0] : vector<5x5xf32> to vector<5xf32>
    %772 = vector.shape_cast %771 : vector<5xf32> to vector<1x5xf32>
    %773 = vector.broadcast %772 : vector<1x5xf32> to vector<5x5xf32>
    %774 = arith.cmpf oeq, %770, %773 : vector<5x5xf32>
    %cst_133 = arith.constant 5.000000e+00 : f32
    %775 = vector.broadcast %cst_133 : f32 to vector<5x5xf32>
    %776 = arith.select %774, %687, %775 : vector<5x5xi1>, vector<5x5xf32>
    %cst_134 = arith.constant dense<0x7F800000> : vector<5xf32>
    %777 = vector.multi_reduction <minimumf>, %776, %cst_134 [0] : vector<5x5xf32> to vector<5xf32>
    %778 = vector.shape_cast %777 : vector<5xf32> to vector<1x5xf32>
    %779 = vector.extract_strided_slice %683 {offsets = [4, 0], sizes = [1, 5], strides = [1, 1]} : vector<8x5xf32> to vector<1x5xf32>
    %780 = arith.addf %772, %779 : vector<1x5xf32>
    %cst_135 = arith.constant 0xFF800000 : f32
    %781 = vector.shape_cast %780 : vector<1x5xf32> to vector<1x5xf32>
    %782 = vector.broadcast %781 : vector<1x5xf32> to vector<5x5xf32>
    %783 = vector.broadcast %cst_135 : f32 to vector<5x5xf32>
    %784 = arith.select %690, %782, %783 : vector<5x5xi1>, vector<5x5xf32>
    %cst_136 = arith.constant dense<0xFF800000> : vector<5xf32>
    %785 = vector.multi_reduction <maximumf>, %784, %cst_136 [1] : vector<5x5xf32> to vector<5xf32>
    %786 = vector.shape_cast %785 : vector<5xf32> to vector<5x1xf32>
    %787 = vector.broadcast %786 : vector<5x1xf32> to vector<5x5xf32>
    %788 = arith.addf %787, %691 : vector<5x5xf32>
    %cst_137 = arith.constant dense<0xFF800000> : vector<5xf32>
    %789 = vector.multi_reduction <maximumf>, %788, %cst_137 [0] : vector<5x5xf32> to vector<5xf32>
    %790 = vector.shape_cast %789 : vector<5xf32> to vector<1x5xf32>
    %791 = vector.broadcast %790 : vector<1x5xf32> to vector<5x5xf32>
    %792 = arith.cmpf oeq, %788, %791 : vector<5x5xf32>
    %cst_138 = arith.constant 5.000000e+00 : f32
    %793 = vector.broadcast %cst_138 : f32 to vector<5x5xf32>
    %794 = arith.select %792, %687, %793 : vector<5x5xi1>, vector<5x5xf32>
    %cst_139 = arith.constant dense<0x7F800000> : vector<5xf32>
    %795 = vector.multi_reduction <minimumf>, %794, %cst_139 [0] : vector<5x5xf32> to vector<5xf32>
    %796 = vector.shape_cast %795 : vector<5xf32> to vector<1x5xf32>
    %797 = vector.extract_strided_slice %683 {offsets = [5, 0], sizes = [1, 5], strides = [1, 1]} : vector<8x5xf32> to vector<1x5xf32>
    %798 = arith.addf %790, %797 : vector<1x5xf32>
    %cst_140 = arith.constant 0xFF800000 : f32
    %799 = vector.shape_cast %798 : vector<1x5xf32> to vector<1x5xf32>
    %800 = vector.broadcast %799 : vector<1x5xf32> to vector<5x5xf32>
    %801 = vector.broadcast %cst_140 : f32 to vector<5x5xf32>
    %802 = arith.select %690, %800, %801 : vector<5x5xi1>, vector<5x5xf32>
    %cst_141 = arith.constant dense<0xFF800000> : vector<5xf32>
    %803 = vector.multi_reduction <maximumf>, %802, %cst_141 [1] : vector<5x5xf32> to vector<5xf32>
    %804 = vector.shape_cast %803 : vector<5xf32> to vector<5x1xf32>
    %805 = vector.broadcast %804 : vector<5x1xf32> to vector<5x5xf32>
    %806 = arith.addf %805, %691 : vector<5x5xf32>
    %cst_142 = arith.constant dense<0xFF800000> : vector<5xf32>
    %807 = vector.multi_reduction <maximumf>, %806, %cst_142 [0] : vector<5x5xf32> to vector<5xf32>
    %808 = vector.shape_cast %807 : vector<5xf32> to vector<1x5xf32>
    %809 = vector.broadcast %808 : vector<1x5xf32> to vector<5x5xf32>
    %810 = arith.cmpf oeq, %806, %809 : vector<5x5xf32>
    %cst_143 = arith.constant 5.000000e+00 : f32
    %811 = vector.broadcast %cst_143 : f32 to vector<5x5xf32>
    %812 = arith.select %810, %687, %811 : vector<5x5xi1>, vector<5x5xf32>
    %cst_144 = arith.constant dense<0x7F800000> : vector<5xf32>
    %813 = vector.multi_reduction <minimumf>, %812, %cst_144 [0] : vector<5x5xf32> to vector<5xf32>
    %814 = vector.shape_cast %813 : vector<5xf32> to vector<1x5xf32>
    %815 = vector.extract_strided_slice %683 {offsets = [6, 0], sizes = [1, 5], strides = [1, 1]} : vector<8x5xf32> to vector<1x5xf32>
    %816 = arith.addf %808, %815 : vector<1x5xf32>
    %cst_145 = arith.constant 0xFF800000 : f32
    %817 = vector.shape_cast %816 : vector<1x5xf32> to vector<1x5xf32>
    %818 = vector.broadcast %817 : vector<1x5xf32> to vector<5x5xf32>
    %819 = vector.broadcast %cst_145 : f32 to vector<5x5xf32>
    %820 = arith.select %690, %818, %819 : vector<5x5xi1>, vector<5x5xf32>
    %cst_146 = arith.constant dense<0xFF800000> : vector<5xf32>
    %821 = vector.multi_reduction <maximumf>, %820, %cst_146 [1] : vector<5x5xf32> to vector<5xf32>
    %822 = vector.shape_cast %821 : vector<5xf32> to vector<5x1xf32>
    %823 = vector.broadcast %822 : vector<5x1xf32> to vector<5x5xf32>
    %824 = arith.addf %823, %691 : vector<5x5xf32>
    %cst_147 = arith.constant dense<0xFF800000> : vector<5xf32>
    %825 = vector.multi_reduction <maximumf>, %824, %cst_147 [0] : vector<5x5xf32> to vector<5xf32>
    %826 = vector.shape_cast %825 : vector<5xf32> to vector<1x5xf32>
    %827 = vector.broadcast %826 : vector<1x5xf32> to vector<5x5xf32>
    %828 = arith.cmpf oeq, %824, %827 : vector<5x5xf32>
    %cst_148 = arith.constant 5.000000e+00 : f32
    %829 = vector.broadcast %cst_148 : f32 to vector<5x5xf32>
    %830 = arith.select %828, %687, %829 : vector<5x5xi1>, vector<5x5xf32>
    %cst_149 = arith.constant dense<0x7F800000> : vector<5xf32>
    %831 = vector.multi_reduction <minimumf>, %830, %cst_149 [0] : vector<5x5xf32> to vector<5xf32>
    %832 = vector.shape_cast %831 : vector<5xf32> to vector<1x5xf32>
    %833 = vector.extract_strided_slice %683 {offsets = [7, 0], sizes = [1, 5], strides = [1, 1]} : vector<8x5xf32> to vector<1x5xf32>
    %834 = arith.addf %826, %833 : vector<1x5xf32>
    %c0_150 = arith.constant 0 : index
    %c0_151 = arith.constant 0 : index
    %835 = vector.load %arg10[%c0_150, %c0_151] : memref<1x5xf32, #tpu.memory_space<vmem>>, vector<1x5xf32>
    %836 = arith.addf %834, %835 : vector<1x5xf32>
    %cst_152 = arith.constant dense<0xFF800000> : vector<1xf32>
    %837 = vector.multi_reduction <maximumf>, %836, %cst_152 [1] : vector<1x5xf32> to vector<1xf32>
    %838 = vector.shape_cast %837 : vector<1xf32> to vector<1x1xf32>
    %c0_153 = arith.constant 0 : index
    %c0_154 = arith.constant 0 : index
    %839 = vector.load %arg11[%c0_153, %c0_154] : memref<1x1xf32, #tpu.memory_space<vmem>>, vector<1x1xf32>
    tpu.vector_store %arg11[%c0_153, %c0_154], %838 {strides = array<i32>} : memref<1x1xf32, #tpu.memory_space<vmem>>, vector<1x1xf32>,
    %840 = vector.broadcast %838 : vector<1x1xf32> to vector<1x5xf32>
    %841 = arith.cmpf oeq, %836, %840 : vector<1x5xf32>
    %cst_155 = arith.constant 5.000000e+00 : f32
    %842 = vector.broadcast %cst_155 : f32 to vector<1x5xf32>
    %843 = arith.select %841, %685, %842 : vector<1x5xi1>, vector<1x5xf32>
    %cst_156 = arith.constant dense<0x7F800000> : vector<1xf32>
    %844 = vector.multi_reduction <minimumf>, %843, %cst_156 [1] : vector<1x5xf32> to vector<1xf32>
    %845 = vector.shape_cast %844 : vector<1xf32> to vector<1x1xf32>
    %846 = tpu.iota {dimensions = array<i32: 1>} : vector<1x8xi32>
    %c7_i32 = arith.constant 7 : i32
    %847 = vector.broadcast %c7_i32 : i32 to vector<1x8xi32>
    %848 = arith.cmpi eq, %846, %847 : vector<1x8xi32>
    %cst_157 = arith.constant 0.000000e+00 : f32
    %849 = vector.shape_cast %845 : vector<1x1xf32> to vector<1x1xf32>
    %850 = vector.broadcast %849 : vector<1x1xf32> to vector<1x8xf32>
    %851 = vector.broadcast %cst_157 : f32 to vector<1x8xf32>
    %852 = arith.select %848, %850, %851 : vector<1x8xi1>, vector<1x8xf32>
    %853 = vector.broadcast %845 : vector<1x1xf32> to vector<1x5xf32>
    %854 = arith.cmpf oeq, %685, %853 : vector<1x5xf32>
    %cst_158 = arith.constant -1.000000e+00 : f32
    %855 = vector.broadcast %cst_158 : f32 to vector<1x5xf32>
    %856 = arith.select %854, %832, %855 : vector<1x5xi1>, vector<1x5xf32>
    %cst_159 = arith.constant dense<0xFF800000> : vector<1xf32>
    %857 = vector.multi_reduction <maximumf>, %856, %cst_159 [1] : vector<1x5xf32> to vector<1xf32>
    %858 = vector.shape_cast %857 : vector<1xf32> to vector<1x1xf32>
    %c6_i32 = arith.constant 6 : i32
    %859 = vector.broadcast %c6_i32 : i32 to vector<1x8xi32>
    %860 = arith.cmpi eq, %846, %859 : vector<1x8xi32>
    %861 = vector.shape_cast %858 : vector<1x1xf32> to vector<1x1xf32>
    %862 = vector.broadcast %861 : vector<1x1xf32> to vector<1x8xf32>
    %863 = arith.select %860, %862, %852 : vector<1x8xi1>, vector<1x8xf32>
    %864 = vector.broadcast %858 : vector<1x1xf32> to vector<1x5xf32>
    %865 = arith.cmpf oeq, %685, %864 : vector<1x5xf32>
    %cst_160 = arith.constant -1.000000e+00 : f32
    %866 = vector.broadcast %cst_160 : f32 to vector<1x5xf32>
    %867 = arith.select %865, %814, %866 : vector<1x5xi1>, vector<1x5xf32>
    %cst_161 = arith.constant dense<0xFF800000> : vector<1xf32>
    %868 = vector.multi_reduction <maximumf>, %867, %cst_161 [1] : vector<1x5xf32> to vector<1xf32>
    %869 = vector.shape_cast %868 : vector<1xf32> to vector<1x1xf32>
    %c5_i32 = arith.constant 5 : i32
    %870 = vector.broadcast %c5_i32 : i32 to vector<1x8xi32>
    %871 = arith.cmpi eq, %846, %870 : vector<1x8xi32>
    %872 = vector.shape_cast %869 : vector<1x1xf32> to vector<1x1xf32>
    %873 = vector.broadcast %872 : vector<1x1xf32> to vector<1x8xf32>
    %874 = arith.select %871, %873, %863 : vector<1x8xi1>, vector<1x8xf32>
    %875 = vector.broadcast %869 : vector<1x1xf32> to vector<1x5xf32>
    %876 = arith.cmpf oeq, %685, %875 : vector<1x5xf32>
    %cst_162 = arith.constant -1.000000e+00 : f32
    %877 = vector.broadcast %cst_162 : f32 to vector<1x5xf32>
    %878 = arith.select %876, %796, %877 : vector<1x5xi1>, vector<1x5xf32>
    %cst_163 = arith.constant dense<0xFF800000> : vector<1xf32>
    %879 = vector.multi_reduction <maximumf>, %878, %cst_163 [1] : vector<1x5xf32> to vector<1xf32>
    %880 = vector.shape_cast %879 : vector<1xf32> to vector<1x1xf32>
    %c4_i32 = arith.constant 4 : i32
    %881 = vector.broadcast %c4_i32 : i32 to vector<1x8xi32>
    %882 = arith.cmpi eq, %846, %881 : vector<1x8xi32>
    %883 = vector.shape_cast %880 : vector<1x1xf32> to vector<1x1xf32>
    %884 = vector.broadcast %883 : vector<1x1xf32> to vector<1x8xf32>
    %885 = arith.select %882, %884, %874 : vector<1x8xi1>, vector<1x8xf32>
    %886 = vector.broadcast %880 : vector<1x1xf32> to vector<1x5xf32>
    %887 = arith.cmpf oeq, %685, %886 : vector<1x5xf32>
    %cst_164 = arith.constant -1.000000e+00 : f32
    %888 = vector.broadcast %cst_164 : f32 to vector<1x5xf32>
    %889 = arith.select %887, %778, %888 : vector<1x5xi1>, vector<1x5xf32>
    %cst_165 = arith.constant dense<0xFF800000> : vector<1xf32>
    %890 = vector.multi_reduction <maximumf>, %889, %cst_165 [1] : vector<1x5xf32> to vector<1xf32>
    %891 = vector.shape_cast %890 : vector<1xf32> to vector<1x1xf32>
    %c3_i32_166 = arith.constant 3 : i32
    %892 = vector.broadcast %c3_i32_166 : i32 to vector<1x8xi32>
    %893 = arith.cmpi eq, %846, %892 : vector<1x8xi32>
    %894 = vector.shape_cast %891 : vector<1x1xf32> to vector<1x1xf32>
    %895 = vector.broadcast %894 : vector<1x1xf32> to vector<1x8xf32>
    %896 = arith.select %893, %895, %885 : vector<1x8xi1>, vector<1x8xf32>
    %897 = vector.broadcast %891 : vector<1x1xf32> to vector<1x5xf32>
    %898 = arith.cmpf oeq, %685, %897 : vector<1x5xf32>
    %cst_167 = arith.constant -1.000000e+00 : f32
    %899 = vector.broadcast %cst_167 : f32 to vector<1x5xf32>
    %900 = arith.select %898, %760, %899 : vector<1x5xi1>, vector<1x5xf32>
    %cst_168 = arith.constant dense<0xFF800000> : vector<1xf32>
    %901 = vector.multi_reduction <maximumf>, %900, %cst_168 [1] : vector<1x5xf32> to vector<1xf32>
    %902 = vector.shape_cast %901 : vector<1xf32> to vector<1x1xf32>
    %c2_i32 = arith.constant 2 : i32
    %903 = vector.broadcast %c2_i32 : i32 to vector<1x8xi32>
    %904 = arith.cmpi eq, %846, %903 : vector<1x8xi32>
    %905 = vector.shape_cast %902 : vector<1x1xf32> to vector<1x1xf32>
    %906 = vector.broadcast %905 : vector<1x1xf32> to vector<1x8xf32>
    %907 = arith.select %904, %906, %896 : vector<1x8xi1>, vector<1x8xf32>
    %908 = vector.broadcast %902 : vector<1x1xf32> to vector<1x5xf32>
    %909 = arith.cmpf oeq, %685, %908 : vector<1x5xf32>
    %cst_169 = arith.constant -1.000000e+00 : f32
    %910 = vector.broadcast %cst_169 : f32 to vector<1x5xf32>
    %911 = arith.select %909, %742, %910 : vector<1x5xi1>, vector<1x5xf32>
    %cst_170 = arith.constant dense<0xFF800000> : vector<1xf32>
    %912 = vector.multi_reduction <maximumf>, %911, %cst_170 [1] : vector<1x5xf32> to vector<1xf32>
    %913 = vector.shape_cast %912 : vector<1xf32> to vector<1x1xf32>
    %c1_i32_171 = arith.constant 1 : i32
    %914 = vector.broadcast %c1_i32_171 : i32 to vector<1x8xi32>
    %915 = arith.cmpi eq, %846, %914 : vector<1x8xi32>
    %916 = vector.shape_cast %913 : vector<1x1xf32> to vector<1x1xf32>
    %917 = vector.broadcast %916 : vector<1x1xf32> to vector<1x8xf32>
    %918 = arith.select %915, %917, %907 : vector<1x8xi1>, vector<1x8xf32>
    %919 = vector.broadcast %913 : vector<1x1xf32> to vector<1x5xf32>
    %920 = arith.cmpf oeq, %685, %919 : vector<1x5xf32>
    %cst_172 = arith.constant -1.000000e+00 : f32
    %921 = vector.broadcast %cst_172 : f32 to vector<1x5xf32>
    %922 = arith.select %920, %724, %921 : vector<1x5xi1>, vector<1x5xf32>
    %cst_173 = arith.constant dense<0xFF800000> : vector<1xf32>
    %923 = vector.multi_reduction <maximumf>, %922, %cst_173 [1] : vector<1x5xf32> to vector<1xf32>
    %924 = vector.shape_cast %923 : vector<1xf32> to vector<1x1xf32>
    %c0_i32_174 = arith.constant 0 : i32
    %925 = vector.broadcast %c0_i32_174 : i32 to vector<1x8xi32>
    %926 = arith.cmpi eq, %846, %925 : vector<1x8xi32>
    %927 = vector.shape_cast %924 : vector<1x1xf32> to vector<1x1xf32>
    %928 = vector.broadcast %927 : vector<1x1xf32> to vector<1x8xf32>
    %929 = arith.select %926, %928, %918 : vector<1x8xi1>, vector<1x8xf32>
    %930 = arith.fptosi %929 : vector<1x8xf32> to vector<1x8xi32>
    %c0_175 = arith.constant 0 : index
    %c0_176 = arith.constant 0 : index
    %931 = vector.load %arg12[%c0_175, %c0_176] : memref<1x8xi32, #tpu.memory_space<vmem>>, vector<1x8xi32>
    tpu.vector_store %arg12[%c0_175, %c0_176], %930 {strides = array<i32>} : memref<1x8xi32, #tpu.memory_space<vmem>>, vector<1x8xi32>,
    return
  }
}

</mosaic_0001>

<bundles_post_ra>
// kernel: forward.1
= control target key start
LH: loop header
LB: loop body
LE: loop exit
PB: predicated region body
PF: predicated region fallthrough
CT: control target
= control target key end

     0   :  { %18 = vsyncpa [#allocation5], 0  ;;  %s6623_s0 = inlined_call_operand.vmem [shape: s32[8], index: 0, kind: input, shape index: {}]   ;;  %s6624_s1 = inlined_call_operand.hbm [shape: f32[50,128], index: 1, kind: input, shape index: {}]   ;;  %s6625_s2 = inlined_call_operand.hbm [shape: f32[3,32,128], index: 2, kind: input, shape index: {}]   ;;  %s6626_s3 = inlined_call_operand.hbm [shape: f32[4,32,128], index: 3, kind: input, shape index: {}]   ;;  %s6627_s4 = inlined_call_operand.vmem [shape: f32[3,1,128], index: 4, kind: input, shape index: {}]   ;;  %s6628_s5 = inlined_call_operand.vmem [shape: f32[4,1,32], index: 5, kind: input, shape index: {}]   ;;  %s6629_s6 = inlined_call_operand.vmem [shape: f32[4,1,32], index: 6, kind: input, shape index: {}]   ;;  %s6630_s7 = inlined_call_operand.vmem [shape: f32[32,5], index: 7, kind: input, shape index: {}]   ;;  %s6631_s8 = inlined_call_operand.vmem [shape: f32[1,5], index: 8, kind: input, shape index: {}]   ;;  %s6632_s9 = inlined_call_operand.vmem [shape: f32[5,5], index: 9, kind: input, shape index: {}]   ;;  %s6633_s10 = inlined_call_operand.vmem [shape: f32[1,5], index: 10, kind: input, shape index: {}]   ;;  %s6634_s11 = inlined_call_operand.hbm [shape: f32[1,1], index: 11, kind: output, shape index: {0}]   ;;  %s6635_s12 = inlined_call_operand.hbm [shape: s32[1,8], index: 12, kind: output, shape index: {1}]  }
   0x1   :  { %19 = vsyncpa [#allocation3], 0 }
   0x2   :  { %20 = vsyncpa [#allocation8], 0 }
   0x3   :  { %21 = vsyncpa [#allocation4], 0 }
   0x4   :  { %22 = vsyncpa [#allocation12], 0  ;;  %s29_s23 = sshll.u32 %s6623_s0, 4  ;;  %s5425_s24 = smov [#allocation7]   ;;  %s30_s23 = int_to_ptr.vmem [resolvable:$true] %s29_s23 }
   0x5   :  { %s50_s25 = sshll.u32 %s5425_s24, 4  ;;  %s5293_s28 = scalar_lea.hbm %s6625_s2, 1536  ;;  %s51_s25 = int_to_ptr.vmem [resolvable:$true] %s50_s25 }
   0x6   :  { %p5294_p0 = scmp.ne.s32.totalorder %s6625_s2, %s5293_s28  ;;  %p5297_p1 = scmp.lt.u32.totalorder %s5293_s28, %s6625_s2 }
   0x8   :  { %p5299_p2 = pnand %p5297_p1, %p5294_p0 }
   0xa   :  { %5302 = shalt.err (!%p5299_p2)
}
   0xb   :  { %s5303_s15 = scalar_lea.vmem %s51_s25, 1536  ;;  %p5308_p4 = scmp.lt.s32.totalorder %s51_s25, %s51_s25 }
   0xc   :  { %p5304_p3 = scmp.ne.s32.totalorder %s51_s25, %s5303_s15  ;;  %p5309_p5 = scmp.lt.s32.totalorder %s5303_s15, %s5303_s15 }
   0xe   :  { %p5310_p6 = por %p5309_p5, %p5308_p4 }
  0x10   :  { %p5311_p7 = pnand %p5310_p6, %p5304_p3 }
  0x12   :  { %5314 = shalt.err (!%p5311_p7)
}
  0x13   :  { %s5426_s0 = smov 128   ;;  %s5427_s16 = smov 8  }
  0x14   :  { %56 = dma.hbm_to_vmem [thread:$0]  %s6625_s2, 1536, %s51_s25, [#allocation8], %s5426_s0, %s5426_s0, %s5427_s16  }
  0x15   :  { %s5315_s19 = scalar_lea.vmem %s30_s23, 16  ;;  %p5320_p9 = scmp.lt.s32.totalorder %s30_s23, %s30_s23 }
  0x16   :  { %p5316_p8 = scmp.ne.s32.totalorder %s30_s23, %s5315_s19  ;;  %p5321_p10 = scmp.lt.s32.totalorder %s5315_s19, %s5315_s19 }
  0x18   :  { %p5322_p11 = por %p5321_p10, %p5320_p9 }
  0x1a   :  { %p5323_p12 = pnand %p5322_p11, %p5316_p8 }
  0x1c   :  { %5326 = shalt.err (!%p5323_p12)
}
  0x1d   :  { %s5428_s20 = smov [#allocation2]   ;;  %s5429_s21 = smov [#allocation6]  }
  0x1e   :  { %32 = dma.vmem_to_smem %s30_s23, 16, %s5428_s20, [#allocation5]  }
  0x1f   :  { %s38_s22 = sshll.u32 %s5429_s21, 4  ;;  %s5430_s24 = smov [#allocation9]   ;;  %s39_s22 = int_to_ptr.vmem [resolvable:$true] %s38_s22 }
  0x20   :  { %s62_s26 = sshll.u32 %s5430_s24, 4  ;;  %s5327_s2 = scalar_lea.hbm %s6624_s1, 896  ;;  %s5523_s26 = int_to_ptr.vmem [resolvable:$true] %s62_s26 }
  0x21   :  { %p5328_p13 = scmp.ne.s32.totalorder %s6624_s1, %s5327_s2  ;;  %p5331_p0 = scmp.lt.u32.totalorder %s5327_s2, %s6624_s1 }
  0x23   :  { %p5333_p1 = pnand %p5331_p0, %p5328_p13 }
  0x25   :  { %5336 = shalt.err (!%p5333_p1)
}
  0x26   :  { %s5337_s23 = scalar_lea.vmem %s39_s22, 896  ;;  %p5342_p3 = scmp.lt.s32.totalorder %s39_s22, %s39_s22 }
  0x27   :  { %p5338_p2 = scmp.ne.s32.totalorder %s39_s22, %s5337_s23  ;;  %p5343_p4 = scmp.lt.s32.totalorder %s5337_s23, %s5337_s23 }
  0x29   :  { %p5344_p5 = por %p5343_p4, %p5342_p3 }
  0x2b   :  { %p5345_p6 = pnand %p5344_p5, %p5338_p2 }
  0x2d   :  { %5348 = shalt.err (!%p5345_p6)
}
  0x2e   :  { %44 = dma.hbm_to_vmem [thread:$0]  %s6624_s1, 896, %s39_s22, [#allocation3], %s5426_s0, %s5426_s0, %s5427_s16  }
  0x2f   :  { %s5349_s19 = scalar_lea.hbm %s6626_s3, 2048 }
  0x30   :  { %p5350_p7 = scmp.ne.s32.totalorder %s6626_s3, %s5349_s19  ;;  %p5353_p8 = scmp.lt.u32.totalorder %s5349_s19, %s6626_s3 }
  0x32   :  { %p5355_p9 = pnand %p5353_p8, %p5350_p7 }
  0x34   :  { %5358 = shalt.err (!%p5355_p9)
}
  0x35   :  { %s5359_s28 = scalar_lea.vmem %s5523_s26, 2048  ;;  %p5364_p11 = scmp.lt.s32.totalorder %s5523_s26, %s5523_s26 }
  0x36   :  { %p5360_p10 = scmp.ne.s32.totalorder %s5523_s26, %s5359_s28  ;;  %p5365_p12 = scmp.lt.s32.totalorder %s5359_s28, %s5359_s28 }
  0x38   :  { %p5366_p13 = por %p5365_p12, %p5364_p11 }
  0x3a   :  { %p5367_p0 = pnand %p5366_p13, %p5360_p10 }
  0x3c   :  { %5370 = shalt.err (!%p5367_p0)
}
  0x3d   :  { %68 = dma.hbm_to_vmem [thread:$0]  %s6626_s3, 2048, %s5523_s26, [#allocation8], %s5426_s0, %s5426_s0, %s5427_s16  }
  0x3e   :  { %5415 = dma.done.wait [#allocation5], 16  }
  0x3f   :  { %5416 = vsyncadd [#allocation5], 4294967280 }
  0x40   :  { %5417 = dma.done.wait [#allocation3], 896  }
  0x41   :  { %5418 = vsyncadd [#allocation3], 4294966400 }
  0x42   :  { %5419 = dma.done.wait [#allocation8], 3584  }
  0x43   :  { %5420 = vsyncadd [#allocation8], 4294963712 }
  0x44   :  { %95 = sfence }
  0x45   :  { %v140_v0 = vld [vmem:[#allocation9] sm:$0xff]  ;;  %v141_v1 = vld [vmem:[#allocation9 + $0x8] sm:$0xff]  ;;  %v142_v2 = vld [vmem:[#allocation9 + $0x10] sm:$0xff]  ;;  %v5431_v3 = vmov 0.0|0.0   ;;  %vm5432_vm0 = vmmov 0   ;;  %v5433_v6 = vmov 0.0   ;;  %v96_v9 = vlaneseq }
  0x46   :  { %4932 = vmatprep.subr.bf16.mxu0 %v5431_v3  ;;  %v5561_v4 = vpack.c.bf16 %v141_v1, %v140_v0  ;;  %v143_v5 = vld [vmem:[#allocation9 + $0x18] sm:$0xff]  ;;  %4544 = vmatprep.mubr.msk.f32.mxu0 %vm5432_vm0, %v5433_v6  ;;  %v144_v8 = vld [vmem:[%s6628_s5] sm:$0x1]  ;;  %vm147_vm1 = vcmask 261120   ;;  %s116_s16 = sld [smem:[#allocation2]]  ;;  %s4302_s26 = sld [smem:[#allocation2 + $0x7]] }
  0x47   :  { %4938 = vmatprep.subr.bf16.mxu1 %v5431_v3  ;;  %4555 = vmatprep.mubr.msk.f32.mxu1 %vm5432_vm0, %v5433_v6  ;;  %v5569_v7 = vpack.c.bf16 %v143_v5, %v142_v2  ;;  %v5589_v10 = vand.u32 127, %v96_v9  ;;  %v5434_v19 = vmov 0.5   ;;  %s5435_s29 = smov 64   ;;  %v4304_v25 = vld [vmem:[%s6629_s6] ss:$0 sm:$0xff]  ;;  %s5436_s23 = smov 32  }
  0x48   :  { %4934 = vmatpush3.bf16.msra.mxu0 %v5561_v4  ;;  %4940 = vmatpush3.bf16.msra.mxu1 %v5561_v4  ;;  %s4296_s14 = sld [smem:[#allocation2 + $0x1]]  ;;  %s4301_s15 = sld [smem:[#allocation2 + $0x6]]  ;;  %vm944_vm6 = vcmask 1040384   ;;  %vm946_vm7 = vcmask 1041408   ;;  %vm948_vm8 = vcmask 1042432   ;;  %vm950_vm9 = vcmask 1043456  }
  0x49   :  { %4935 = vmatprep.subr.bf16.mxu0 %v5431_v3  ;;  %4941 = vmatprep.subr.bf16.mxu1 %v5431_v3  ;;  %v102_v11 = vand.u32 31, %v5589_v10  ;;  %vm111_vm3 = vcmp.ge.s32.totalorder %v5589_v10, 64  ;;  %vm112_vm4 = vcmp.lt.s32.totalorder %v5589_v10, 96  ;;  %s4297_s19 = sld [smem:[#allocation2 + $0x2]]  ;;  %s4300_s20 = sld [smem:[#allocation2 + $0x5]]  ;;  %vm952_vm10 = vcmask 1044480  }
  0x4a   :  { %vm113_vm5 = vmand %vm111_vm3, %vm112_vm4  ;;  %s4298_s27 = sld [smem:[#allocation2 + $0x3]]  ;;  %s4299_s28 = sld [smem:[#allocation2 + $0x4]]  ;;  %vm954_vm11 = vcmask 1045504   ;;  %vm956_vm12 = vcmask 1046528   ;;  %vm987_vm13 = vcmask 130048   ;;  %vm3987_vm14 = vcmp.eq.s32.totalorder %v5589_v10, 3 }
  0x4b   :  { %vm5592_vm2 = vcmp.lt.s32.totalorder %v102_v11, 16  ;;  %v5606_v20 = vsel %vm113_vm5, 1.0, %v5434_v19  ;;  %v5608_v22 = vsel %vm113_vm5, 0.0, %v5434_v19 }
  0x4c   :  { %4937 = vmatpush3.bf16.msra.mxu0 %v5569_v7  ;;  %4943 = vmatpush3.bf16.msra.mxu1 %v5569_v7  ;;  %s117_s2 = scalar_lea.vmem [#allocation6], %s116_s16  ;;  %s138_s25 = scalar_lea.vmem [#allocation6], %s4302_s26 }
  0x4d   :  { %4944 = vmatprep.subr.bf16.mxu0 %v5431_v3  ;;  %4950 = vmatprep.subr.bf16.mxu1 %v5431_v3  ;;  %v5596_v13 = vld [vmem:[%s117_s2] sm:$0x1] }
  0x4e   :  { %v5598_v14 = vld [vmem:[%s138_s25] sm:$0x1]  ;;  %s120_s17 = scalar_lea.vmem [#allocation6], %s4296_s14  ;;  %s135_s18 = scalar_lea.vmem [#allocation6], %s4301_s15 }
  0x4f   :  { %4545 = vmatmul.mubr.msk.f32.vlgmr.msra.gmra.mrb[0].mxu0 %vm147_vm1, %v144_v8  ;;  %v146_v15 = vsel %vm5592_vm2, %v5596_v13, %v5598_v14  ;;  %v5630_v36 = vld [vmem:[%s120_s17] sm:$0x1]  ;;  %s123_s21 = scalar_lea.vmem [#allocation6], %s4297_s19  ;;  %s132_s24 = scalar_lea.vmem [#allocation6], %s4300_s20 }
  0x50   :  { %4946 = vmatpush3.bf16.msra.mxu0 %v5561_v4  ;;  %4566 = vmatprep.mubr.msk.f32.mxu0 %vm5432_vm0, %v5433_v6  ;;  %v5632_v37 = vld [vmem:[%s135_s18] sm:$0x1]  ;;  %s126_s1 = scalar_lea.vmem [#allocation6], %s4298_s27  ;;  %s129_s22 = scalar_lea.vmem [#allocation6], %s4299_s28 }
  0x51   :  { %4947 = vmatprep.subr.bf16.mxu0 %v5431_v3  ;;  %v250_v38 = vsel %vm5592_vm2, %v5630_v36, %v5632_v37  ;;  %v5654_v54 = vld [vmem:[%s123_s21] sm:$0x1] }
  0x52   :  { %v5656_v55 = vld [vmem:[%s132_s24] sm:$0x1] }
  0x53   :  { %v347_v56 = vsel %vm5592_vm2, %v5654_v54, %v5656_v55 }
  0x54   :  { %4949 = vmatpush3.bf16.msra.mxu0 %v5569_v7 }
  0x55   :  { %4956 = vmatprep.subr.bf16.mxu0 %v5431_v3 }
 0x122   :  { %v217_v16 = vpop.f32.mrb[0].mxu0 }
 0x123   :  { %v221_v17 = vadd.f32 %v217_v16, %v146_v15  ;;  %v4546_v18 = vpop.f32.mrb[1].mxu0 }
 0x125   :  { %5165 = vtanh.f32 %v221_v17 }
 0x12f   :  { %v5166_v21 = vpop.eup %5165 }
 0x130   :  { %v223_v23 = vmul.f32 %v5166_v21, %v5606_v20 }
 0x132   :  { %v224_v24 = vadd.f32 %v223_v23, %v5608_v22  ;;  %v127_v23 = vld [vmem:[%s126_s1] sm:$0x1] }
 0x134   :  { %235 = vrot.lane.b32.xlu0 %v224_v24, %s5435_s29 }
 0x138   :  { %230 = vrot.lane.b32.xlu0 %v4304_v25, %s5436_s23 }
 0x1a6   :  { %v236_v26 = vpop.permute.xlu0 %235 }
 0x1a7   :  { %v238_v27 = vmul.f32 %v236_v26, %v224_v24 }
 0x1a9   :  { %240 = vrot.lane.b32.xlu1 %v238_v27, %s5436_s23 }
 0x1aa   :  { %v231_v28 = vpop.permute.xlu0 %230 }
 0x1ab   :  { %v233_v29 = vmul.f32 %v231_v28, %v224_v24 }
 0x21b   :  { %v241_v30 = vpop.permute.xlu1 %240 }
 0x21c   :  { %v243_v31 = vadd.f32 %v241_v30, %v233_v29 }
 0x21e   :  { %5167 = vtanh.f32 %v243_v31 }
 0x228   :  { %v5168_v32 = vpop.eup %5167 }
 0x229   :  { %246 = vrot.lane.b32.xlu1 %v5168_v32, %s5435_s29 }
 0x29b   :  { %v247_v33 = vpop.permute.xlu1 %246 }
 0x29c   :  { %v5619_v34 = vmul.f32 %v247_v33, %v224_v24  ;;  %v130_v24 = vld [vmem:[%s129_s22] sm:$0x1] }
 0x29d   :  { %v444_v25 = vsel %vm5592_vm2, %v127_v23, %v130_v24 }
 0x29e   :  { %252 = vrot.lane.b32.xlu0 %v5619_v34, %s5436_s23 }
 0x310   :  { %v253_v35 = vpop.permute.xlu0 %252 }
 0x311   :  { %4556 = vmatmul.mubr.msk.f32.vlgmr.msra.gmra.mrb[0].mxu1 %vm147_vm1, %v253_v35 }
 0x312   :  { %4952 = vmatpush3.bf16.msra.mxu1 %v5561_v4  ;;  %4577 = vmatprep.mubr.msk.f32.mxu1 %vm5432_vm0, %v5433_v6 }
 0x313   :  { %4953 = vmatprep.subr.bf16.mxu1 %v5431_v3 }
 0x316   :  { %4955 = vmatpush3.bf16.msra.mxu1 %v5569_v7 }
 0x317   :  { %4962 = vmatprep.subr.bf16.mxu1 %v5431_v3 }
 0x3e4   :  { %v322_v39 = vpop.f32.mrb[0].mxu1 }
 0x3e5   :  { %v326_v40 = vadd.f32 %v322_v39, %v250_v38  ;;  %v4557_v41 = vpop.f32.mrb[1].mxu1 }
 0x3e7   :  { %5169 = vtanh.f32 %v326_v40 }
 0x3f1   :  { %v5170_v42 = vpop.eup %5169 }
 0x3f2   :  { %v328_v43 = vmul.f32 %v5170_v42, %v5606_v20 }
 0x3f4   :  { %v329_v44 = vadd.f32 %v328_v43, %v5608_v22 }
 0x3f6   :  { %332 = vrot.lane.b32.xlu1 %v329_v44, %s5435_s29  ;;  %v330_v47 = vmul.f32 %v329_v44, %v243_v31 }
 0x468   :  { %v333_v45 = vpop.permute.xlu1 %332 }
 0x469   :  { %v335_v46 = vmul.f32 %v333_v45, %v329_v44 }
 0x46b   :  { %337 = vrot.lane.b32.xlu0 %v335_v46, %s5436_s23  ;;  %v541_v46 = vsel %vm5592_vm2, %v130_v24, %v127_v23 }
 0x4dd   :  { %v338_v48 = vpop.permute.xlu0 %337 }
 0x4de   :  { %v340_v49 = vadd.f32 %v338_v48, %v330_v47 }
 0x4e0   :  { %5171 = vtanh.f32 %v340_v49 }
 0x4ea   :  { %v5172_v50 = vpop.eup %5171 }
 0x4eb   :  { %343 = vrot.lane.b32.xlu1 %v5172_v50, %s5435_s29 }
 0x55d   :  { %v344_v51 = vpop.permute.xlu1 %343 }
 0x55e   :  { %v5643_v52 = vmul.f32 %v344_v51, %v329_v44 }
 0x560   :  { %349 = vrot.lane.b32.xlu0 %v5643_v52, %s5436_s23  ;;  %v929_v11 = vrot.slane %v5643_v52, 7 }
 0x562   :  { %v945_v18 = vsel %vm944_vm6, %v5619_v34, %v929_v11 }
 0x5d2   :  { %v350_v53 = vpop.permute.xlu0 %349 }
 0x5d3   :  { %4567 = vmatmul.mubr.msk.f32.vlgmr.msra.gmra.mrb[2].mxu0 %vm147_vm1, %v350_v53 }
 0x5d4   :  { %4958 = vmatpush3.bf16.msra.mxu0 %v5561_v4  ;;  %4588 = vmatprep.mubr.msk.f32.mxu0 %vm5432_vm0, %v5433_v6 }
 0x5d5   :  { %4959 = vmatprep.subr.bf16.mxu0 %v5431_v3 }
 0x5d8   :  { %4961 = vmatpush3.bf16.msra.mxu0 %v5569_v7 }
 0x5d9   :  { %4968 = vmatprep.subr.bf16.mxu0 %v5431_v3 }
 0x6a6   :  { %v419_v57 = vpop.f32.mrb[2].mxu0 }
 0x6a7   :  { %v423_v58 = vadd.f32 %v419_v57, %v347_v56  ;;  %v4568_v59 = vpop.f32.mrb[3].mxu0 }
 0x6a9   :  { %5173 = vtanh.f32 %v423_v58 }
 0x6b3   :  { %v5174_v60 = vpop.eup %5173 }
 0x6b4   :  { %v425_v61 = vmul.f32 %v5174_v60, %v5606_v20 }
 0x6b6   :  { %v426_v62 = vadd.f32 %v425_v61, %v5608_v22 }
 0x6b8   :  { %429 = vrot.lane.b32.xlu1 %v426_v62, %s5435_s29  ;;  %v427_v1 = vmul.f32 %v426_v62, %v340_v49 }
 0x72a   :  { %v430_v63 = vpop.permute.xlu1 %429 }
 0x72b   :  { %v432_v0 = vmul.f32 %v430_v63, %v426_v62 }
 0x72d   :  { %434 = vrot.lane.b32.xlu0 %v432_v0, %s5436_s23 }
 0x79f   :  { %v435_v2 = vpop.permute.xlu0 %434 }
 0x7a0   :  { %v437_v5 = vadd.f32 %v435_v2, %v427_v1 }
 0x7a2   :  { %5175 = vtanh.f32 %v437_v5 }
 0x7ac   :  { %v5176_v8 = vpop.eup %5175 }
 0x7ad   :  { %440 = vrot.lane.b32.xlu1 %v5176_v8, %s5435_s29 }
 0x81f   :  { %v441_v15 = vpop.permute.xlu1 %440 }
 0x820   :  { %v5668_v16 = vmul.f32 %v441_v15, %v426_v62 }
 0x822   :  { %v931_v17 = vrot.slane %v5668_v16, 6  ;;  %446 = vrot.lane.b32.xlu0 %v5668_v16, %s5436_s23 }
 0x824   :  { %v947_v19 = vsel %vm946_vm7, %v945_v18, %v931_v17 }
 0x894   :  { %v447_v21 = vpop.permute.xlu0 %446 }
 0x895   :  { %4578 = vmatmul.mubr.msk.f32.vlgmr.msra.gmra.mrb[2].mxu1 %vm147_vm1, %v447_v21 }
 0x896   :  { %4964 = vmatpush3.bf16.msra.mxu1 %v5561_v4  ;;  %4599 = vmatprep.mubr.msk.f32.mxu1 %vm5432_vm0, %v5433_v6 }
 0x897   :  { %4965 = vmatprep.subr.bf16.mxu1 %v5431_v3 }
 0x89a   :  { %4967 = vmatpush3.bf16.msra.mxu1 %v5569_v7 }
 0x89b   :  { %4974 = vmatprep.subr.bf16.mxu1 %v5431_v3 }
 0x968   :  { %v516_v26 = vpop.f32.mrb[2].mxu1 }
 0x969   :  { %v520_v27 = vadd.f32 %v516_v26, %v444_v25  ;;  %v4579_v28 = vpop.f32.mrb[3].mxu1 }
 0x96b   :  { %5177 = vtanh.f32 %v520_v27 }
 0x975   :  { %v5178_v29 = vpop.eup %5177 }
 0x976   :  { %v522_v30 = vmul.f32 %v5178_v29, %v5606_v20  ;;  %v735_v29 = vsel %vm5592_vm2, %v5632_v37, %v5630_v36 }
 0x978   :  { %v523_v31 = vadd.f32 %v522_v30, %v5608_v22 }
 0x97a   :  { %526 = vrot.lane.b32.xlu1 %v523_v31, %s5435_s29  ;;  %v524_v35 = vmul.f32 %v523_v31, %v437_v5  ;;  %v638_v5 = vsel %vm5592_vm2, %v5656_v55, %v5654_v54 }
 0x9ec   :  { %v527_v32 = vpop.permute.xlu1 %526 }
 0x9ed   :  { %v529_v33 = vmul.f32 %v527_v32, %v523_v31 }
 0x9ef   :  { %531 = vrot.lane.b32.xlu0 %v529_v33, %s5436_s23 }
 0xa61   :  { %v532_v38 = vpop.permute.xlu0 %531 }
 0xa62   :  { %v534_v39 = vadd.f32 %v532_v38, %v524_v35 }
 0xa64   :  { %5179 = vtanh.f32 %v534_v39 }
 0xa6e   :  { %v5180_v40 = vpop.eup %5179 }
 0xa6f   :  { %537 = vrot.lane.b32.xlu1 %v5180_v40, %s5435_s29 }
 0xae1   :  { %v538_v41 = vpop.permute.xlu1 %537 }
 0xae2   :  { %v5690_v42 = vmul.f32 %v538_v41, %v523_v31 }
 0xae4   :  { %v933_v43 = vrot.slane %v5690_v42, 5  ;;  %543 = vrot.lane.b32.xlu0 %v5690_v42, %s5436_s23 }
 0xae6   :  { %v949_v44 = vsel %vm948_vm8, %v947_v19, %v933_v43 }
 0xb56   :  { %v544_v45 = vpop.permute.xlu0 %543 }
 0xb57   :  { %4589 = vmatmul.mubr.msk.f32.vlgmr.msra.gmra.mrb[4].mxu0 %vm147_vm1, %v544_v45 }
 0xb58   :  { %4970 = vmatpush3.bf16.msra.mxu0 %v5561_v4  ;;  %4610 = vmatprep.mubr.msk.f32.mxu0 %vm5432_vm0, %v5433_v6 }
 0xb59   :  { %4971 = vmatprep.subr.bf16.mxu0 %v5431_v3 }
 0xb5c   :  { %4973 = vmatpush3.bf16.msra.mxu0 %v5569_v7 }
 0xb5d   :  { %4980 = vmatprep.subr.bf16.mxu0 %v5431_v3 }
 0xc2a   :  { %v613_v47 = vpop.f32.mrb[4].mxu0 }
 0xc2b   :  { %v617_v48 = vadd.f32 %v613_v47, %v541_v46  ;;  %v4590_v49 = vpop.f32.mrb[5].mxu0 }
 0xc2c   :  { %v832_v49 = vsel %vm5592_vm2, %v5598_v14, %v5596_v13  ;;  %v989_v13 = vld [vmem:[#allocation7] sm:$0xff]  ;;  %v990_v14 = vld [vmem:[#allocation7 + $0x8] sm:$0xff] }
 0xc2d   :  { %5181 = vtanh.f32 %v617_v48 }
 0xc37   :  { %v5182_v50 = vpop.eup %5181 }
 0xc38   :  { %v619_v51 = vmul.f32 %v5182_v50, %v5606_v20 }
 0xc3a   :  { %v620_v53 = vadd.f32 %v619_v51, %v5608_v22 }
 0xc3c   :  { %623 = vrot.lane.b32.xlu1 %v620_v53, %s5435_s29  ;;  %v621_v58 = vmul.f32 %v620_v53, %v534_v39 }
 0xcae   :  { %v624_v56 = vpop.permute.xlu1 %623 }
 0xcaf   :  { %v626_v57 = vmul.f32 %v624_v56, %v620_v53 }
 0xcb1   :  { %628 = vrot.lane.b32.xlu0 %v626_v57, %s5436_s23 }
 0xd23   :  { %v629_v59 = vpop.permute.xlu0 %628 }
 0xd24   :  { %v631_v60 = vadd.f32 %v629_v59, %v621_v58 }
 0xd26   :  { %5183 = vtanh.f32 %v631_v60 }
 0xd30   :  { %v5184_v61 = vpop.eup %5183 }
 0xd31   :  { %634 = vrot.lane.b32.xlu1 %v5184_v61, %s5435_s29 }
 0xda3   :  { %v635_v62 = vpop.permute.xlu1 %634 }
 0xda4   :  { %v5710_v63 = vmul.f32 %v635_v62, %v620_v53 }
 0xda6   :  { %v935_v0 = vrot.slane %v5710_v63, 4  ;;  %640 = vrot.lane.b32.xlu0 %v5710_v63, %s5436_s23 }
 0xda8   :  { %v951_v1 = vsel %vm950_vm9, %v949_v44, %v935_v0 }
 0xe18   :  { %v641_v2 = vpop.permute.xlu0 %640 }
 0xe19   :  { %4600 = vmatmul.mubr.msk.f32.vlgmr.msra.gmra.mrb[4].mxu1 %vm147_vm1, %v641_v2 }
 0xe1a   :  { %4976 = vmatpush3.bf16.msra.mxu1 %v5561_v4  ;;  %4621 = vmatprep.mubr.msk.f32.mxu1 %vm5432_vm0, %v5433_v6 }
 0xe1b   :  { %4977 = vmatprep.subr.bf16.mxu1 %v5431_v3 }
 0xe1e   :  { %4979 = vmatpush3.bf16.msra.mxu1 %v5569_v7 }
 0xe1f   :  { %4986 = vmatprep.subr.bf16.mxu1 %v5431_v3 }
 0xeec   :  { %v710_v8 = vpop.f32.mrb[4].mxu1 }
 0xeed   :  { %v714_v11 = vadd.f32 %v710_v8, %v638_v5  ;;  %v4601_v15 = vpop.f32.mrb[5].mxu1  ;;  %v991_v5 = vld [vmem:[#allocation7 + $0x10] sm:$0xff]  ;;  %v992_v8 = vld [vmem:[#allocation7 + $0x18] sm:$0xff] }
 0xeee   :  { %v4984_v15 = vpack.c.bf16 %v992_v8, %v991_v5 }
 0xeef   :  { %5185 = vtanh.f32 %v714_v11  ;;  %v1074_v11 = vld [vmem:[#allocation9 + $0x20] sm:$0xff] }
 0xef9   :  { %v5186_v17 = vpop.eup %5185 }
 0xefa   :  { %v716_v4 = vmul.f32 %v5186_v17, %v5606_v20  ;;  %v1075_v17 = vld [vmem:[#allocation9 + $0x28] sm:$0xff] }
 0xefc   :  { %v717_v18 = vadd.f32 %v716_v4, %v5608_v22  ;;  %v5765_v4 = vpack.c.bf16 %v1075_v17, %v1074_v11 }
 0xefe   :  { %720 = vrot.lane.b32.xlu1 %v717_v18, %s5435_s29  ;;  %v718_v21 = vmul.f32 %v717_v18, %v631_v60 }
 0xf70   :  { %v721_v19 = vpop.permute.xlu1 %720 }
 0xf71   :  { %v723_v7 = vmul.f32 %v721_v19, %v717_v18  ;;  %v1077_v19 = vld [vmem:[#allocation9 + $0x38] sm:$0xff] }
 0xf73   :  { %725 = vrot.lane.b32.xlu0 %v723_v7, %s5436_s23 }
 0xfe5   :  { %v726_v23 = vpop.permute.xlu0 %725 }
 0xfe6   :  { %v728_v24 = vadd.f32 %v726_v23, %v718_v21  ;;  %v4314_v23 = vld [vmem:[%s6628_s5 + $0x1] sm:$0x1] }
 0xfe8   :  { %5187 = vtanh.f32 %v728_v24 }
 0xff2   :  { %v5188_v54 = vpop.eup %5187 }
 0xff3   :  { %731 = vrot.lane.b32.xlu1 %v5188_v54, %s5435_s29 }
0x1065   :  { %v732_v55 = vpop.permute.xlu1 %731 }
0x1066   :  { %v5732_v25 = vmul.f32 %v732_v55, %v717_v18  ;;  %v1076_v18 = vld [vmem:[#allocation9 + $0x30] sm:$0xff] }
0x1067   :  { %v5770_v7 = vpack.c.bf16 %v1077_v19, %v1076_v18 }
0x1068   :  { %v937_v26 = vrot.slane %v5732_v25, 3  ;;  %737 = vrot.lane.b32.xlu0 %v5732_v25, %s5436_s23  ;;  %v960_v55 = vrot.slane %v5732_v25, 6 }
0x106a   :  { %v953_v27 = vsel %vm952_vm10, %v951_v1, %v937_v26  ;;  %v4981_v1 = vpack.c.bf16 %v990_v14, %v989_v13  ;;  %v962_v26 = vrot.slane %v5710_v63, 5 }
0x10da   :  { %v738_v28 = vpop.permute.xlu0 %737 }
0x10db   :  { %4611 = vmatmul.mubr.msk.f32.vlgmr.msra.gmra.mrb[6].mxu0 %vm147_vm1, %v738_v28 }
0x10dc   :  { %4632 = vmatprep.mubr.msk.f32.mxu0 %vm5432_vm0, %v5433_v6  ;;  %4982 = vmatpush3.bf16.msra.mxu0 %v4981_v1 }
0x10dd   :  { %4983 = vmatprep.subr.bf16.mxu0 %v5431_v3 }
0x10e0   :  { %4985 = vmatpush3.bf16.msra.mxu0 %v4984_v15 }
0x10e1   :  { %4992 = vmatprep.subr.bf16.mxu0 %v5431_v3 }
0x11ae   :  { %v807_v30 = vpop.f32.mrb[6].mxu0 }
0x11af   :  { %v811_v31 = vadd.f32 %v807_v30, %v735_v29  ;;  %v4612_v32 = vpop.f32.mrb[7].mxu0  ;;  %v964_v29 = vrot.slane %v5690_v42, 4 }
0x11b0   :  { %v968_v32 = vrot.slane %v5643_v52, 2  ;;  %v4317_v52 = vld [vmem:[%s6629_s6 + $0x1] ss:$0 sm:$0xff] }
0x11b1   :  { %5189 = vtanh.f32 %v811_v31  ;;  %v966_v31 = vrot.slane %v5668_v16, 3 }
0x11bb   :  { %v5190_v33 = vpop.eup %5189 }
0x11bc   :  { %v813_v35 = vmul.f32 %v5190_v33, %v5606_v20  ;;  %v970_v33 = vrot.slane %v5619_v34, 1 }
0x11be   :  { %v814_v38 = vadd.f32 %v813_v35, %v5608_v22 }
0x11c0   :  { %817 = vrot.lane.b32.xlu1 %v814_v38, %s5435_s29  ;;  %v815_v41 = vmul.f32 %v814_v38, %v728_v24 }
0x1232   :  { %v818_v39 = vpop.permute.xlu1 %817 }
0x1233   :  { %v820_v40 = vmul.f32 %v818_v39, %v814_v38 }
0x1235   :  { %822 = vrot.lane.b32.xlu0 %v820_v40, %s5436_s23 }
0x12a7   :  { %v823_v43 = vpop.permute.xlu0 %822 }
0x12a8   :  { %v825_v44 = vadd.f32 %v823_v43, %v815_v41 }
0x12aa   :  { %5191 = vtanh.f32 %v825_v44 }
0x12b4   :  { %v5192_v36 = vpop.eup %5191 }
0x12b5   :  { %828 = vrot.lane.b32.xlu1 %v5192_v36, %s5435_s29 }
0x1327   :  { %v829_v37 = vpop.permute.xlu1 %828 }
0x1328   :  { %v831_v45 = vmul.f32 %v829_v37, %v814_v38 }
0x132a   :  { %v939_v46 = vrot.slane %v831_v45, 2  ;;  %834 = vrot.lane.b32.xlu0 %v831_v45, %s5436_s23  ;;  %v958_v24 = vrot.slane %v831_v45, 7 }
0x132c   :  { %v955_v47 = vsel %vm954_vm11, %v953_v27, %v939_v46 }
0x139c   :  { %v835_v48 = vpop.permute.xlu0 %834 }
0x139d   :  { %4622 = vmatmul.mubr.msk.f32.vlgmr.msra.gmra.mrb[6].mxu1 %vm147_vm1, %v835_v48 }
0x139e   :  { %4643 = vmatprep.mubr.msk.f32.mxu1 %vm5432_vm0, %v5433_v6  ;;  %4988 = vmatpush3.bf16.msra.mxu1 %v5765_v4 }
0x139f   :  { %4989 = vmatprep.subr.bf16.mxu1 %v5431_v3 }
0x13a2   :  { %4991 = vmatpush3.bf16.msra.mxu1 %v5770_v7 }
0x13a3   :  { %4998 = vmatprep.subr.bf16.mxu1 %v5431_v3 }
0x13a5   :  { %4644 = vmatmul.mubr.msk.f32.vlgmr.msra.gmra.mrb[8].mxu1 %vm147_vm1, %v4314_v23 }
0x13a6   :  { %5000 = vmatpush3.bf16.msra.mxu1 %v5765_v4  ;;  %4665 = vmatprep.mubr.msk.f32.mxu1 %vm5432_vm0, %v5433_v6 }
0x13a7   :  { %5001 = vmatprep.subr.bf16.mxu1 %v5431_v3 }
0x13aa   :  { %5003 = vmatpush3.bf16.msra.mxu1 %v5770_v7 }
0x13ab   :  { %5010 = vmatprep.subr.bf16.mxu1 %v5431_v3 }
0x1470   :  { %v904_v50 = vpop.f32.mrb[6].mxu1 }
0x1471   :  { %v908_v51 = vadd.f32 %v904_v50, %v832_v49  ;;  %v4623_v53 = vpop.f32.mrb[7].mxu1 }
0x1473   :  { %5193 = vtanh.f32 %v908_v51 }
0x1478   :  { %v1155_v41 = vpop.f32.mrb[8].mxu1 }
0x1479   :  { %v4645_v43 = vpop.f32.mrb[9].mxu1 }
0x147d   :  { %v5194_v56 = vpop.eup %5193 }
0x147e   :  { %v910_v57 = vmul.f32 %v5194_v56, %v5606_v20 }
0x1480   :  { %v911_v58 = vadd.f32 %v910_v57, %v5608_v22 }
0x1482   :  { %914 = vrot.lane.b32.xlu1 %v911_v58, %s5435_s29  ;;  %v912_v61 = vmul.f32 %v911_v58, %v825_v44  ;;  %v4312_v44 = vld [vmem:[%s6627_s4] ss:$0 sm:$0xff] }
0x14f4   :  { %v915_v59 = vpop.permute.xlu1 %914 }
0x14f5   :  { %v917_v60 = vmul.f32 %v915_v59, %v911_v58 }
0x14f7   :  { %919 = vrot.lane.b32.xlu0 %v917_v60, %s5436_s23 }
0x1569   :  { %v920_v62 = vpop.permute.xlu0 %919 }
0x156a   :  { %v922_v0 = vadd.f32 %v920_v62, %v912_v61 }
0x156c   :  { %5195 = vtanh.f32 %v922_v0 }
0x1576   :  { %v5196_v2 = vpop.eup %5195 }
0x1577   :  { %925 = vrot.lane.b32.xlu1 %v5196_v2, %s5435_s29 }
0x15e9   :  { %v926_v21 = vpop.permute.xlu1 %925 }
0x15ea   :  { %v928_v54 = vmul.f32 %v926_v21, %v911_v58 }
0x15ec   :  { %v942_v27 = vrot.slane %v928_v54, 1  ;;  %v972_v28 = vsel %vm944_vm6, %v928_v54, %v958_v24 }
0x15ed   :  { %v973_v30 = vsel %vm946_vm7, %v972_v28, %v960_v55 }
0x15ee   :  { %v957_v25 = vsel %vm956_vm12, %v955_v47, %v942_v27  ;;  %v974_v63 = vsel %vm948_vm8, %v973_v30, %v962_v26 }
0x15ef   :  { %980 = vrot.lane.b32.xlu0 %v957_v25, %s5436_s23  ;;  %v975_v42 = vsel %vm950_vm9, %v974_v63, %v964_v29 }
0x15f0   :  { %v976_v35 = vsel %vm952_vm10, %v975_v42, %v966_v31 }
0x15f1   :  { %v977_v38 = vsel %vm954_vm11, %v976_v35, %v968_v32 }
0x15f2   :  { %v978_v16 = vsel %vm956_vm12, %v977_v38, %v970_v33 }
0x15f3   :  { %984 = vrot.lane.b32.xlu1 %v978_v16, %s5436_s23 }
0x15f7   :  { %1168 = vrot.lane.b32.xlu1 %v4317_v52, %s5436_s23 }
0x1661   :  { %v981_v34 = vpop.permute.xlu0 %980 }
0x1665   :  { %v985_v39 = vpop.permute.xlu1 %984 }
0x1666   :  { %v988_v40 = vsel %vm987_vm13, %v981_v34, %v985_v39 }
0x1667   :  { %4633 = vmatmul.mubr.msk.f32.vlgmr.msra.gmra.mrb[8].mxu0 %vm147_vm1, %v988_v40 }
0x1668   :  { %4994 = vmatpush3.bf16.msra.mxu0 %v5765_v4  ;;  %4654 = vmatprep.mubr.msk.f32.mxu0 %vm5432_vm0, %v5433_v6 }
0x1669   :  { %4995 = vmatprep.subr.bf16.mxu0 %v5431_v3  ;;  %v1169_v57 = vpop.permute.xlu1 %1168 }
0x166c   :  { %4997 = vmatpush3.bf16.msra.mxu0 %v5770_v7 }
0x166d   :  { %5004 = vmatprep.subr.bf16.mxu0 %v5431_v3 }
0x173a   :  { %v1069_v36 = vpop.f32.mrb[8].mxu0 }
0x173b   :  { %v5815_v37 = vadd.f32 %v4312_v44, %v1069_v36  ;;  %v4634_v45 = vpop.f32.mrb[9].mxu0 }
0x173d   :  { %v1083_v46 = vrot.slane %v5815_v37, 7  ;;  %v1188_v14 = vrot.slane %v5815_v37, 5  ;;  %v1293_v31 = vrot.slane %v5815_v37, 3 }
0x173f   :  { %v5821_v47 = vsel %vm5592_vm2, %v5815_v37, %v1083_v46  ;;  %v5844_v8 = vsel %vm5592_vm2, %v5815_v37, %v1188_v14  ;;  %v5867_v42 = vsel %vm5592_vm2, %v5815_v37, %v1293_v31 }
0x1740   :  { %v1159_v48 = vadd.f32 %v1155_v41, %v5821_v47 }
0x1742   :  { %5197 = vtanh.f32 %v1159_v48 }
0x174c   :  { %v5198_v49 = vpop.eup %5197 }
0x174d   :  { %v1161_v50 = vmul.f32 %v5198_v49, %v5606_v20 }
0x174f   :  { %v1162_v51 = vadd.f32 %v1161_v50, %v5608_v22 }
0x1751   :  { %1173 = vrot.lane.b32.xlu0 %v1162_v51, %s5435_s29  ;;  %v1171_v58 = vmul.f32 %v1169_v57, %v1162_v51 }
0x17c3   :  { %v1174_v53 = vpop.permute.xlu0 %1173 }
0x17c4   :  { %v1176_v56 = vmul.f32 %v1174_v53, %v1162_v51 }
0x17c6   :  { %1178 = vrot.lane.b32.xlu0 %v1176_v56, %s5436_s23 }
0x1838   :  { %v1179_v59 = vpop.permute.xlu0 %1178 }
0x1839   :  { %v1181_v60 = vadd.f32 %v1179_v59, %v1171_v58 }
0x183b   :  { %5199 = vtanh.f32 %v1181_v60  ;;  %v1274_v23 = vrot.slane %v1181_v60, 7 }
0x1845   :  { %v5200_v61 = vpop.eup %5199 }
0x1846   :  { %1184 = vrot.lane.b32.xlu1 %v5200_v61, %s5435_s29 }
0x18b8   :  { %v1185_v62 = vpop.permute.xlu1 %1184 }
0x18b9   :  { %v5829_v0 = vmul.f32 %v1185_v62, %v1162_v51  ;;  %v1399_v51 = vrot.slane %v5815_v37, 1 }
0x18bb   :  { %1192 = vrot.lane.b32.xlu0 %v5829_v0, %s5436_s23  ;;  %v5895_v58 = vsel %vm5592_vm2, %v5815_v37, %v1399_v51 }
0x192d   :  { %v1193_v13 = vpop.permute.xlu0 %1192 }
0x192e   :  { %4655 = vmatmul.mubr.msk.f32.vlgmr.msra.gmra.mrb[10].mxu0 %vm147_vm1, %v1193_v13 }
0x192f   :  { %5006 = vmatpush3.bf16.msra.mxu0 %v5765_v4  ;;  %4676 = vmatprep.mubr.msk.f32.mxu0 %vm5432_vm0, %v5433_v6 }
0x1930   :  { %5007 = vmatprep.subr.bf16.mxu0 %v5431_v3 }
0x1933   :  { %5009 = vmatpush3.bf16.msra.mxu0 %v5770_v7 }
0x1934   :  { %5016 = vmatprep.subr.bf16.mxu0 %v5431_v3 }
0x1a01   :  { %v1262_v1 = vpop.f32.mrb[10].mxu0 }
0x1a02   :  { %v1267_v2 = vrot.slane %v1262_v1, 7  ;;  %v4656_v5 = vpop.f32.mrb[11].mxu0 }
0x1a04   :  { %v1269_v11 = vadd.f32 %v1267_v2, %v5844_v8 }
0x1a06   :  { %5201 = vtanh.f32 %v1269_v11 }
0x1a10   :  { %v5202_v15 = vpop.eup %5201 }
0x1a11   :  { %v1271_v17 = vmul.f32 %v5202_v15, %v5606_v20 }
0x1a13   :  { %v1272_v18 = vadd.f32 %v1271_v17, %v5608_v22 }
0x1a15   :  { %1278 = vrot.lane.b32.xlu1 %v1272_v18, %s5435_s29  ;;  %v1276_v24 = vmul.f32 %v1274_v23, %v1272_v18 }
0x1a87   :  { %v1279_v19 = vpop.permute.xlu1 %1278 }
0x1a88   :  { %v1281_v21 = vmul.f32 %v1279_v19, %v1272_v18 }
0x1a8a   :  { %1283 = vrot.lane.b32.xlu0 %v1281_v21, %s5436_s23 }
0x1afc   :  { %v1284_v54 = vpop.permute.xlu0 %1283 }
0x1afd   :  { %v1286_v55 = vadd.f32 %v1284_v54, %v1276_v24 }
0x1aff   :  { %5203 = vtanh.f32 %v1286_v55  ;;  %v1380_v39 = vrot.slane %v1286_v55, 7 }
0x1b09   :  { %v5204_v26 = vpop.eup %5203 }
0x1b0a   :  { %1289 = vrot.lane.b32.xlu1 %v5204_v26, %s5435_s29 }
0x1b7c   :  { %v1290_v27 = vpop.permute.xlu1 %1289 }
0x1b7d   :  { %v5852_v28 = vmul.f32 %v1290_v27, %v1272_v18 }
0x1b7f   :  { %v1297_v29 = vrot.slane %v5852_v28, 1  ;;  %v1917_v46 = vsel %vm944_vm6, %v5829_v0, %v5852_v28 }
0x1b81   :  { %1298 = vrot.lane.b32.xlu0 %v1297_v29, %s5436_s23 }
0x1bf3   :  { %v1299_v30 = vpop.permute.xlu0 %1298 }
0x1bf4   :  { %4666 = vmatmul.mubr.msk.f32.vlgmr.msra.gmra.mrb[10].mxu1 %vm147_vm1, %v1299_v30 }
0x1bf5   :  { %5012 = vmatpush3.bf16.msra.mxu1 %v5765_v4  ;;  %4687 = vmatprep.mubr.msk.f32.mxu1 %vm5432_vm0, %v5433_v6 }
0x1bf6   :  { %5013 = vmatprep.subr.bf16.mxu1 %v5431_v3 }
0x1bf9   :  { %5015 = vmatpush3.bf16.msra.mxu1 %v5770_v7 }
0x1bfa   :  { %5022 = vmatprep.subr.bf16.mxu1 %v5431_v3 }
0x1cc7   :  { %v1368_v25 = vpop.f32.mrb[10].mxu1 }
0x1cc8   :  { %v1373_v63 = vrot.slane %v1368_v25, 6  ;;  %v4667_v32 = vpop.f32.mrb[11].mxu1 }
0x1cca   :  { %v1375_v33 = vadd.f32 %v1373_v63, %v5867_v42 }
0x1ccc   :  { %5205 = vtanh.f32 %v1375_v33 }
0x1cd6   :  { %v5206_v35 = vpop.eup %5205 }
0x1cd7   :  { %v1377_v38 = vmul.f32 %v5206_v35, %v5606_v20 }
0x1cd9   :  { %v1378_v16 = vadd.f32 %v1377_v38, %v5608_v22 }
0x1cdb   :  { %1384 = vrot.lane.b32.xlu1 %v1378_v16, %s5435_s29  ;;  %v1382_v40 = vmul.f32 %v1380_v39, %v1378_v16 }
0x1d4d   :  { %v1385_v52 = vpop.permute.xlu1 %1384 }
0x1d4e   :  { %v1387_v34 = vmul.f32 %v1385_v52, %v1378_v16 }
0x1d50   :  { %1389 = vrot.lane.b32.xlu0 %v1387_v34, %s5436_s23 }
0x1dc2   :  { %v1390_v41 = vpop.permute.xlu0 %1389 }
0x1dc3   :  { %v1392_v43 = vadd.f32 %v1390_v41, %v1382_v40 }
0x1dc5   :  { %5207 = vtanh.f32 %v1392_v43  ;;  %v1486_v1 = vrot.slane %v1392_v43, 7 }
0x1dcf   :  { %v5208_v44 = vpop.eup %5207 }
0x1dd0   :  { %1395 = vrot.lane.b32.xlu1 %v5208_v44, %s5435_s29 }
0x1e42   :  { %v1396_v36 = vpop.permute.xlu1 %1395 }
0x1e43   :  { %v5875_v45 = vmul.f32 %v1396_v36, %v1378_v16 }
0x1e45   :  { %v1918_v48 = vsel %vm946_vm7, %v1917_v46, %v5875_v45  ;;  %v1403_v49 = vrot.slane %v5875_v45, 2 }
0x1e47   :  { %1404 = vrot.lane.b32.xlu0 %v1403_v49, %s5436_s23 }
0x1eb9   :  { %v1405_v50 = vpop.permute.xlu0 %1404 }
0x1eba   :  { %4677 = vmatmul.mubr.msk.f32.vlgmr.msra.gmra.mrb[12].mxu0 %vm147_vm1, %v1405_v50 }
0x1ebb   :  { %5018 = vmatpush3.bf16.msra.mxu0 %v5765_v4  ;;  %4698 = vmatprep.mubr.msk.f32.mxu0 %vm5432_vm0, %v5433_v6 }
0x1ebc   :  { %5019 = vmatprep.subr.bf16.mxu0 %v5431_v3 }
0x1ebf   :  { %5021 = vmatpush3.bf16.msra.mxu0 %v5770_v7 }
0x1ec0   :  { %5028 = vmatprep.subr.bf16.mxu0 %v5431_v3 }
0x1f8d   :  { %v1474_v53 = vpop.f32.mrb[12].mxu0 }
0x1f8e   :  { %v1479_v56 = vrot.slane %v1474_v53, 5  ;;  %v4678_v57 = vpop.f32.mrb[13].mxu0 }
0x1f90   :  { %v1481_v59 = vadd.f32 %v1479_v56, %v5895_v58 }
0x1f92   :  { %5209 = vtanh.f32 %v1481_v59 }
0x1f9c   :  { %v5210_v60 = vpop.eup %5209 }
0x1f9d   :  { %v1483_v61 = vmul.f32 %v5210_v60, %v5606_v20 }
0x1f9f   :  { %v1484_v62 = vadd.f32 %v1483_v61, %v5608_v22 }
0x1fa1   :  { %1490 = vrot.lane.b32.xlu1 %v1484_v62, %s5435_s29  ;;  %v1488_v2 = vmul.f32 %v1486_v1, %v1484_v62 }
0x2013   :  { %v1491_v13 = vpop.permute.xlu1 %1490 }
0x2014   :  { %v1493_v14 = vmul.f32 %v1491_v13, %v1484_v62 }
0x2016   :  { %1495 = vrot.lane.b32.xlu0 %v1493_v14, %s5436_s23 }
0x2088   :  { %v1496_v5 = vpop.permute.xlu0 %1495 }
0x2089   :  { %v1498_v11 = vadd.f32 %v1496_v5, %v1488_v2 }
0x208b   :  { %5211 = vtanh.f32 %v1498_v11  ;;  %v1589_v25 = vrot.slane %v1498_v11, 7 }
0x2095   :  { %v5212_v37 = vpop.eup %5211 }
0x2096   :  { %1501 = vrot.lane.b32.xlu1 %v5212_v37, %s5435_s29 }
0x2108   :  { %v1502_v15 = vpop.permute.xlu1 %1501 }
0x2109   :  { %v5903_v17 = vmul.f32 %v1502_v15, %v1484_v62 }
0x210b   :  { %v1919_v18 = vsel %vm948_vm8, %v1918_v48, %v5903_v17  ;;  %v1506_v19 = vrot.slane %v5903_v17, 3 }
0x210d   :  { %1507 = vrot.lane.b32.xlu0 %v1506_v19, %s5436_s23 }
0x217f   :  { %v1508_v21 = vpop.permute.xlu0 %1507 }
0x2180   :  { %4688 = vmatmul.mubr.msk.f32.vlgmr.msra.gmra.mrb[12].mxu1 %vm147_vm1, %v1508_v21 }
0x2181   :  { %5024 = vmatpush3.bf16.msra.mxu1 %v5765_v4  ;;  %4709 = vmatprep.mubr.msk.f32.mxu1 %vm5432_vm0, %v5433_v6 }
0x2182   :  { %5025 = vmatprep.subr.bf16.mxu1 %v5431_v3 }
0x2185   :  { %5027 = vmatpush3.bf16.msra.mxu1 %v5770_v7 }
0x2186   :  { %5034 = vmatprep.subr.bf16.mxu1 %v5431_v3 }
0x2253   :  { %v1577_v23 = vpop.f32.mrb[12].mxu1 }
0x2254   :  { %v1582_v24 = vrot.slane %v1577_v23, 4  ;;  %v4689_v54 = vpop.f32.mrb[13].mxu1 }
0x2256   :  { %v1584_v55 = vadd.f32 %v1582_v24, %v5821_v47 }
0x2258   :  { %5213 = vtanh.f32 %v1584_v55 }
0x2262   :  { %v5214_v26 = vpop.eup %5213 }
0x2263   :  { %v1586_v27 = vmul.f32 %v5214_v26, %v5606_v20 }
0x2265   :  { %v1587_v29 = vadd.f32 %v1586_v27, %v5608_v22 }
0x2267   :  { %1593 = vrot.lane.b32.xlu1 %v1587_v29, %s5435_s29  ;;  %v1591_v63 = vmul.f32 %v1589_v25, %v1587_v29 }
0x22d9   :  { %v1594_v30 = vpop.permute.xlu1 %1593 }
0x22da   :  { %v1596_v31 = vmul.f32 %v1594_v30, %v1587_v29 }
0x22dc   :  { %1598 = vrot.lane.b32.xlu0 %v1596_v31, %s5436_s23 }
0x234e   :  { %v1599_v32 = vpop.permute.xlu0 %1598 }
0x234f   :  { %v1601_v33 = vadd.f32 %v1599_v32, %v1591_v63 }
0x2351   :  { %5215 = vtanh.f32 %v1601_v33 }
0x235b   :  { %v5216_v35 = vpop.eup %5215 }
0x235c   :  { %1604 = vrot.lane.b32.xlu1 %v5216_v35, %s5435_s29 }
0x23ce   :  { %v1605_v47 = vpop.permute.xlu1 %1604 }
0x23cf   :  { %v5922_v38 = vmul.f32 %v1605_v47, %v1587_v29 }
0x23d1   :  { %v1920_v16 = vsel %vm950_vm9, %v1919_v18, %v5922_v38  ;;  %v1609_v52 = vrot.slane %v5922_v38, 4 }
0x23d3   :  { %1610 = vrot.lane.b32.xlu0 %v1609_v52, %s5436_s23 }
0x2445   :  { %v1611_v34 = vpop.permute.xlu0 %1610 }
0x2446   :  { %4699 = vmatmul.mubr.msk.f32.vlgmr.msra.gmra.mrb[14].mxu0 %vm147_vm1, %v1611_v34 }
0x2447   :  { %5030 = vmatpush3.bf16.msra.mxu0 %v5765_v4  ;;  %4720 = vmatprep.mubr.msk.f32.mxu0 %vm5432_vm0, %v5433_v6 }
0x2448   :  { %5031 = vmatprep.subr.bf16.mxu0 %v5431_v3 }
0x244b   :  { %5033 = vmatpush3.bf16.msra.mxu0 %v5770_v7  ;;  %v1692_v7 = vrot.slane %v1601_v33, 7 }
0x244c   :  { %5040 = vmatprep.subr.bf16.mxu0 %v5431_v3 }
0x2519   :  { %v1680_v39 = vpop.f32.mrb[14].mxu0 }
0x251a   :  { %v1685_v40 = vrot.slane %v1680_v39, 3  ;;  %v4700_v41 = vpop.f32.mrb[15].mxu0 }
0x251b   :  { %v1960_v41 = vld [vmem:[#allocation7 + $0x30] sm:$0xff] }
0x251c   :  { %v1687_v43 = vadd.f32 %v1685_v40, %v5844_v8  ;;  %v1959_v40 = vld [vmem:[#allocation7 + $0x28] sm:$0xff] }
0x251e   :  { %5217 = vtanh.f32 %v1687_v43 }
0x2528   :  { %v5218_v44 = vpop.eup %5217 }
0x2529   :  { %v1689_v36 = vmul.f32 %v5218_v44, %v5606_v20  ;;  %v1961_v44 = vld [vmem:[#allocation7 + $0x38] sm:$0xff] }
0x252b   :  { %v1690_v4 = vadd.f32 %v1689_v36, %v5608_v22  ;;  %v2044_v36 = vld [vmem:[#allocation9 + $0x40] sm:$0xff] }
0x252d   :  { %1696 = vrot.lane.b32.xlu1 %v1690_v4, %s5435_s29  ;;  %v1694_v49 = vmul.f32 %v1692_v7, %v1690_v4  ;;  %v2046_v7 = vld [vmem:[#allocation9 + $0x50] sm:$0xff] }
0x259f   :  { %v1697_v46 = vpop.permute.xlu1 %1696 }
0x25a0   :  { %v1699_v48 = vmul.f32 %v1697_v46, %v1690_v4 }
0x25a2   :  { %1701 = vrot.lane.b32.xlu0 %v1699_v48, %s5436_s23  ;;  %v5038_v48 = vpack.c.bf16 %v1961_v44, %v1960_v41 }
0x2614   :  { %v1702_v50 = vpop.permute.xlu0 %1701 }
0x2615   :  { %v1704_v51 = vadd.f32 %v1702_v50, %v1694_v49  ;;  %v2047_v49 = vld [vmem:[#allocation9 + $0x58] sm:$0xff] }
0x2616   :  { %v5973_v50 = vpack.c.bf16 %v2047_v49, %v2046_v7 }
0x2617   :  { %5219 = vtanh.f32 %v1704_v51  ;;  %v1795_v15 = vrot.slane %v1704_v51, 7 }
0x2621   :  { %v5220_v53 = vpop.eup %5219 }
0x2622   :  { %1707 = vrot.lane.b32.xlu1 %v5220_v53, %s5435_s29 }
0x2694   :  { %v1708_v8 = vpop.permute.xlu1 %1707 }
0x2695   :  { %v5941_v56 = vmul.f32 %v1708_v8, %v1690_v4  ;;  %v2045_v4 = vld [vmem:[#allocation9 + $0x48] sm:$0xff] }
0x2696   :  { %v5967_v46 = vpack.c.bf16 %v2045_v4, %v2044_v36  ;;  %v4328_v8 = vld [vmem:[%s6628_s5 + $0x2] sm:$0x1] }
0x2697   :  { %v1921_v57 = vsel %vm952_vm10, %v1920_v16, %v5941_v56  ;;  %v1712_v59 = vrot.slane %v5941_v56, 5 }
0x2699   :  { %1713 = vrot.lane.b32.xlu0 %v1712_v59, %s5436_s23 }
0x270b   :  { %v1714_v60 = vpop.permute.xlu0 %1713 }
0x270c   :  { %4710 = vmatmul.mubr.msk.f32.vlgmr.msra.gmra.mrb[14].mxu1 %vm147_vm1, %v1714_v60 }
0x270d   :  { %4731 = vmatprep.mubr.msk.f32.mxu1 %vm5432_vm0, %v5433_v6 }
0x27df   :  { %v1783_v61 = vpop.f32.mrb[14].mxu1 }
0x27e0   :  { %v1788_v62 = vrot.slane %v1783_v61, 2  ;;  %v4711_v13 = vpop.f32.mrb[15].mxu1  ;;  %v1929_v61 = vrot.slane %v5941_v56, 3  ;;  %v1935_v56 = vrot.slane %v5875_v45, 5 }
0x27e2   :  { %v1790_v14 = vadd.f32 %v1788_v62, %v5867_v42  ;;  %v1931_v62 = vrot.slane %v5922_v38, 1 }
0x27e4   :  { %5221 = vtanh.f32 %v1790_v14  ;;  %v1933_v14 = vrot.slane %v5903_v17, 7 }
0x27ee   :  { %v5222_v1 = vpop.eup %5221 }
0x27ef   :  { %v1792_v2 = vmul.f32 %v5222_v1, %v5606_v20 }
0x27f1   :  { %v1793_v5 = vadd.f32 %v1792_v2, %v5608_v22 }
0x27f3   :  { %1799 = vrot.lane.b32.xlu1 %v1793_v5, %s5435_s29  ;;  %v1797_v18 = vmul.f32 %v1795_v15, %v1793_v5 }
0x2865   :  { %v1800_v11 = vpop.permute.xlu1 %1799 }
0x2866   :  { %v1802_v37 = vmul.f32 %v1800_v11, %v1793_v5  ;;  %v1939_v11 = vrot.slane %v5829_v0, 1 }
0x2868   :  { %1804 = vrot.lane.b32.xlu0 %v1802_v37, %s5436_s23 }
0x28da   :  { %v1805_v19 = vpop.permute.xlu0 %1804 }
0x28db   :  { %v1807_v21 = vadd.f32 %v1805_v19, %v1797_v18 }
0x28dd   :  { %5223 = vtanh.f32 %v1807_v21  ;;  %v1898_v47 = vrot.slane %v1807_v21, 7 }
0x28e7   :  { %v5224_v23 = vpop.eup %5223 }
0x28e8   :  { %1810 = vrot.lane.b32.xlu1 %v5224_v23, %s5435_s29  ;;  %v4326_v23 = vld [vmem:[%s6627_s4 + $0x1] ss:$0 sm:$0xff] }
0x295a   :  { %v1811_v42 = vpop.permute.xlu1 %1810 }
0x295b   :  { %v1813_v24 = vmul.f32 %v1811_v42, %v1793_v5  ;;  %v1937_v5 = vrot.slane %v5852_v28, 3  ;;  %v4331_v28 = vld [vmem:[%s6629_s6 + $0x2] ss:$0 sm:$0xff] }
0x295d   :  { %v1815_v54 = vrot.slane %v1813_v24, 6  ;;  %v1922_v55 = vsel %vm954_vm11, %v1921_v57, %v1813_v24  ;;  %v1927_v57 = vrot.slane %v1813_v24, 5 }
0x295f   :  { %1816 = vrot.lane.b32.xlu0 %v1815_v54, %s5436_s23 }
0x29d1   :  { %v1817_v26 = vpop.permute.xlu0 %1816 }
0x29d2   :  { %4721 = vmatmul.mubr.msk.f32.vlgmr.msra.gmra.mrb[16].mxu0 %vm147_vm1, %v1817_v26 }
0x29d3   :  { %4742 = vmatprep.mubr.msk.f32.mxu0 %vm5432_vm0, %v5433_v6  ;;  %5042 = vmatpush3.bf16.msra.mxu0 %v5967_v46 }
0x29d4   :  { %5043 = vmatprep.subr.bf16.mxu0 %v5431_v3 }
0x29d7   :  { %5045 = vmatpush3.bf16.msra.mxu0 %v5973_v50 }
0x29d8   :  { %5052 = vmatprep.subr.bf16.mxu0 %v5431_v3 }
0x29da   :  { %4743 = vmatmul.mubr.msk.f32.vlgmr.msra.gmra.mrb[18].mxu0 %vm147_vm1, %v4328_v8 }
0x29db   :  { %5054 = vmatpush3.bf16.msra.mxu0 %v5967_v46  ;;  %4764 = vmatprep.mubr.msk.f32.mxu0 %vm5432_vm0, %v5433_v6 }
0x29dc   :  { %5055 = vmatprep.subr.bf16.mxu0 %v5431_v3 }
0x29df   :  { %5057 = vmatpush3.bf16.msra.mxu0 %v5973_v50 }
0x29e0   :  { %5064 = vmatprep.subr.bf16.mxu0 %v5431_v3 }
0x2aa5   :  { %v1886_v27 = vpop.f32.mrb[16].mxu0 }
0x2aa6   :  { %v1891_v29 = vrot.slane %v1886_v27, 1  ;;  %v4722_v30 = vpop.f32.mrb[17].mxu0 }
0x2aa8   :  { %v1893_v31 = vadd.f32 %v1891_v29, %v5895_v58  ;;  %v1958_v58 = vld [vmem:[#allocation7 + $0x20] sm:$0xff] }
0x2aa9   :  { %v5035_v43 = vpack.c.bf16 %v1959_v40, %v1958_v58 }
0x2aaa   :  { %5225 = vtanh.f32 %v1893_v31 }
0x2aab   :  { %5036 = vmatpush3.bf16.msra.mxu1 %v5035_v43 }
0x2aac   :  { %5037 = vmatprep.subr.bf16.mxu1 %v5431_v3 }
0x2aad   :  { %v2125_v19 = vpop.f32.mrb[18].mxu0 }
0x2aae   :  { %v4744_v21 = vpop.f32.mrb[19].mxu0 }
0x2aaf   :  { %5039 = vmatpush3.bf16.msra.mxu1 %v5038_v48 }
0x2ab0   :  { %5046 = vmatprep.subr.bf16.mxu1 %v5431_v3 }
0x2ab4   :  { %v5226_v25 = vpop.eup %5225 }
0x2ab5   :  { %v1895_v63 = vmul.f32 %v5226_v25, %v5606_v20 }
0x2ab7   :  { %v1896_v32 = vadd.f32 %v1895_v63, %v5608_v22 }
0x2ab9   :  { %1902 = vrot.lane.b32.xlu1 %v1896_v32, %s5435_s29  ;;  %v1900_v16 = vmul.f32 %v1898_v47, %v1896_v32 }
0x2b2b   :  { %v1903_v33 = vpop.permute.xlu1 %1902 }
0x2b2c   :  { %v1905_v35 = vmul.f32 %v1903_v33, %v1896_v32 }
0x2b2e   :  { %1907 = vrot.lane.b32.xlu0 %v1905_v35, %s5436_s23 }
0x2ba0   :  { %v1908_v52 = vpop.permute.xlu0 %1907 }
0x2ba1   :  { %v1910_v34 = vadd.f32 %v1908_v52, %v1900_v16 }
0x2ba3   :  { %5227 = vtanh.f32 %v1910_v34 }
0x2bad   :  { %v5228_v39 = vpop.eup %5227 }
0x2bae   :  { %1913 = vrot.lane.b32.xlu1 %v5228_v39, %s5435_s29 }
0x2c20   :  { %v1914_v51 = vpop.permute.xlu1 %1913 }
0x2c21   :  { %v1916_v53 = vmul.f32 %v1914_v51, %v1896_v32 }
0x2c23   :  { %v1925_v59 = vrot.slane %v1916_v53, 7  ;;  %v1923_v60 = vsel %vm956_vm12, %v1922_v55, %v1916_v53 }
0x2c24   :  { %1949 = vrot.lane.b32.xlu0 %v1923_v60, %s5436_s23 }
0x2c25   :  { %v1941_v13 = vsel %vm944_vm6, %v1925_v59, %v1927_v57 }
0x2c26   :  { %v1942_v1 = vsel %vm946_vm7, %v1941_v13, %v1929_v61 }
0x2c27   :  { %v1943_v2 = vsel %vm948_vm8, %v1942_v1, %v1931_v62 }
0x2c28   :  { %v1944_v38 = vsel %vm950_vm9, %v1943_v2, %v1933_v14 }
0x2c29   :  { %v1945_v37 = vsel %vm952_vm10, %v1944_v38, %v1935_v56 }
0x2c2a   :  { %v1946_v17 = vsel %vm954_vm11, %v1945_v37, %v1937_v5 }
0x2c2b   :  { %v1947_v15 = vsel %vm956_vm12, %v1946_v17, %v1939_v11 }
0x2c2c   :  { %1953 = vrot.lane.b32.xlu1 %v1947_v15, %s5436_s23 }
0x2c30   :  { %2138 = vrot.lane.b32.xlu1 %v4331_v28, %s5436_s23 }
0x2c96   :  { %v1950_v45 = vpop.permute.xlu0 %1949 }
0x2c9e   :  { %v1954_v0 = vpop.permute.xlu1 %1953 }
0x2c9f   :  { %v1956_v18 = vsel %vm987_vm13, %v1950_v45, %v1954_v0 }
0x2ca0   :  { %4732 = vmatmul.mubr.msk.f32.vlgmr.msra.gmra.mrb[16].mxu1 %vm147_vm1, %v1956_v18 }
0x2ca1   :  { %5048 = vmatpush3.bf16.msra.mxu1 %v5967_v46  ;;  %4753 = vmatprep.mubr.msk.f32.mxu1 %vm5432_vm0, %v5433_v6 }
0x2ca2   :  { %5049 = vmatprep.subr.bf16.mxu1 %v5431_v3  ;;  %v2139_v32 = vpop.permute.xlu1 %2138 }
0x2ca5   :  { %5051 = vmatpush3.bf16.msra.mxu1 %v5973_v50 }
0x2ca6   :  { %5058 = vmatprep.subr.bf16.mxu1 %v5431_v3 }
0x2d73   :  { %v2039_v42 = vpop.f32.mrb[16].mxu1 }
0x2d74   :  { %v6018_v24 = vadd.f32 %v4326_v23, %v2039_v42  ;;  %v4733_v54 = vpop.f32.mrb[17].mxu1 }
0x2d76   :  { %v2053_v55 = vrot.slane %v6018_v24, 7  ;;  %v2158_v58 = vrot.slane %v6018_v24, 5  ;;  %v2263_v1 = vrot.slane %v6018_v24, 3 }
0x2d78   :  { %v6024_v26 = vsel %vm5592_vm2, %v6018_v24, %v2053_v55  ;;  %v6047_v44 = vsel %vm5592_vm2, %v6018_v24, %v2158_v58  ;;  %v6070_v38 = vsel %vm5592_vm2, %v6018_v24, %v2263_v1 }
0x2d79   :  { %v2129_v27 = vadd.f32 %v2125_v19, %v6024_v26 }
0x2d7b   :  { %5229 = vtanh.f32 %v2129_v27 }
0x2d85   :  { %v5230_v29 = vpop.eup %5229 }
0x2d86   :  { %v2131_v30 = vmul.f32 %v5230_v29, %v5606_v20 }
0x2d88   :  { %v2132_v31 = vadd.f32 %v2131_v30, %v5608_v22 }
0x2d8a   :  { %2143 = vrot.lane.b32.xlu0 %v2132_v31, %s5435_s29  ;;  %v2141_v33 = vmul.f32 %v2139_v32, %v2132_v31 }
0x2dfc   :  { %v2144_v25 = vpop.permute.xlu0 %2143 }
0x2dfd   :  { %v2146_v63 = vmul.f32 %v2144_v25, %v2132_v31 }
0x2dff   :  { %2148 = vrot.lane.b32.xlu0 %v2146_v63, %s5436_s23 }
0x2e71   :  { %v2149_v35 = vpop.permute.xlu0 %2148 }
0x2e72   :  { %v2151_v47 = vadd.f32 %v2149_v35, %v2141_v33 }
0x2e74   :  { %5231 = vtanh.f32 %v2151_v47  ;;  %v2244_v53 = vrot.slane %v2151_v47, 7 }
0x2e7e   :  { %v5232_v16 = vpop.eup %5231 }
0x2e7f   :  { %2154 = vrot.lane.b32.xlu1 %v5232_v16, %s5435_s29 }
0x2ef1   :  { %v2155_v52 = vpop.permute.xlu1 %2154 }
0x2ef2   :  { %v6032_v34 = vmul.f32 %v2155_v52, %v2132_v31  ;;  %v2369_v31 = vrot.slane %v6018_v24, 1 }
0x2ef4   :  { %2162 = vrot.lane.b32.xlu0 %v6032_v34, %s5436_s23  ;;  %v6098_v33 = vsel %vm5592_vm2, %v6018_v24, %v2369_v31 }
0x2f66   :  { %v2163_v39 = vpop.permute.xlu0 %2162 }
0x2f67   :  { %4754 = vmatmul.mubr.msk.f32.vlgmr.msra.gmra.mrb[18].mxu1 %vm147_vm1, %v2163_v39 }
0x2f68   :  { %5060 = vmatpush3.bf16.msra.mxu1 %v5967_v46  ;;  %4775 = vmatprep.mubr.msk.f32.mxu1 %vm5432_vm0, %v5433_v6 }
0x2f69   :  { %5061 = vmatprep.subr.bf16.mxu1 %v5431_v3 }
0x2f6c   :  { %5063 = vmatpush3.bf16.msra.mxu1 %v5973_v50 }
0x2f6d   :  { %5070 = vmatprep.subr.bf16.mxu1 %v5431_v3 }
0x303a   :  { %v2232_v40 = vpop.f32.mrb[18].mxu1 }
0x303b   :  { %v2237_v41 = vrot.slane %v2232_v40, 7  ;;  %v4755_v43 = vpop.f32.mrb[19].mxu1 }
0x303d   :  { %v2239_v36 = vadd.f32 %v2237_v41, %v6047_v44 }
0x303f   :  { %5233 = vtanh.f32 %v2239_v36 }
0x3049   :  { %v5234_v4 = vpop.eup %5233 }
0x304a   :  { %v2241_v48 = vmul.f32 %v5234_v4, %v5606_v20 }
0x304c   :  { %v2242_v7 = vadd.f32 %v2241_v48, %v5608_v22 }
0x304e   :  { %2248 = vrot.lane.b32.xlu1 %v2242_v7, %s5435_s29  ;;  %v2246_v8 = vmul.f32 %v2244_v53, %v2242_v7 }
0x30c0   :  { %v2249_v49 = vpop.permute.xlu1 %2248 }
0x30c1   :  { %v2251_v51 = vmul.f32 %v2249_v49, %v2242_v7 }
0x30c3   :  { %2253 = vrot.lane.b32.xlu0 %v2251_v51, %s5436_s23 }
0x3135   :  { %v2254_v57 = vpop.permute.xlu0 %2253 }
0x3136   :  { %v2256_v59 = vadd.f32 %v2254_v57, %v2246_v8 }
0x3138   :  { %5235 = vtanh.f32 %v2256_v59  ;;  %v2350_v0 = vrot.slane %v2256_v59, 7 }
0x3142   :  { %v5236_v60 = vpop.eup %5235 }
0x3143   :  { %2259 = vrot.lane.b32.xlu1 %v5236_v60, %s5435_s29 }
0x31b5   :  { %v2260_v61 = vpop.permute.xlu1 %2259 }
0x31b6   :  { %v6055_v62 = vmul.f32 %v2260_v61, %v2242_v7 }
0x31b8   :  { %v2267_v13 = vrot.slane %v6055_v62, 1  ;;  %v2887_v55 = vsel %vm944_vm6, %v6032_v34, %v6055_v62 }
0x31ba   :  { %2268 = vrot.lane.b32.xlu0 %v2267_v13, %s5436_s23 }
0x322c   :  { %v2269_v14 = vpop.permute.xlu0 %2268 }
0x322d   :  { %4765 = vmatmul.mubr.msk.f32.vlgmr.msra.gmra.mrb[20].mxu0 %vm147_vm1, %v2269_v14 }
0x322e   :  { %5066 = vmatpush3.bf16.msra.mxu0 %v5967_v46  ;;  %4786 = vmatprep.mubr.msk.f32.mxu0 %vm5432_vm0, %v5433_v6 }
0x322f   :  { %5067 = vmatprep.subr.bf16.mxu0 %v5431_v3 }
0x3232   :  { %5069 = vmatpush3.bf16.msra.mxu0 %v5973_v50 }
0x3233   :  { %5076 = vmatprep.subr.bf16.mxu0 %v5431_v3 }
0x3300   :  { %v2338_v56 = vpop.f32.mrb[20].mxu0 }
0x3301   :  { %v2343_v2 = vrot.slane %v2338_v56, 6  ;;  %v4766_v5 = vpop.f32.mrb[21].mxu0 }
0x3303   :  { %v2345_v11 = vadd.f32 %v2343_v2, %v6070_v38 }
0x3305   :  { %5237 = vtanh.f32 %v2345_v11 }
0x330f   :  { %v5238_v37 = vpop.eup %5237 }
0x3310   :  { %v2347_v17 = vmul.f32 %v5238_v37, %v5606_v20 }
0x3312   :  { %v2348_v15 = vadd.f32 %v2347_v17, %v5608_v22 }
0x3314   :  { %2354 = vrot.lane.b32.xlu1 %v2348_v15, %s5435_s29  ;;  %v2352_v18 = vmul.f32 %v2350_v0, %v2348_v15 }
0x3386   :  { %v2355_v28 = vpop.permute.xlu1 %2354 }
0x3387   :  { %v2357_v45 = vmul.f32 %v2355_v28, %v2348_v15 }
0x3389   :  { %2359 = vrot.lane.b32.xlu0 %v2357_v45, %s5436_s23 }
0x33fb   :  { %v2360_v19 = vpop.permute.xlu0 %2359 }
0x33fc   :  { %v2362_v21 = vadd.f32 %v2360_v19, %v2352_v18 }
0x33fe   :  { %5239 = vtanh.f32 %v2362_v21  ;;  %v2456_v40 = vrot.slane %v2362_v21, 7 }
0x3408   :  { %v5240_v23 = vpop.eup %5239 }
0x3409   :  { %2365 = vrot.lane.b32.xlu1 %v5240_v23, %s5435_s29 }
0x347b   :  { %v2366_v42 = vpop.permute.xlu1 %2365 }
0x347c   :  { %v6078_v54 = vmul.f32 %v2366_v42, %v2348_v15 }
0x347e   :  { %v2888_v27 = vsel %vm946_vm7, %v2887_v55, %v6078_v54  ;;  %v2373_v29 = vrot.slane %v6078_v54, 2 }
0x3480   :  { %2374 = vrot.lane.b32.xlu0 %v2373_v29, %s5436_s23 }
0x34f2   :  { %v2375_v30 = vpop.permute.xlu0 %2374 }
0x34f3   :  { %4776 = vmatmul.mubr.msk.f32.vlgmr.msra.gmra.mrb[20].mxu1 %vm147_vm1, %v2375_v30 }
0x34f4   :  { %5072 = vmatpush3.bf16.msra.mxu1 %v5967_v46  ;;  %4797 = vmatprep.mubr.msk.f32.mxu1 %vm5432_vm0, %v5433_v6 }
0x34f5   :  { %5073 = vmatprep.subr.bf16.mxu1 %v5431_v3 }
0x34f8   :  { %5075 = vmatpush3.bf16.msra.mxu1 %v5973_v50 }
0x34f9   :  { %5082 = vmatprep.subr.bf16.mxu1 %v5431_v3 }
0x35c6   :  { %v2444_v25 = vpop.f32.mrb[20].mxu1 }
0x35c7   :  { %v2449_v63 = vrot.slane %v2444_v25, 5  ;;  %v4777_v32 = vpop.f32.mrb[21].mxu1 }
0x35c9   :  { %v2451_v35 = vadd.f32 %v2449_v63, %v6098_v33 }
0x35cb   :  { %5241 = vtanh.f32 %v2451_v35 }
0x35d5   :  { %v5242_v47 = vpop.eup %5241 }
0x35d6   :  { %v2453_v16 = vmul.f32 %v5242_v47, %v5606_v20 }
0x35d8   :  { %v2454_v52 = vadd.f32 %v2453_v16, %v5608_v22 }
0x35da   :  { %2460 = vrot.lane.b32.xlu1 %v2454_v52, %s5435_s29  ;;  %v2458_v41 = vmul.f32 %v2456_v40, %v2454_v52 }
0x364c   :  { %v2461_v39 = vpop.permute.xlu1 %2460 }
0x364d   :  { %v2463_v58 = vmul.f32 %v2461_v39, %v2454_v52 }
0x364f   :  { %2465 = vrot.lane.b32.xlu0 %v2463_v58, %s5436_s23 }
0x36c1   :  { %v2466_v43 = vpop.permute.xlu0 %2465 }
0x36c2   :  { %v2468_v36 = vadd.f32 %v2466_v43, %v2458_v41 }
0x36c4   :  { %5243 = vtanh.f32 %v2468_v36  ;;  %v2559_v56 = vrot.slane %v2468_v36, 7 }
0x36ce   :  { %v5244_v24 = vpop.eup %5243 }
0x36cf   :  { %2471 = vrot.lane.b32.xlu1 %v5244_v24, %s5435_s29 }
0x3741   :  { %v2472_v4 = vpop.permute.xlu1 %2471 }
0x3742   :  { %v6106_v48 = vmul.f32 %v2472_v4, %v2454_v52 }
0x3744   :  { %v2889_v7 = vsel %vm948_vm8, %v2888_v27, %v6106_v48  ;;  %v2476_v49 = vrot.slane %v6106_v48, 3 }
0x3746   :  { %2477 = vrot.lane.b32.xlu0 %v2476_v49, %s5436_s23 }
0x37b8   :  { %v2478_v51 = vpop.permute.xlu0 %2477 }
0x37b9   :  { %4787 = vmatmul.mubr.msk.f32.vlgmr.msra.gmra.mrb[22].mxu0 %vm147_vm1, %v2478_v51 }
0x37ba   :  { %5078 = vmatpush3.bf16.msra.mxu0 %v5967_v46  ;;  %4808 = vmatprep.mubr.msk.f32.mxu0 %vm5432_vm0, %v5433_v6 }
0x37bb   :  { %5079 = vmatprep.subr.bf16.mxu0 %v5431_v3 }
0x37be   :  { %5081 = vmatpush3.bf16.msra.mxu0 %v5973_v50 }
0x37bf   :  { %5088 = vmatprep.subr.bf16.mxu0 %v5431_v3 }
0x388c   :  { %v2547_v53 = vpop.f32.mrb[22].mxu0 }
0x388d   :  { %v2552_v8 = vrot.slane %v2547_v53, 4  ;;  %v4788_v57 = vpop.f32.mrb[23].mxu0 }
0x388f   :  { %v2554_v59 = vadd.f32 %v2552_v8, %v6024_v26 }
0x3891   :  { %5245 = vtanh.f32 %v2554_v59 }
0x389b   :  { %v5246_v60 = vpop.eup %5245 }
0x389c   :  { %v2556_v61 = vmul.f32 %v5246_v60, %v5606_v20 }
0x389e   :  { %v2557_v13 = vadd.f32 %v2556_v61, %v5608_v22 }
0x38a0   :  { %2563 = vrot.lane.b32.xlu1 %v2557_v13, %s5435_s29  ;;  %v2561_v2 = vmul.f32 %v2559_v56, %v2557_v13 }
0x3912   :  { %v2564_v14 = vpop.permute.xlu1 %2563 }
0x3913   :  { %v2566_v1 = vmul.f32 %v2564_v14, %v2557_v13 }
0x3915   :  { %2568 = vrot.lane.b32.xlu0 %v2566_v1, %s5436_s23 }
0x3987   :  { %v2569_v5 = vpop.permute.xlu0 %2568 }
0x3988   :  { %v2571_v11 = vadd.f32 %v2569_v5, %v2561_v2 }
0x398a   :  { %5247 = vtanh.f32 %v2571_v11 }
0x3994   :  { %v5248_v37 = vpop.eup %5247 }
0x3995   :  { %2574 = vrot.lane.b32.xlu1 %v5248_v37, %s5435_s29 }
0x3a07   :  { %v2575_v26 = vpop.permute.xlu1 %2574 }
0x3a08   :  { %v6125_v17 = vmul.f32 %v2575_v26, %v2557_v13 }
0x3a0a   :  { %v2890_v15 = vsel %vm950_vm9, %v2889_v7, %v6125_v17  ;;  %v2579_v28 = vrot.slane %v6125_v17, 4 }
0x3a0c   :  { %2580 = vrot.lane.b32.xlu0 %v2579_v28, %s5436_s23 }
0x3a7e   :  { %v2581_v45 = vpop.permute.xlu0 %2580 }
0x3a7f   :  { %4798 = vmatmul.mubr.msk.f32.vlgmr.msra.gmra.mrb[22].mxu1 %vm147_vm1, %v2581_v45 }
0x3a80   :  { %5084 = vmatpush3.bf16.msra.mxu1 %v5967_v46  ;;  %4819 = vmatprep.mubr.msk.f32.mxu1 %vm5432_vm0, %v5433_v6 }
0x3a81   :  { %5085 = vmatprep.subr.bf16.mxu1 %v5431_v3 }
0x3a84   :  { %5087 = vmatpush3.bf16.msra.mxu1 %v5973_v50  ;;  %v2662_v50 = vrot.slane %v2571_v11, 7 }
0x3a85   :  { %5094 = vmatprep.subr.bf16.mxu1 %v5431_v3 }
0x3b52   :  { %v2650_v0 = vpop.f32.mrb[22].mxu1 }
0x3b53   :  { %v2655_v18 = vrot.slane %v2650_v0, 3  ;;  %v4799_v19 = vpop.f32.mrb[23].mxu1 }
0x3b54   :  { %v2930_v19 = vld [vmem:[#allocation7 + $0x50] sm:$0xff] }
0x3b55   :  { %v2657_v21 = vadd.f32 %v2655_v18, %v6047_v44  ;;  %v2929_v18 = vld [vmem:[#allocation7 + $0x48] sm:$0xff] }
0x3b57   :  { %5249 = vtanh.f32 %v2657_v21 }
0x3b61   :  { %v5250_v23 = vpop.eup %5249 }
0x3b62   :  { %v2659_v42 = vmul.f32 %v5250_v23, %v5606_v20  ;;  %v2931_v23 = vld [vmem:[#allocation7 + $0x58] sm:$0xff] }
0x3b64   :  { %v2660_v46 = vadd.f32 %v2659_v42, %v5608_v22  ;;  %v3014_v42 = vld [vmem:[#allocation9 + $0x60] sm:$0xff] }
0x3b66   :  { %2666 = vrot.lane.b32.xlu1 %v2660_v46, %s5435_s29  ;;  %v2664_v29 = vmul.f32 %v2662_v50, %v2660_v46  ;;  %v3016_v50 = vld [vmem:[#allocation9 + $0x70] sm:$0xff] }
0x3bd8   :  { %v2667_v55 = vpop.permute.xlu1 %2666 }
0x3bd9   :  { %v2669_v27 = vmul.f32 %v2667_v55, %v2660_v46 }
0x3bdb   :  { %2671 = vrot.lane.b32.xlu0 %v2669_v27, %s5436_s23  ;;  %v5092_v27 = vpack.c.bf16 %v2931_v23, %v2930_v19 }
0x3c4d   :  { %v2672_v30 = vpop.permute.xlu0 %2671 }
0x3c4e   :  { %v2674_v31 = vadd.f32 %v2672_v30, %v2664_v29  ;;  %v3017_v29 = vld [vmem:[#allocation9 + $0x78] sm:$0xff] }
0x3c4f   :  { %v6176_v30 = vpack.c.bf16 %v3017_v29, %v3016_v50 }
0x3c50   :  { %5251 = vtanh.f32 %v2674_v31  ;;  %v2765_v4 = vrot.slane %v2674_v31, 7 }
0x3c5a   :  { %v5252_v25 = vpop.eup %5251 }
0x3c5b   :  { %2677 = vrot.lane.b32.xlu1 %v5252_v25, %s5435_s29 }
0x3ccd   :  { %v2678_v44 = vpop.permute.xlu1 %2677 }
0x3cce   :  { %v6144_v63 = vmul.f32 %v2678_v44, %v2660_v46  ;;  %v3015_v46 = vld [vmem:[#allocation9 + $0x68] sm:$0xff] }
0x3ccf   :  { %v6170_v55 = vpack.c.bf16 %v3015_v46, %v3014_v42  ;;  %v4342_v44 = vld [vmem:[%s6628_s5 + $0x3] sm:$0x1] }
0x3cd0   :  { %v2891_v32 = vsel %vm952_vm10, %v2890_v15, %v6144_v63  ;;  %v2682_v35 = vrot.slane %v6144_v63, 5 }
0x3cd2   :  { %2683 = vrot.lane.b32.xlu0 %v2682_v35, %s5436_s23 }
0x3d44   :  { %v2684_v47 = vpop.permute.xlu0 %2683 }
0x3d45   :  { %4809 = vmatmul.mubr.msk.f32.vlgmr.msra.gmra.mrb[24].mxu0 %vm147_vm1, %v2684_v47 }
0x3d46   :  { %4830 = vmatprep.mubr.msk.f32.mxu0 %vm5432_vm0, %v5433_v6 }
0x3e18   :  { %v2753_v16 = vpop.f32.mrb[24].mxu0 }
0x3e19   :  { %v2758_v52 = vrot.slane %v2753_v16, 2  ;;  %v4810_v39 = vpop.f32.mrb[25].mxu0  ;;  %v2899_v16 = vrot.slane %v6144_v63, 3  ;;  %v2905_v63 = vrot.slane %v6078_v54, 5 }
0x3e1b   :  { %v2760_v58 = vadd.f32 %v2758_v52, %v6070_v38  ;;  %v2901_v52 = vrot.slane %v6125_v17, 1 }
0x3e1d   :  { %5253 = vtanh.f32 %v2760_v58  ;;  %v2903_v58 = vrot.slane %v6106_v48, 7 }
0x3e27   :  { %v5254_v40 = vpop.eup %5253 }
0x3e28   :  { %v2762_v41 = vmul.f32 %v5254_v40, %v5606_v20 }
0x3e2a   :  { %v2763_v43 = vadd.f32 %v2762_v41, %v5608_v22 }
0x3e2c   :  { %2769 = vrot.lane.b32.xlu1 %v2763_v43, %s5435_s29  ;;  %v2767_v7 = vmul.f32 %v2765_v4, %v2763_v43 }
0x3e9e   :  { %v2770_v36 = vpop.permute.xlu1 %2769 }
0x3e9f   :  { %v2772_v24 = vmul.f32 %v2770_v36, %v2763_v43  ;;  %v2909_v36 = vrot.slane %v6032_v34, 1 }
0x3ea1   :  { %2774 = vrot.lane.b32.xlu0 %v2772_v24, %s5436_s23 }
0x3f13   :  { %v2775_v49 = vpop.permute.xlu0 %2774 }
0x3f14   :  { %v2777_v51 = vadd.f32 %v2775_v49, %v2767_v7 }
0x3f16   :  { %5255 = vtanh.f32 %v2777_v51  ;;  %v2868_v26 = vrot.slane %v2777_v51, 7 }
0x3f20   :  { %v5256_v53 = vpop.eup %5255 }
0x3f21   :  { %2780 = vrot.lane.b32.xlu1 %v5256_v53, %s5435_s29  ;;  %v4340_v53 = vld [vmem:[%s6627_s4 + $0x2] ss:$0 sm:$0xff] }
0x3f93   :  { %v2781_v38 = vpop.permute.xlu1 %2780 }
0x3f94   :  { %v2783_v8 = vmul.f32 %v2781_v38, %v2763_v43  ;;  %v2907_v43 = vrot.slane %v6055_v62, 3  ;;  %v4345_v62 = vld [vmem:[%s6629_s6 + $0x3] ss:$0 sm:$0xff] }
0x3f96   :  { %v2892_v57 = vsel %vm954_vm11, %v2891_v32, %v2783_v8  ;;  %v2785_v59 = vrot.slane %v2783_v8, 6  ;;  %v2897_v32 = vrot.slane %v2783_v8, 5 }
0x3f98   :  { %2786 = vrot.lane.b32.xlu0 %v2785_v59, %s5436_s23 }
0x400a   :  { %v2787_v60 = vpop.permute.xlu0 %2786 }
0x400b   :  { %4820 = vmatmul.mubr.msk.f32.vlgmr.msra.gmra.mrb[24].mxu1 %vm147_vm1, %v2787_v60 }
0x400c   :  { %4841 = vmatprep.mubr.msk.f32.mxu1 %vm5432_vm0, %v5433_v6  ;;  %5096 = vmatpush3.bf16.msra.mxu1 %v6170_v55 }
0x400d   :  { %5097 = vmatprep.subr.bf16.mxu1 %v5431_v3 }
0x4010   :  { %5099 = vmatpush3.bf16.msra.mxu1 %v6176_v30 }
0x4011   :  { %5106 = vmatprep.subr.bf16.mxu1 %v5431_v3 }
0x4013   :  { %4842 = vmatmul.mubr.msk.f32.vlgmr.msra.gmra.mrb[26].mxu1 %vm147_vm1, %v4342_v44 }
0x4014   :  { %5108 = vmatpush3.bf16.msra.mxu1 %v6170_v55  ;;  %4863 = vmatprep.mubr.msk.f32.mxu1 %vm5432_vm0, %v5433_v6 }
0x4015   :  { %5109 = vmatprep.subr.bf16.mxu1 %v5431_v3 }
0x4018   :  { %5111 = vmatpush3.bf16.msra.mxu1 %v6176_v30 }
0x4019   :  { %5118 = vmatprep.subr.bf16.mxu1 %v5431_v3 }
0x40de   :  { %v2856_v61 = vpop.f32.mrb[24].mxu1 }
0x40df   :  { %v2861_v13 = vrot.slane %v2856_v61, 1  ;;  %v4821_v14 = vpop.f32.mrb[25].mxu1 }
0x40e1   :  { %v2863_v1 = vadd.f32 %v2861_v13, %v6098_v33  ;;  %v2928_v33 = vld [vmem:[#allocation7 + $0x40] sm:$0xff] }
0x40e2   :  { %v5089_v21 = vpack.c.bf16 %v2929_v18, %v2928_v33 }
0x40e3   :  { %5257 = vtanh.f32 %v2863_v1 }
0x40e4   :  { %5090 = vmatpush3.bf16.msra.mxu0 %v5089_v21 }
0x40e5   :  { %5091 = vmatprep.subr.bf16.mxu0 %v5431_v3 }
0x40e6   :  { %v3095_v49 = vpop.f32.mrb[26].mxu1 }
0x40e7   :  { %v4843_v51 = vpop.f32.mrb[27].mxu1 }
0x40e8   :  { %5093 = vmatpush3.bf16.msra.mxu0 %v5092_v27 }
0x40e9   :  { %5100 = vmatprep.subr.bf16.mxu0 %v5431_v3 }
0x40ed   :  { %v5258_v56 = vpop.eup %5257 }
0x40ee   :  { %v2865_v2 = vmul.f32 %v5258_v56, %v5606_v20 }
0x40f0   :  { %v2866_v5 = vadd.f32 %v2865_v2, %v5608_v22 }
0x40f2   :  { %2872 = vrot.lane.b32.xlu1 %v2866_v5, %s5435_s29  ;;  %v2870_v15 = vmul.f32 %v2868_v26, %v2866_v5 }
0x4164   :  { %v2873_v11 = vpop.permute.xlu1 %2872 }
0x4165   :  { %v2875_v37 = vmul.f32 %v2873_v11, %v2866_v5 }
0x4167   :  { %2877 = vrot.lane.b32.xlu0 %v2875_v37, %s5436_s23 }
0x41d9   :  { %v2878_v28 = vpop.permute.xlu0 %2877 }
0x41da   :  { %v2880_v45 = vadd.f32 %v2878_v28, %v2870_v15 }
0x41dc   :  { %5259 = vtanh.f32 %v2880_v45 }
0x41e6   :  { %v5260_v0 = vpop.eup %5259 }
0x41e7   :  { %2883 = vrot.lane.b32.xlu1 %v5260_v0, %s5435_s29 }
0x4259   :  { %v2884_v31 = vpop.permute.xlu1 %2883 }
0x425a   :  { %v2886_v25 = vmul.f32 %v2884_v31, %v2866_v5 }
0x425c   :  { %v2895_v35 = vrot.slane %v2886_v25, 7  ;;  %v2893_v47 = vsel %vm956_vm12, %v2892_v57, %v2886_v25 }
0x425d   :  { %2919 = vrot.lane.b32.xlu0 %v2893_v47, %s5436_s23 }
0x425e   :  { %v2911_v39 = vsel %vm944_vm6, %v2895_v35, %v2897_v32 }
0x425f   :  { %v2912_v40 = vsel %vm946_vm7, %v2911_v39, %v2899_v16 }
0x4260   :  { %v2913_v41 = vsel %vm948_vm8, %v2912_v40, %v2901_v52 }
0x4261   :  { %v2914_v17 = vsel %vm950_vm9, %v2913_v41, %v2903_v58 }
0x4262   :  { %v2915_v24 = vsel %vm952_vm10, %v2914_v17, %v2905_v63 }
0x4263   :  { %v2916_v48 = vsel %vm954_vm11, %v2915_v24, %v2907_v43 }
0x4264   :  { %v2917_v4 = vsel %vm956_vm12, %v2916_v48, %v2909_v36 }
0x4265   :  { %2923 = vrot.lane.b32.xlu1 %v2917_v4, %s5436_s23 }
0x4269   :  { %3108 = vrot.lane.b32.xlu1 %v4345_v62, %s5436_s23 }
0x42cf   :  { %v2920_v54 = vpop.permute.xlu0 %2919 }
0x42d7   :  { %v2924_v34 = vpop.permute.xlu1 %2923 }
0x42d8   :  { %v2926_v7 = vsel %vm987_vm13, %v2920_v54, %v2924_v34 }
0x42d9   :  { %4831 = vmatmul.mubr.msk.f32.vlgmr.msra.gmra.mrb[26].mxu0 %vm147_vm1, %v2926_v7 }
0x42da   :  { %5102 = vmatpush3.bf16.msra.mxu0 %v6170_v55  ;;  %4852 = vmatprep.mubr.msk.f32.mxu0 %vm5432_vm0, %v5433_v6 }
0x42db   :  { %5103 = vmatprep.subr.bf16.mxu0 %v5431_v3  ;;  %v3109_v5 = vpop.permute.xlu1 %3108 }
0x42de   :  { %5105 = vmatpush3.bf16.msra.mxu0 %v6176_v30 }
0x42df   :  { %5112 = vmatprep.subr.bf16.mxu0 %v5431_v3 }
0x43ac   :  { %v3009_v38 = vpop.f32.mrb[26].mxu0 }
0x43ad   :  { %v6221_v8 = vadd.f32 %v4340_v53, %v3009_v38  ;;  %v4832_v57 = vpop.f32.mrb[27].mxu0 }
0x43af   :  { %v3023_v59 = vrot.slane %v6221_v8, 7  ;;  %v3128_v33 = vrot.slane %v6221_v8, 5  ;;  %v3233_v40 = vrot.slane %v6221_v8, 3 }
0x43b1   :  { %v6227_v60 = vsel %vm5592_vm2, %v6221_v8, %v3023_v59  ;;  %v6250_v23 = vsel %vm5592_vm2, %v6221_v8, %v3128_v33  ;;  %v6273_v17 = vsel %vm5592_vm2, %v6221_v8, %v3233_v40 }
0x43b2   :  { %v3099_v61 = vadd.f32 %v3095_v49, %v6227_v60 }
0x43b4   :  { %5261 = vtanh.f32 %v3099_v61 }
0x43be   :  { %v5262_v13 = vpop.eup %5261 }
0x43bf   :  { %v3101_v14 = vmul.f32 %v5262_v13, %v5606_v20 }
0x43c1   :  { %v3102_v1 = vadd.f32 %v3101_v14, %v5608_v22 }
0x43c3   :  { %3113 = vrot.lane.b32.xlu0 %v3102_v1, %s5435_s29  ;;  %v3111_v11 = vmul.f32 %v3109_v5, %v3102_v1 }
0x4435   :  { %v3114_v56 = vpop.permute.xlu0 %3113 }
0x4436   :  { %v3116_v2 = vmul.f32 %v3114_v56, %v3102_v1 }
0x4438   :  { %3118 = vrot.lane.b32.xlu0 %v3116_v2, %s5436_s23 }
0x44aa   :  { %v3119_v37 = vpop.permute.xlu0 %3118 }
0x44ab   :  { %v3121_v26 = vadd.f32 %v3119_v37, %v3111_v11 }
0x44ad   :  { %5263 = vtanh.f32 %v3121_v26  ;;  %v3214_v25 = vrot.slane %v3121_v26, 7 }
0x44b7   :  { %v5264_v15 = vpop.eup %5263 }
0x44b8   :  { %3124 = vrot.lane.b32.xlu1 %v5264_v15, %s5435_s29 }
0x452a   :  { %v3125_v28 = vpop.permute.xlu1 %3124 }
0x452b   :  { %v6235_v45 = vmul.f32 %v3125_v28, %v3102_v1  ;;  %v3339_v1 = vrot.slane %v6221_v8, 1 }
0x452d   :  { %3132 = vrot.lane.b32.xlu0 %v6235_v45, %s5436_s23  ;;  %v6301_v11 = vsel %vm5592_vm2, %v6221_v8, %v3339_v1 }
0x459f   :  { %v3133_v0 = vpop.permute.xlu0 %3132 }
0x45a0   :  { %4853 = vmatmul.mubr.msk.f32.vlgmr.msra.gmra.mrb[28].mxu0 %vm147_vm1, %v3133_v0 }
0x45a1   :  { %5114 = vmatpush3.bf16.msra.mxu0 %v6170_v55  ;;  %4874 = vmatprep.mubr.msk.f32.mxu0 %vm5432_vm0, %v5433_v6 }
0x45a2   :  { %5115 = vmatprep.subr.bf16.mxu0 %v5431_v3 }
0x45a5   :  { %5117 = vmatpush3.bf16.msra.mxu0 %v6176_v30 }
0x45a6   :  { %5124 = vmatprep.subr.bf16.mxu0 %v5431_v3 }
0x4673   :  { %v3202_v18 = vpop.f32.mrb[28].mxu0 }
0x4674   :  { %v3207_v19 = vrot.slane %v3202_v18, 7  ;;  %v4854_v21 = vpop.f32.mrb[29].mxu0 }
0x4676   :  { %v3209_v42 = vadd.f32 %v3207_v19, %v6250_v23 }
0x4678   :  { %5265 = vtanh.f32 %v3209_v42 }
0x4682   :  { %v5266_v46 = vpop.eup %5265 }
0x4683   :  { %v3211_v27 = vmul.f32 %v5266_v46, %v5606_v20 }
0x4685   :  { %v3212_v50 = vadd.f32 %v3211_v27, %v5608_v22 }
0x4687   :  { %3218 = vrot.lane.b32.xlu1 %v3212_v50, %s5435_s29  ;;  %v3216_v44 = vmul.f32 %v3214_v25, %v3212_v50 }
0x46f9   :  { %v3219_v29 = vpop.permute.xlu1 %3218 }
0x46fa   :  { %v3221_v31 = vmul.f32 %v3219_v29, %v3212_v50 }
0x46fc   :  { %3223 = vrot.lane.b32.xlu0 %v3221_v31, %s5436_s23 }
0x476e   :  { %v3224_v32 = vpop.permute.xlu0 %3223 }
0x476f   :  { %v3226_v35 = vadd.f32 %v3224_v32, %v3216_v44 }
0x4771   :  { %5267 = vtanh.f32 %v3226_v35  ;;  %v3320_v34 = vrot.slane %v3226_v35, 7 }
0x477b   :  { %v5268_v47 = vpop.eup %5267 }
0x477c   :  { %3229 = vrot.lane.b32.xlu1 %v5268_v47, %s5435_s29 }
0x47ee   :  { %v3230_v16 = vpop.permute.xlu1 %3229 }
0x47ef   :  { %v6258_v52 = vmul.f32 %v3230_v16, %v3212_v50 }
0x47f1   :  { %v3237_v39 = vrot.slane %v6258_v52, 1  ;;  %v3857_v59 = vsel %vm944_vm6, %v6235_v45, %v6258_v52 }
0x47f3   :  { %3238 = vrot.lane.b32.xlu0 %v3237_v39, %s5436_s23 }
0x4865   :  { %v3239_v58 = vpop.permute.xlu0 %3238 }
0x4866   :  { %4864 = vmatmul.mubr.msk.f32.vlgmr.msra.gmra.mrb[28].mxu1 %vm147_vm1, %v3239_v58 }
0x4867   :  { %5120 = vmatpush3.bf16.msra.mxu1 %v6170_v55  ;;  %4885 = vmatprep.mubr.msk.f32.mxu1 %vm5432_vm0, %v5433_v6 }
0x4868   :  { %5121 = vmatprep.subr.bf16.mxu1 %v5431_v3 }
0x486b   :  { %5123 = vmatpush3.bf16.msra.mxu1 %v6176_v30 }
0x486c   :  { %5130 = vmatprep.subr.bf16.mxu1 %v5431_v3 }
0x4939   :  { %v3308_v63 = vpop.f32.mrb[28].mxu1 }
0x493a   :  { %v3313_v41 = vrot.slane %v3308_v63, 6  ;;  %v4865_v43 = vpop.f32.mrb[29].mxu1 }
0x493c   :  { %v3315_v36 = vadd.f32 %v3313_v41, %v6273_v17 }
0x493e   :  { %5269 = vtanh.f32 %v3315_v36 }
0x4948   :  { %v5270_v24 = vpop.eup %5269 }
0x4949   :  { %v3317_v48 = vmul.f32 %v5270_v24, %v5606_v20 }
0x494b   :  { %v3318_v4 = vadd.f32 %v3317_v48, %v5608_v22 }
0x494d   :  { %3324 = vrot.lane.b32.xlu1 %v3318_v4, %s5435_s29  ;;  %v3322_v7 = vmul.f32 %v3320_v34, %v3318_v4 }
0x49bf   :  { %v3325_v62 = vpop.permute.xlu1 %3324 }
0x49c0   :  { %v3327_v54 = vmul.f32 %v3325_v62, %v3318_v4 }
0x49c2   :  { %3329 = vrot.lane.b32.xlu0 %v3327_v54, %s5436_s23 }
0x4a34   :  { %v3330_v49 = vpop.permute.xlu0 %3329 }
0x4a35   :  { %v3332_v51 = vadd.f32 %v3330_v49, %v3322_v7 }
0x4a37   :  { %5271 = vtanh.f32 %v3332_v51  ;;  %v3426_v18 = vrot.slane %v3332_v51, 7 }
0x4a41   :  { %v5272_v53 = vpop.eup %5271 }
0x4a42   :  { %3335 = vrot.lane.b32.xlu1 %v5272_v53, %s5435_s29 }
0x4ab4   :  { %v3336_v38 = vpop.permute.xlu1 %3335 }
0x4ab5   :  { %v6281_v57 = vmul.f32 %v3336_v38, %v3318_v4 }
0x4ab7   :  { %v3343_v61 = vrot.slane %v6281_v57, 2  ;;  %v3858_v13 = vsel %vm946_vm7, %v3857_v59, %v6281_v57 }
0x4ab9   :  { %3344 = vrot.lane.b32.xlu0 %v3343_v61, %s5436_s23 }
0x4b2b   :  { %v3345_v14 = vpop.permute.xlu0 %3344 }
0x4b2c   :  { %4875 = vmatmul.mubr.msk.f32.vlgmr.msra.gmra.mrb[30].mxu0 %vm147_vm1, %v3345_v14 }
0x4b2d   :  { %5126 = vmatpush3.bf16.msra.mxu0 %v6170_v55  ;;  %4896 = vmatprep.mubr.msk.f32.mxu0 %vm5432_vm0, %v5433_v6 }
0x4b2e   :  { %5127 = vmatprep.subr.bf16.mxu0 %v5431_v3 }
0x4b31   :  { %5129 = vmatpush3.bf16.msra.mxu0 %v6176_v30 }
0x4b32   :  { %5136 = vmatprep.subr.bf16.mxu0 %v5431_v3 }
0x4bff   :  { %v3414_v56 = vpop.f32.mrb[30].mxu0 }
0x4c00   :  { %v3419_v2 = vrot.slane %v3414_v56, 5  ;;  %v4876_v5 = vpop.f32.mrb[31].mxu0 }
0x4c02   :  { %v3421_v37 = vadd.f32 %v3419_v2, %v6301_v11 }
0x4c04   :  { %5273 = vtanh.f32 %v3421_v37 }
0x4c0e   :  { %v5274_v26 = vpop.eup %5273 }
0x4c0f   :  { %v3423_v15 = vmul.f32 %v5274_v26, %v5606_v20 }
0x4c11   :  { %v3424_v28 = vadd.f32 %v3423_v15, %v5608_v22 }
0x4c13   :  { %3430 = vrot.lane.b32.xlu1 %v3424_v28, %s5435_s29  ;;  %v3428_v19 = vmul.f32 %v3426_v18, %v3424_v28 }
0x4c85   :  { %v3431_v0 = vpop.permute.xlu1 %3430 }
0x4c86   :  { %v3433_v33 = vmul.f32 %v3431_v0, %v3424_v28 }
0x4c88   :  { %3435 = vrot.lane.b32.xlu0 %v3433_v33, %s5436_s23 }
0x4cfa   :  { %v3436_v21 = vpop.permute.xlu0 %3435 }
0x4cfb   :  { %v3438_v12 = vadd.f32 %v3436_v21, %v3428_v19 }
0x4cfd   :  { %5275 = vtanh.f32 %v3438_v12  ;;  %v3529_v40 = vrot.slane %v3438_v12, 7 }
0x4d07   :  { %v5276_v8 = vpop.eup %5275 }
0x4d08   :  { %3441 = vrot.lane.b32.xlu1 %v5276_v8, %s5435_s29 }
0x4d7a   :  { %v3442_v42 = vpop.permute.xlu1 %3441 }
0x4d7b   :  { %v6309_v46 = vmul.f32 %v3442_v42, %v3424_v28 }
0x4d7d   :  { %v3446_v27 = vrot.slane %v6309_v46, 3  ;;  %v3859_v50 = vsel %vm948_vm8, %v3858_v13, %v6309_v46 }
0x4d7f   :  { %3447 = vrot.lane.b32.xlu0 %v3446_v27, %s5436_s23 }
0x4df1   :  { %v3448_v29 = vpop.permute.xlu0 %3447 }
0x4df2   :  { %4886 = vmatmul.mubr.msk.f32.vlgmr.msra.gmra.mrb[30].mxu1 %vm147_vm1, %v3448_v29 }
0x4df3   :  { %5132 = vmatpush3.bf16.msra.mxu1 %v6170_v55  ;;  %4907 = vmatprep.mubr.msk.f32.mxu1 %vm5432_vm0, %v5433_v6 }
0x4df4   :  { %5133 = vmatprep.subr.bf16.mxu1 %v5431_v3 }
0x4df7   :  { %5135 = vmatpush3.bf16.msra.mxu1 %v6176_v30 }
0x4df8   :  { %5142 = vmatprep.subr.bf16.mxu1 %v5431_v3 }
0x4ec5   :  { %v3517_v31 = vpop.f32.mrb[30].mxu1 }
0x4ec6   :  { %v3522_v25 = vrot.slane %v3517_v31, 4  ;;  %v4887_v44 = vpop.f32.mrb[31].mxu1 }
0x4ec8   :  { %v3524_v32 = vadd.f32 %v3522_v25, %v6227_v60 }
0x4eca   :  { %5277 = vtanh.f32 %v3524_v32 }
0x4ed4   :  { %v5278_v35 = vpop.eup %5277 }
0x4ed5   :  { %v3526_v47 = vmul.f32 %v5278_v35, %v5606_v20 }
0x4ed7   :  { %v3527_v16 = vadd.f32 %v3526_v47, %v5608_v22 }
0x4ed9   :  { %3533 = vrot.lane.b32.xlu1 %v3527_v16, %s5435_s29  ;;  %v3531_v63 = vmul.f32 %v3529_v40, %v3527_v16 }
0x4f4b   :  { %v3534_v39 = vpop.permute.xlu1 %3533 }
0x4f4c   :  { %v3536_v58 = vmul.f32 %v3534_v39, %v3527_v16 }
0x4f4e   :  { %3538 = vrot.lane.b32.xlu0 %v3536_v58, %s5436_s23 }
0x4fc0   :  { %v3539_v41 = vpop.permute.xlu0 %3538 }
0x4fc1   :  { %v3541_v43 = vadd.f32 %v3539_v41, %v3531_v63 }
0x4fc3   :  { %5279 = vtanh.f32 %v3541_v43  ;;  %v3632_v61 = vrot.slane %v3541_v43, 7 }
0x4fcd   :  { %v5280_v36 = vpop.eup %5279 }
0x4fce   :  { %3544 = vrot.lane.b32.xlu1 %v5280_v36, %s5435_s29 }
0x5040   :  { %v3545_v60 = vpop.permute.xlu1 %3544 }
0x5041   :  { %v6328_v24 = vmul.f32 %v3545_v60, %v3527_v16 }
0x5043   :  { %v3549_v48 = vrot.slane %v6328_v24, 4  ;;  %v3860_v4 = vsel %vm950_vm9, %v3859_v50, %v6328_v24 }
0x5045   :  { %3550 = vrot.lane.b32.xlu0 %v3549_v48, %s5436_s23 }
0x50b7   :  { %v3551_v62 = vpop.permute.xlu0 %3550 }
0x50b8   :  { %4897 = vmatmul.mubr.msk.f32.vlgmr.msra.gmra.mrb[32].mxu0 %vm147_vm1, %v3551_v62 }
0x50b9   :  { %5138 = vmatpush3.bf16.msra.mxu0 %v6170_v55  ;;  %4918 = vmatprep.mubr.msk.f32.mxu0 %vm5432_vm0, %v5433_v6 }
0x50ba   :  { %5139 = vmatprep.subr.bf16.mxu0 %v5431_v3 }
0x50bd   :  { %5141 = vmatpush3.bf16.msra.mxu0 %v6176_v30 }
0x518b   :  { %v3620_v54 = vpop.f32.mrb[32].mxu0 }
0x518c   :  { %v3625_v34 = vrot.slane %v3620_v54, 3  ;;  %v4898_v7 = vpop.f32.mrb[33].mxu0  ;;  %v3900_v54 = vld [vmem:[%s6630_s7 + $0x18] sm:$0xff] }
0x518e   :  { %v3627_v49 = vadd.f32 %v3625_v34, %v6250_v23 }
0x5190   :  { %5281 = vtanh.f32 %v3627_v49 }
0x519a   :  { %v5282_v51 = vpop.eup %5281 }
0x519b   :  { %v3629_v53 = vmul.f32 %v5282_v51, %v5606_v20 }
0x519d   :  { %v3630_v38 = vadd.f32 %v3629_v53, %v5608_v22 }
0x519f   :  { %3636 = vrot.lane.b32.xlu1 %v3630_v38, %s5435_s29  ;;  %v3634_v13 = vmul.f32 %v3632_v61, %v3630_v38 }
0x5211   :  { %v3637_v55 = vpop.permute.xlu1 %3636 }
0x5212   :  { %v3639_v59 = vmul.f32 %v3637_v55, %v3630_v38 }
0x5214   :  { %3641 = vrot.lane.b32.xlu0 %v3639_v59, %s5436_s23  ;;  %v3871_v59 = vrot.slane %v6328_v24, 1 }
0x5286   :  { %v3642_v30 = vpop.permute.xlu0 %3641 }
0x5287   :  { %v3644_v14 = vadd.f32 %v3642_v30, %v3634_v13  ;;  %v3873_v13 = vrot.slane %v6309_v46, 7  ;;  %v6400_v46 = vshrl.u32 %v96_v9, 7 }
0x5289   :  { %5283 = vtanh.f32 %v3644_v14  ;;  %v3735_v8 = vrot.slane %v3644_v14, 7  ;;  %vm6405_vm15 = vcmp.eq.s32.totalorder %v6400_v46, %v5589_v10 }
0x5293   :  { %v5284_v1 = vpop.eup %5283 }
0x5294   :  { %3647 = vrot.lane.b32.xlu1 %v5284_v1, %s5435_s29  ;;  %v3877_v1 = vrot.slane %v6258_v52, 3 }
0x5306   :  { %v3648_v23 = vpop.permute.xlu1 %3647 }
0x5307   :  { %v6346_v56 = vmul.f32 %v3648_v23, %v3630_v38 }
0x5309   :  { %v3652_v2 = vrot.slane %v6346_v56, 5  ;;  %v3861_v5 = vsel %vm952_vm10, %v3860_v4, %v6346_v56  ;;  %v3869_v55 = vrot.slane %v6346_v56, 3  ;;  %v3879_v56 = vrot.slane %v6235_v45, 1 }
0x530a   :  { %v5437_v45 = vmov -10000.0  }
0x530b   :  { %3653 = vrot.lane.b32.xlu0 %v3652_v2, %s5436_s23 }
0x537d   :  { %v3654_v37 = vpop.permute.xlu0 %3653 }
0x537e   :  { %4908 = vmatmul.mubr.msk.f32.vlgmr.msra.gmra.mrb[32].mxu1 %vm147_vm1, %v3654_v37 }
0x537f   :  { %4929 = vmatprep.mubr.msk.f32.mxu1 %vm5432_vm0, %v5433_v6  ;;  %vm3990_vm0 = vcmask 36864  }
0x5451   :  { %v3723_v26 = vpop.f32.mrb[32].mxu1 }
0x5452   :  { %v3728_v15 = vrot.slane %v3723_v26, 2  ;;  %v4909_v28 = vpop.f32.mrb[33].mxu1 }
0x5454   :  { %v3730_v0 = vadd.f32 %v3728_v15, %v6273_v17 }
0x5456   :  { %5285 = vtanh.f32 %v3730_v0  ;;  %v6419_v0 = vld [vmem:[%s6632_s9] sm:$0x1f] }
0x5460   :  { %v5286_v33 = vpop.eup %5285 }
0x5461   :  { %v3732_v18 = vmul.f32 %v5286_v33, %v5606_v20 }
0x5463   :  { %v3733_v19 = vadd.f32 %v3732_v18, %v5608_v22 }
0x5465   :  { %3739 = vrot.lane.b32.xlu1 %v3733_v19, %s5435_s29  ;;  %v3737_v42 = vmul.f32 %v3735_v8, %v3733_v19 }
0x54d7   :  { %v3740_v21 = vpop.permute.xlu1 %3739 }
0x54d8   :  { %v3742_v12 = vmul.f32 %v3740_v21, %v3733_v19 }
0x54da   :  { %3744 = vrot.lane.b32.xlu0 %v3742_v12, %s5436_s23 }
0x554c   :  { %v3745_v6 = vpop.permute.xlu0 %3744 }
0x554d   :  { %v3747_v27 = vadd.f32 %v3745_v6, %v3737_v42 }
0x554f   :  { %5287 = vtanh.f32 %v3747_v27  ;;  %v3838_v43 = vrot.slane %v3747_v27, 7  ;;  %v4353_v27 = vld [vmem:[%s6631_s8] ss:$0 sm:$0xff] }
0x5559   :  { %v5288_v50 = vpop.eup %5287 }
0x555a   :  { %3750 = vrot.lane.b32.xlu1 %v5288_v50, %s5435_s29 }
0x55cc   :  { %v3751_v17 = vpop.permute.xlu1 %3750 }
0x55cd   :  { %v3753_v29 = vmul.f32 %v3751_v17, %v3733_v19 }
0x55cf   :  { %v3755_v31 = vrot.slane %v3753_v29, 6  ;;  %v3862_v25 = vsel %vm954_vm11, %v3861_v5, %v3753_v29  ;;  %v3867_v51 = vrot.slane %v3753_v29, 5 }
0x55d1   :  { %3756 = vrot.lane.b32.xlu0 %v3755_v31, %s5436_s23 }
0x5643   :  { %v3757_v44 = vpop.permute.xlu0 %3756 }
0x5644   :  { %4919 = vmatmul.mubr.msk.f32.vlgmr.msra.gmra.mrb[34].mxu0 %vm147_vm1, %v3757_v44 }
0x5717   :  { %v3826_v32 = vpop.f32.mrb[34].mxu0 }
0x5718   :  { %v3831_v35 = vrot.slane %v3826_v32, 1  ;;  %v4920_v47 = vpop.f32.mrb[35].mxu0 }
0x571a   :  { %v3833_v16 = vadd.f32 %v3831_v35, %v6301_v11  ;;  %v3899_v11 = vld [vmem:[%s6630_s7 + $0x10] sm:$0xff] }
0x571b   :  { %v5146_v34 = vpack.c.bf16 %v3900_v54, %v3899_v11 }
0x571c   :  { %5289 = vtanh.f32 %v3833_v16 }
0x5726   :  { %v5290_v39 = vpop.eup %5289 }
0x5727   :  { %v3835_v58 = vmul.f32 %v5290_v39, %v5606_v20  ;;  %v3897_v20 = vld [vmem:[%s6630_s7] sm:$0xff] }
0x5729   :  { %v3836_v40 = vadd.f32 %v3835_v58, %v5608_v22  ;;  %v3898_v22 = vld [vmem:[%s6630_s7 + $0x8] sm:$0xff] }
0x572a   :  { %v5143_v62 = vpack.c.bf16 %v3898_v22, %v3897_v20 }
0x572b   :  { %3842 = vrot.lane.b32.xlu1 %v3836_v40, %s5435_s29  ;;  %v3840_v36 = vmul.f32 %v3838_v43, %v3836_v40 }
0x572c   :  { %5144 = vmatpush3.bf16.msra.mxu1 %v5143_v62 }
0x572d   :  { %5145 = vmatprep.subr.bf16.mxu1 %v5431_v3  ;;  %v3875_v3 = vrot.slane %v6281_v57, 5  ;;  %v3988_v57 = vsel %vm3987_vm14, 0.0, %v5437_v45 }
0x572e   :  { %v3989_v37 = vsel %vm6405_vm15, %v3988_v57, -inf }
0x572f   :  { %v3991_v26 = vsel %vm3990_vm0, %v3989_v37, -inf  ;;  %v4083_v37 = vsub.s32 3, %v6400_v46 }
0x5730   :  { %5147 = vmatpush3.bf16.msra.mxu1 %v5146_v34 }
0x579d   :  { %v3843_v63 = vpop.permute.xlu1 %3842 }
0x579e   :  { %v3845_v41 = vmul.f32 %v3843_v63, %v3836_v40 }
0x57a0   :  { %3847 = vrot.lane.b32.xlu0 %v3845_v41, %s5436_s23 }
0x5812   :  { %v3848_v60 = vpop.permute.xlu0 %3847 }
0x5813   :  { %v3850_v48 = vadd.f32 %v3848_v60, %v3840_v36 }
0x5815   :  { %5291 = vtanh.f32 %v3850_v48  ;;  %v4031_v48 = vsub.s32 1, %v6400_v46 }
0x581f   :  { %v5292_v4 = vpop.eup %5291 }
0x5820   :  { %3853 = vrot.lane.b32.xlu1 %v5292_v4, %s5435_s29 }
0x5892   :  { %v3854_v7 = vpop.permute.xlu1 %3853 }
0x5893   :  { %v3856_v49 = vmul.f32 %v3854_v7, %v3836_v40 }
0x5895   :  { %v3865_v53 = vrot.slane %v3856_v49, 7  ;;  %v3863_v38 = vsel %vm956_vm12, %v3862_v25, %v3856_v49  ;;  %v4005_v25 = vsub.s32 0, %v6400_v46 }
0x5896   :  { %3889 = vrot.lane.b32.xlu0 %v3863_v38, %s5436_s23 }
0x5897   :  { %v3881_v61 = vsel %vm944_vm6, %v3865_v53, %v3867_v51 }
0x5898   :  { %v3882_v30 = vsel %vm946_vm7, %v3881_v61, %v3869_v55 }
0x5899   :  { %v3883_v14 = vsel %vm948_vm8, %v3882_v30, %v3871_v59  ;;  %v4057_v59 = vsub.s32 2, %v6400_v46  ;;  %vm4193_vm8 = vcmask 39943  }
0x589a   :  { %v3884_v23 = vsel %vm950_vm9, %v3883_v14, %v3873_v13  ;;  %vm4197_vm9 = vcmask 7175  }
0x589b   :  { %v3885_v2 = vsel %vm952_vm10, %v3884_v23, %v3875_v3 }
0x589c   :  { %v3886_v24 = vsel %vm954_vm11, %v3885_v2, %v3877_v1 }
0x589d   :  { %v3887_v5 = vsel %vm956_vm12, %v3886_v24, %v3879_v56 }
0x589e   :  { %3893 = vrot.lane.b32.xlu1 %v3887_v5, %s5436_s23 }
0x58b5   :  { %3992 = vmax.xlane.f32.xlu0 %v3991_v26 }
0x5908   :  { %v3890_v9 = vpop.permute.xlu0 %3889 }
0x5910   :  { %v3894_v15 = vpop.permute.xlu1 %3893 }
0x5911   :  { %v3896_v28 = vsel %vm987_vm13, %v3890_v9, %v3894_v15 }
0x5912   :  { %4930 = vmatmul.mubr.msk.f32.vlgmr.msra.gmra.mrb[34].mxu1 %vm147_vm1, %v3896_v28 }
0x5942   :  { %v3993_v33 = vpop.xlane.xlu0 %3992 }
0x5943   :  { %v3994_v18 = vadd.f32 %v3993_v33, %v6419_v0 }
0x5945   :  { %v3995_v19 = vsel %vm3990_vm0, %v3994_v18, -inf }
0x5946   :  { %v3996_v21 = vrot.slane %v3995_v19, 4 }
0x5948   :  { %v3997_v12 = vmax.f32 %v3995_v19, %v3996_v21 }
0x594a   :  { %v3998_v8 = vrot.slane %v3997_v12, 2 }
0x594c   :  { %v3999_v42 = vmax.f32 %v3997_v12, %v3998_v8 }
0x594e   :  { %v4000_v6 = vrot.slane %v3999_v42, 1 }
0x5950   :  { %v4001_v17 = vmax.f32 %v3999_v42, %v4000_v6 }
0x59e5   :  { %v3977_v50 = vpop.f32.mrb[34].mxu1 }
0x59e6   :  { %v6426_v29 = vadd.f32 %v4353_v27, %v3977_v50  ;;  %v4931_v31 = vpop.f32.mrb[35].mxu1  ;;  %v4109_v50 = vsub.s32 4, %v6400_v46 }
0x59e8   :  { %v4002_v44 = vadd.f32 %v4001_v17, %v6426_v29 }
0x59ea   :  { %v4006_v32 = vrot.slane %v4002_v44, %v4005_v25 }
0x59ec   :  { %v4007_v35 = vsel %vm6405_vm15, %v4006_v32, -inf }
0x59ed   :  { %v4008_v47 = vsel %vm3990_vm0, %v4007_v35, -inf }
0x59ee   :  { %4009 = vmax.xlane.f32.xlu1 %v4008_v47 }
0x5a7b   :  { %v4010_v16 = vpop.xlane.xlu1 %4009 }
0x5a7c   :  { %v6434_v39 = vadd.f32 %v4010_v16, %v6419_v0 }
0x5a7e   :  { %v4012_v58 = vsel %vm3990_vm0, %v6434_v39, -inf }
0x5a7f   :  { %v4013_v40 = vrot.slane %v4012_v58, 4 }
0x5a81   :  { %v4014_v63 = vmax.f32 %v4012_v58, %v4013_v40 }
0x5a83   :  { %v4015_v41 = vrot.slane %v4014_v63, 2 }
0x5a85   :  { %v4016_v43 = vmax.f32 %v4014_v63, %v4015_v41 }
0x5a87   :  { %v4017_v36 = vrot.slane %v4016_v43, 1 }
0x5a89   :  { %v6438_v60 = vmax.f32 %v4016_v43, %v4017_v36  ;;  %v4135_v36 = vsub.s32 5, %v6400_v46 }
0x5a8b   :  { %vm4019_vm1 = vcmp.eq.f32.partialorder %v6434_v39, %v6438_v60  ;;  %v4028_v4 = vadd.f32 %v6438_v60, %v6426_v29 }
0x5a8d   :  { %v4032_v20 = vrot.slane %v4028_v4, %v4031_v48 }
0x5a8f   :  { %v4033_v22 = vsel %vm6405_vm15, %v4032_v20, -inf }
0x5a90   :  { %v4034_v11 = vsel %vm3990_vm0, %v4033_v22, -inf }
0x5a91   :  { %4035 = vmax.xlane.f32.xlu0 %v4034_v11 }
0x5b1e   :  { %v4036_v62 = vpop.xlane.xlu0 %4035 }
0x5b1f   :  { %v6449_v54 = vadd.f32 %v4036_v62, %v6419_v0 }
0x5b21   :  { %v4038_v34 = vsel %vm3990_vm0, %v6449_v54, -inf }
0x5b22   :  { %v4039_v7 = vrot.slane %v4038_v34, 4 }
0x5b24   :  { %v4040_v49 = vmax.f32 %v4038_v34, %v4039_v7 }
0x5b26   :  { %v4041_v51 = vrot.slane %v4040_v49, 2 }
0x5b28   :  { %v4042_v53 = vmax.f32 %v4040_v49, %v4041_v51 }
0x5b2a   :  { %v4043_v38 = vrot.slane %v4042_v53, 1 }
0x5b2c   :  { %v6453_v55 = vmax.f32 %v4042_v53, %v4043_v38 }
0x5b2e   :  { %vm4045_vm2 = vcmp.eq.f32.partialorder %v6449_v54, %v6453_v55  ;;  %v4054_v61 = vadd.f32 %v6453_v55, %v6426_v29 }
0x5b30   :  { %v4058_v13 = vrot.slane %v4054_v61, %v4057_v59  ;;  %v4161_v61 = vsub.s32 6, %v6400_v46 }
0x5b32   :  { %v4059_v30 = vsel %vm6405_vm15, %v4058_v13, -inf }
0x5b33   :  { %v4060_v3 = vsel %vm3990_vm0, %v4059_v30, -inf }
0x5b34   :  { %4061 = vmax.xlane.f32.xlu0 %v4060_v3 }
0x5bc1   :  { %v4062_v14 = vpop.xlane.xlu0 %4061 }
0x5bc2   :  { %v6464_v1 = vadd.f32 %v4062_v14, %v6419_v0 }
0x5bc4   :  { %v4064_v23 = vsel %vm3990_vm0, %v6464_v1, -inf }
0x5bc5   :  { %v4065_v56 = vrot.slane %v4064_v23, 4 }
0x5bc7   :  { %v4066_v2 = vmax.f32 %v4064_v23, %v4065_v56 }
0x5bc9   :  { %v4067_v24 = vrot.slane %v4066_v2, 2 }
0x5bcb   :  { %v4068_v5 = vmax.f32 %v4066_v2, %v4067_v24 }
0x5bcd   :  { %v4069_v45 = vrot.slane %v4068_v5, 1 }
0x5bcf   :  { %v6468_v57 = vmax.f32 %v4068_v5, %v4069_v45 }
0x5bd1   :  { %vm4071_vm3 = vcmp.eq.f32.partialorder %v6464_v1, %v6468_v57  ;;  %v4080_v26 = vadd.f32 %v6468_v57, %v6426_v29 }
0x5bd3   :  { %v4084_v9 = vrot.slane %v4080_v26, %v4083_v37 }
0x5bd5   :  { %v4085_v15 = vsel %vm6405_vm15, %v4084_v9, -inf }
0x5bd6   :  { %v4086_v28 = vsel %vm3990_vm0, %v4085_v15, -inf  ;;  %v4355_v15 = vld [vmem:[%s6633_s10] ss:$0 sm:$0xff]  ;;  %s5438_s10 = smov [#allocation10]  }
0x5bd7   :  { %4087 = vmax.xlane.f32.xlu1 %v4086_v28  ;;  %s4263_s2 = sshll.u32 %s5438_s10, 4  ;;  %s4264_s2 = int_to_ptr.vmem [resolvable:$true] %s4263_s2 }
0x5bd8   :  { %s5371_s25 = scalar_lea.vmem %s4264_s2, 16  ;;  %s5375_s30 = scalar_lea.vmem %s4264_s2, 32 }
0x5bd9   :  { %p5372_p1 = scmp.ne.s32.totalorder %s4264_s2, %s5371_s25  ;;  %p5376_p2 = scmp.lt.s32.totalorder %s4264_s2, %s4264_s2 }
0x5bda   :  { %p5377_p3 = scmp.lt.s32.totalorder %s5375_s30, %s5371_s25 }
0x5bdc   :  { %p5378_p4 = por %p5377_p3, %p5376_p2 }
0x5bde   :  { %p5379_p5 = pnand %p5378_p4, %p5372_p1 }
0x5c64   :  { %v4088_v33 = vpop.xlane.xlu1 %4087 }
0x5c65   :  { %v6479_v18 = vadd.f32 %v4088_v33, %v6419_v0 }
0x5c67   :  { %v4090_v19 = vsel %vm3990_vm0, %v6479_v18, -inf }
0x5c68   :  { %v4091_v21 = vrot.slane %v4090_v19, 4 }
0x5c6a   :  { %v4092_v12 = vmax.f32 %v4090_v19, %v4091_v21 }
0x5c6c   :  { %v4093_v8 = vrot.slane %v4092_v12, 2 }
0x5c6e   :  { %v4094_v42 = vmax.f32 %v4092_v12, %v4093_v8  ;;  %v6528_v8 = vcvt.s32.f32 %v6400_v46 }
0x5c70   :  { %v4095_v6 = vrot.slane %v4094_v42, 1  ;;  %v4046_v1 = vsel %vm4045_vm2, %v6528_v8, 5.0  ;;  %v4020_v54 = vsel %vm4019_vm1, %v6528_v8, 5.0 }
0x5c71   :  { %v4047_v57 = vsel %vm3990_vm0, %v4046_v1, inf  ;;  %v4021_v55 = vsel %vm3990_vm0, %v4020_v54, inf }
0x5c72   :  { %v6483_v27 = vmax.f32 %v4094_v42, %v4095_v6 }
0x5c74   :  { %vm4097_vm4 = vcmp.eq.f32.partialorder %v6479_v18, %v6483_v27  ;;  %v4106_v17 = vadd.f32 %v6483_v27, %v6426_v29  ;;  %v4072_v18 = vsel %vm4071_vm3, %v6528_v8, 5.0 }
0x5c75   :  { %v4073_v27 = vsel %vm3990_vm0, %v4072_v18, inf }
0x5c76   :  { %v4110_v31 = vrot.slane %v4106_v17, %v4109_v50 }
0x5c78   :  { %v4111_v25 = vsel %vm6405_vm15, %v4110_v31, -inf }
0x5c79   :  { %v4112_v44 = vsel %vm3990_vm0, %v4111_v25, -inf }
0x5c7a   :  { %4113 = vmax.xlane.f32.xlu0 %v4112_v44 }
0x5d07   :  { %v4114_v32 = vpop.xlane.xlu0 %4113 }
0x5d08   :  { %v6494_v35 = vadd.f32 %v4114_v32, %v6419_v0 }
0x5d0a   :  { %v4116_v47 = vsel %vm3990_vm0, %v6494_v35, -inf }
0x5d0b   :  { %v4117_v16 = vrot.slane %v4116_v47, 4 }
0x5d0d   :  { %v4118_v58 = vmax.f32 %v4116_v47, %v4117_v16 }
0x5d0f   :  { %v4119_v40 = vrot.slane %v4118_v58, 2 }
0x5d11   :  { %v4120_v63 = vmax.f32 %v4118_v58, %v4119_v40 }
0x5d13   :  { %v4121_v41 = vrot.slane %v4120_v63, 1 }
0x5d15   :  { %v6498_v43 = vmax.f32 %v4120_v63, %v4121_v41 }
0x5d17   :  { %vm4123_vm5 = vcmp.eq.f32.partialorder %v6494_v35, %v6498_v43  ;;  %v4132_v48 = vadd.f32 %v6498_v43, %v6426_v29  ;;  %v4098_v35 = vsel %vm4097_vm4, %v6528_v8, 5.0 }
0x5d18   :  { %v4099_v43 = vsel %vm3990_vm0, %v4098_v35, inf }
0x5d19   :  { %v4136_v4 = vrot.slane %v4132_v48, %v4135_v36 }
0x5d1b   :  { %v4137_v20 = vsel %vm6405_vm15, %v4136_v4, -inf }
0x5d1c   :  { %v4138_v22 = vsel %vm3990_vm0, %v4137_v20, -inf }
0x5d1d   :  { %4139 = vmax.xlane.f32.xlu1 %v4138_v22 }
0x5daa   :  { %v4140_v11 = vpop.xlane.xlu1 %4139 }
0x5dab   :  { %v4141_v62 = vadd.f32 %v4140_v11, %v6419_v0 }
0x5dad   :  { %v4142_v34 = vsel %vm3990_vm0, %v4141_v62, -inf }
0x5dae   :  { %v4143_v7 = vrot.slane %v4142_v34, 4 }
0x5db0   :  { %v4144_v49 = vmax.f32 %v4142_v34, %v4143_v7 }
0x5db2   :  { %v4145_v51 = vrot.slane %v4144_v49, 2 }
0x5db4   :  { %v4146_v53 = vmax.f32 %v4144_v49, %v4145_v51 }
0x5db6   :  { %v4147_v38 = vrot.slane %v4146_v53, 1 }
0x5db8   :  { %v4148_v59 = vmax.f32 %v4146_v53, %v4147_v38 }
0x5dba   :  { %vm4149_vm6 = vcmp.eq.f32.partialorder %v4141_v62, %v4148_v59  ;;  %v4158_v13 = vadd.f32 %v4148_v59, %v6426_v29  ;;  %v4124_v62 = vsel %vm4123_vm5, %v6528_v8, 5.0 }
0x5dbb   :  { %v4150_v46 = vsel %vm4149_vm6, %v6528_v8, 5.0  ;;  %v4125_v34 = vsel %vm3990_vm0, %v4124_v62, inf }
0x5dbc   :  { %v4162_v30 = vrot.slane %v4158_v13, %v4161_v61  ;;  %v4151_v58 = vsel %vm3990_vm0, %v4150_v46, inf  ;;  %v4126_v7 = vrot.slane %v4125_v34, 4 }
0x5dbd   :  { %v4152_v40 = vrot.slane %v4151_v58, 4 }
0x5dbe   :  { %v4163_v3 = vsel %vm6405_vm15, %v4162_v30, -inf  ;;  %v4127_v49 = vmin.f32 %v4125_v34, %v4126_v7 }
0x5dbf   :  { %v4164_v14 = vsel %vm3990_vm0, %v4163_v3, -inf  ;;  %v4153_v63 = vmin.f32 %v4151_v58, %v4152_v40  ;;  %v4100_v3 = vrot.slane %v4099_v43, 4 }
0x5dc0   :  { %4165 = vmax.xlane.f32.xlu0 %v4164_v14  ;;  %v4128_v51 = vrot.slane %v4127_v49, 2 }
0x5dc1   :  { %v4154_v41 = vrot.slane %v4153_v63, 2  ;;  %v4101_v14 = vmin.f32 %v4099_v43, %v4100_v3 }
0x5dc2   :  { %v4129_v53 = vmin.f32 %v4127_v49, %v4128_v51 }
0x5dc3   :  { %v4155_v36 = vmin.f32 %v4153_v63, %v4154_v41 }
0x5dc4   :  { %v4130_v38 = vrot.slane %v4129_v53, 1 }
0x5dc5   :  { %v4156_v48 = vrot.slane %v4155_v36, 1 }
0x5dc6   :  { %v4131_v61 = vmin.f32 %v4129_v53, %v4130_v38 }
0x5dc7   :  { %v4157_v20 = vmin.f32 %v4155_v36, %v4156_v48 }
0x5e4d   :  { %v4166_v23 = vpop.xlane.xlu0 %4165 }
0x5e4e   :  { %v4167_v56 = vadd.f32 %v4166_v23, %v6419_v0  ;;  %v6523_v0 = vcvt.s32.f32 %v5589_v10  ;;  %v4102_v23 = vrot.slane %v4101_v14, 2 }
0x5e50   :  { %v4168_v2 = vsel %vm3990_vm0, %v4167_v56, -inf }
0x5e51   :  { %v4169_v24 = vrot.slane %v4168_v2, 4 }
0x5e53   :  { %v4170_v5 = vmax.f32 %v4168_v2, %v4169_v24 }
0x5e55   :  { %v4171_v45 = vrot.slane %v4170_v5, 2 }
0x5e57   :  { %v4172_v37 = vmax.f32 %v4170_v5, %v4171_v45 }
0x5e59   :  { %v4173_v26 = vrot.slane %v4172_v37, 1 }
0x5e5b   :  { %v4174_v9 = vmax.f32 %v4172_v37, %v4173_v26  ;;  %v4074_v26 = vrot.slane %v4073_v27, 4 }
0x5e5d   :  { %vm4175_vm7 = vcmp.eq.f32.partialorder %v4167_v56, %v4174_v9  ;;  %v4184_v52 = vadd.f32 %v4174_v9, %v6426_v29  ;;  %v4103_v56 = vmin.f32 %v4101_v14, %v4102_v23  ;;  %v4075_v9 = vmin.f32 %v4073_v27, %v4074_v26 }
0x5e5e   :  { %v4176_v29 = vsel %vm4175_vm7, %v6528_v8, 5.0 }
0x5e5f   :  { %v4192_v28 = vadd.f32 %v4355_v15, %v4184_v52  ;;  %v4177_v42 = vsel %vm3990_vm0, %v4176_v29, inf  ;;  %v4104_v2 = vrot.slane %v4103_v56, 1  ;;  %v4076_v15 = vrot.slane %v4075_v9, 2 }
0x5e60   :  { %v4178_v6 = vrot.slane %v4177_v42, 4  ;;  %v4048_v29 = vrot.slane %v4047_v57, 4 }
0x5e61   :  { %v4194_v33 = vsel %vm4193_vm8, %v4192_v28, -inf  ;;  %v4105_v5 = vmin.f32 %v4103_v56, %v4104_v2  ;;  %v4077_v52 = vmin.f32 %v4075_v9, %v4076_v15 }
0x5e62   :  { %4195 = vmax.xlane.f32.xlu1 %v4194_v33  ;;  %v4179_v50 = vmin.f32 %v4177_v42, %v4178_v6  ;;  %v4049_v42 = vmin.f32 %v4047_v57, %v4048_v29 }
0x5e64   :  { %v4180_v17 = vrot.slane %v4179_v50, 2  ;;  %v4050_v6 = vrot.slane %v4049_v42, 2 }
0x5e66   :  { %v4181_v31 = vmin.f32 %v4179_v50, %v4180_v17  ;;  %v4051_v50 = vmin.f32 %v4049_v42, %v4050_v6 }
0x5e68   :  { %v4182_v25 = vrot.slane %v4181_v31, 1  ;;  %v4052_v17 = vrot.slane %v4051_v50, 1 }
0x5e6a   :  { %v4183_v32 = vmin.f32 %v4181_v31, %v4182_v25  ;;  %v4053_v25 = vmin.f32 %v4051_v50, %v4052_v17 }
0x5eef   :  { %v4196_v19 = vpop.xlane.xlu1 %4195 }
0x5ef0   :  { %vm4199_vm10 = vcmp.eq.f32.partialorder %v4192_v28, %v4196_v19  ;;  %4198 = vst.msk [vmem:[#allocation10 - $0x7] sm:$0x80] %vm4197_vm9, %v4196_v19  ;;  %v4078_v28 = vrot.slane %v4077_v52, 1 }
0x5ef1   :  { %v4200_v21 = vsel %vm4199_vm10, %v6523_v0, 5.0 }
0x5ef2   :  { %v4201_v12 = vsel %vm4193_vm8, %v4200_v21, inf  ;;  %v4079_v19 = vmin.f32 %v4077_v52, %v4078_v28 }
0x5ef3   :  { %4202 = vmin.xlane.f32.xlu0 %v4201_v12 }
0x5f80   :  { %v6532_v44 = vpop.xlane.xlu0 %4202 }
0x5f81   :  { %vm4206_vm11 = vcmp.eq.f32.partialorder %v6523_v0, %v6532_v44 }
0x5f82   :  { %v4207_v47 = vsel %vm4206_vm11, %v4183_v32, -1.0 }
0x5f83   :  { %v4208_v16 = vsel %vm4193_vm8, %v4207_v47, -inf }
0x5f84   :  { %4209 = vmax.xlane.f32.xlu1 %v4208_v16  ;;  %v4022_v16 = vrot.slane %v4021_v55, 4 }
0x5f86   :  { %v4023_v46 = vmin.f32 %v4021_v55, %v4022_v16 }
0x5f88   :  { %v4024_v58 = vrot.slane %v4023_v46, 2 }
0x5f8a   :  { %v4025_v40 = vmin.f32 %v4023_v46, %v4024_v58 }
0x5f8c   :  { %v4026_v63 = vrot.slane %v4025_v40, 1 }
0x5f8e   :  { %v4027_v36 = vmin.f32 %v4025_v40, %v4026_v63 }
0x6011   :  { %v6540_v4 = vpop.xlane.xlu1 %4209 }
0x6012   :  { %vm4213_vm12 = vcmp.eq.f32.partialorder %v6523_v0, %v6540_v4 }
0x6013   :  { %v4214_v22 = vsel %vm4213_vm12, %v4157_v20, -1.0 }
0x6014   :  { %v4215_v11 = vsel %vm4193_vm8, %v4214_v22, -inf }
0x6015   :  { %4216 = vmax.xlane.f32.xlu0 %v4215_v11 }
0x60a2   :  { %v6550_v59 = vpop.xlane.xlu0 %4216 }
0x60a3   :  { %vm4220_vm13 = vcmp.eq.f32.partialorder %v6523_v0, %v6550_v59 }
0x60a4   :  { %v4221_v13 = vsel %vm4220_vm13, %v4131_v61, -1.0 }
0x60a5   :  { %v4222_v30 = vsel %vm4193_vm8, %v4221_v13, -inf }
0x60a6   :  { %4223 = vmax.xlane.f32.xlu1 %v4222_v30 }
0x6133   :  { %v6560_v24 = vpop.xlane.xlu1 %4223 }
0x6134   :  { %vm4227_vm15 = vcmp.eq.f32.partialorder %v6523_v0, %v6560_v24 }
0x6135   :  { %v4228_v45 = vsel %vm4227_vm15, %v4105_v5, -1.0 }
0x6136   :  { %v4229_v37 = vsel %vm4193_vm8, %v4228_v45, -inf }
0x6137   :  { %4230 = vmax.xlane.f32.xlu0 %v4229_v37 }
0x61c4   :  { %v4231_v33 = vpop.xlane.xlu0 %4230 }
0x61c5   :  { %vm4233_vm4 = vcmp.eq.f32.partialorder %v6523_v0, %v4231_v33 }
0x61c6   :  { %v4234_v21 = vsel %vm4233_vm4, %v4079_v19, -1.0 }
0x61c7   :  { %v4235_v12 = vsel %vm4193_vm8, %v4234_v21, -inf }
0x61c8   :  { %4236 = vmax.xlane.f32.xlu1 %v4235_v12 }
0x6255   :  { %v4237_v31 = vpop.xlane.xlu1 %4236 }
0x6256   :  { %vm4240_vm3 = vcmp.eq.f32.partialorder %v6523_v0, %v4237_v31 }
0x6257   :  { %v4241_v32 = vsel %vm4240_vm3, %v4053_v25, -1.0 }
0x6258   :  { %v4242_v47 = vsel %vm4193_vm8, %v4241_v32, -inf }
0x6259   :  { %4243 = vmax.xlane.f32.xlu0 %v4242_v47 }
0x62e6   :  { %v4244_v41 = vpop.xlane.xlu0 %4243 }
0x62e7   :  { %vm4247_vm2 = vcmp.eq.f32.partialorder %v6523_v0, %v4244_v41 }
0x62e8   :  { %v4248_v48 = vsel %vm4247_vm2, %v4027_v36, -1.0 }
0x62e9   :  { %v4249_v20 = vsel %vm4193_vm8, %v4248_v48, -inf }
0x62ea   :  { %4250 = vmax.xlane.f32.xlu1 %v4249_v20 }
0x62eb   :  { %5382 = shalt.err (!%p5379_p5)
}
0x62ec   :  { %s5383_s15 = scalar_lea.hbm %s6634_s11, 16 }
0x62ed   :  { %p5384_p6 = scmp.ne.s32.totalorder %s6634_s11, %s5383_s15  ;;  %p5387_p7 = scmp.lt.u32.totalorder %s5383_s15, %s6634_s11 }
0x62ef   :  { %p5389_p8 = pnand %p5387_p7, %p5384_p6 }
0x62f1   :  { %5392 = shalt.err (!%p5389_p8)
}
0x62f2   :  { %4266 = dma.vmem_to_hbm [thread:$0]  %s4264_s2, 16, %s6634_s11, [#allocation4]   ;;  %vm4204_vm0 = vcmp.eq.s32.totalorder %v5589_v10, 7  ;;  %vm4211_vm1 = vcmp.eq.s32.totalorder %v5589_v10, 6  ;;  %vm4218_vm5 = vcmp.eq.s32.totalorder %v5589_v10, 5  ;;  %vm4225_vm6 = vcmp.eq.s32.totalorder %v5589_v10, 4 }
0x62f3   :  { %v4205_v39 = vsel %vm4204_vm0, %v6532_v44, 0.0  ;;  %vm4238_vm7 = vcmp.eq.s32.totalorder %v5589_v10, 2  ;;  %vm4245_vm8 = vcmp.eq.s32.totalorder %v5589_v10, 1  ;;  %vm4252_vm9 = vcmp.eq.s32.totalorder %v5589_v10, 0  ;;  %s5439_s11 = smov [#allocation11]  }
0x62f4   :  { %v4212_v60 = vsel %vm4211_vm1, %v6540_v4, %v4205_v39  ;;  %s4273_s6 = sshll.u32 %s5439_s11, 4  ;;  %vm4255_vm10 = vcmask 64519   ;;  %s4274_s6 = int_to_ptr.vmem [resolvable:$true] %s4273_s6 }
0x62f5   :  { %v4219_v0 = vsel %vm4218_vm5, %v6550_v59, %v4212_v60  ;;  %s5393_s24 = scalar_lea.vmem %s4274_s6, 16  ;;  %s5397_s4 = scalar_lea.vmem %s4274_s6, 32 }
0x62f6   :  { %v4226_v8 = vsel %vm4225_vm6, %v6560_v24, %v4219_v0  ;;  %p5394_p9 = scmp.ne.s32.totalorder %s4274_s6, %s5393_s24  ;;  %p5398_p10 = scmp.lt.s32.totalorder %s4274_s6, %s4274_s6 }
0x62f7   :  { %v4232_v22 = vsel %vm3987_vm14, %v4231_v33, %v4226_v8  ;;  %p5399_p11 = scmp.lt.s32.totalorder %s5397_s4, %s5393_s24 }
0x62f8   :  { %v4239_v11 = vsel %vm4238_vm7, %v4237_v31, %v4232_v22 }
0x62f9   :  { %v4246_v62 = vsel %vm4245_vm8, %v4244_v41, %v4239_v11  ;;  %p5400_p12 = por %p5399_p11, %p5398_p10 }
0x62fb   :  { %p5401_p13 = pnand %p5400_p12, %p5394_p9 }
0x6377   :  { %v4251_v44 = vpop.xlane.xlu1 %4250 }
0x6378   :  { %v4253_v34 = vsel %vm4252_vm9, %v4251_v44, %v4246_v62 }
0x6379   :  { %v5148_v4 = vtrunc.f32 %v4253_v34 }
0x637b   :  { %v5149_v7 = vcvt.f32.s32 %v5148_v4 }
0x637d   :  { %4256 = vst.msk [vmem:[#allocation11 - $0x7] sm:$0x80] %vm4255_vm10, %v5149_v7 }
0x637e   :  { %5404 = shalt.err (!%p5401_p13)
}
0x637f   :  { %s5405_s1 = scalar_lea.hbm %s6635_s12, 16 }
0x6380   :  { %p5406_p0 = scmp.ne.s32.totalorder %s6635_s12, %s5405_s1  ;;  %p5409_p1 = scmp.lt.u32.totalorder %s5405_s1, %s6635_s12 }
0x6382   :  { %p5411_p2 = pnand %p5409_p1, %p5406_p0 }
0x6384   :  { %5414 = shalt.err (!%p5411_p2)
}
0x6385   :  { %4276 = dma.vmem_to_hbm [thread:$0]  %s4274_s6, 16, %s6635_s12, [#allocation12]  }
0x6386   :  { %5421 = dma.done.wait [#allocation4], 16  }
0x6387   :  { %5422 = vsyncadd [#allocation4], 4294967280 }
0x6388   :  { %5423 = dma.done.wait [#allocation12], 16  }
0x6389   :  { %5424 = vsyncadd [#allocation12], 4294967280 }
0x638a   :  { %4283 = vsyncpa [#allocation3], 1 }
0x638b   :  { %4284 = vsyncpa [#allocation8], 1 }
0x638c   :  { %4285 = vsyncpa [#allocation4], 1 }
0x638d   :  { %4286 = vsyncpa [#allocation12], 1 }
0x638e   :  { %4287 = vsyncpa [#allocation5], 1 }

</bundles_post_ra>
